<compile_context>
chip_gen: v6e
topology: v6e:2x2x1
jax: 0.10.0
libtpu: 0.0.40
codegen_flags: <defaults>
</compile_context>

<pallas_src>
import functools

import jax
import jax.numpy as jnp
from jax import lax
from jax.experimental import pallas as pl
from jax.experimental.pallas import tpu as pltpu

K = 4
N_CONV1, N_CONV2, N_CONV3 = 32, 32, 64
N_MLP1 = N_MLP2 = N_MLP3 = 256
OUT_CHANNELS = 2
BN_EPS = 1e-5
BIG = 1e30


# ----------------------------- the single fused kernel -----------------------------

def net_kernel(x_ref, *refs):
    (c1_w1d, c1_w1b, c1_b1, c1_w2, c1_b2,
     c2_w1d, c2_w1b, c2_b1, c2_w2, c2_b2,
     c3_w1d, c3_w1b, c3_b1, c3_w2, c3_b2,
     m_w1a, m_w1b, m_w1c, m_b1, m_w2, m_b2, m_w3, m_b3, m_w4, m_b4,
     o_ref) = refs

    n = x_ref.shape[0]                                        # nodes in this graph block
    row_ids = lax.broadcasted_iota(jnp.int32, (n, n), 0)
    col_ids = lax.broadcasted_iota(jnp.int32, (n, n), 1)
    eye = (row_ids == col_ids).astype(jnp.float32)
    col_f = col_ids.astype(jnp.float32)

    def knn_selectors(d):
        """k=4 nearest neighbours as stacked one-hot selector rows (K*n, n)."""
        # TODO(synk): jnp.argmin would halve the cross-lane reductions, but argmin has no
        # Mosaic lowering; min + tie-broken masked-min (lowest column id) is the safe form.
        sels = []
        for _ in range(K):                                    # K static -> unrolled
            dmin = jnp.min(d, axis=-1, keepdims=True)
            pick = jnp.min(jnp.where(d == dmin, col_f, jnp.float32(n)),
                           axis=-1, keepdims=True)
            sel = (col_f == pick).astype(jnp.float32)
            sels.append(sel)
            d = jnp.where(sel > 0.5, jnp.float32(BIG), d)     # exclude chosen neighbour
        return jnp.concatenate(sels, axis=0)

    def edge_conv(a, bm, d, w2_ref, b2_ref):
        """max_k relu(a_i + bm_{knn_k(i)}) @ w2 + b2  (one batched gather + one batched MXU)."""
        sel_all = knn_selectors(d).astype(jnp.bfloat16)                        # (K*n, n)
        gathered = jnp.dot(sel_all, bm.astype(jnp.bfloat16),
                           preferred_element_type=jnp.float32)                 # (K*n, H)
        # add `a` per static neighbour slab (no K-fold replication of `a`), then ReLU
        h = jnp.concatenate(
            [jnp.maximum(a + gathered[j * n:(j + 1) * n], 0.0) for j in range(K)],
            axis=0).astype(jnp.bfloat16)                                       # (K*n, H)
        y = jnp.dot(h, w2_ref[...], preferred_element_type=jnp.float32)        # (K*n, H)
        out = y[0:n]
        for j in range(1, K):                                  # 'max' aggregation over slabs
            out = jnp.maximum(out, y[j * n:(j + 1) * n])
        return out + b2_ref[...]                               # bias commutes with the max

    def pair_dist(x):
        # pairwise distance; row-constant ||x_i||^2 dropped (irrelevant to per-row argmin)
        cross = jnp.einsum('nf,mf->nm', x, x,
                           preferred_element_type=jnp.float32)                 # (n, n) f32
        sq_row = jnp.sum(cross * eye, axis=0, keepdims=True)                   # (1, n) ||x_j||^2
        return sq_row - 2.0 * cross

    # ---- conv1 (F = 1): pure-VPU distance + outer-product projections (no MXU matmuls
    #      with contraction dim 1; distance/kNN stay f32)
    x0 = x_ref[...].astype(jnp.float32)                                        # (n, 1)
    x_row = jnp.sum(eye * x0, axis=0, keepdims=True)                           # (1, n)
    diff = x0 - x_row
    d1 = diff * diff                                                           # (n, n)
    a1 = x0 * c1_w1d[...] + c1_b1[...]                                         # (n, 32)
    b1m = x0 * c1_w1b[...]                                                     # (n, 32)
    x1 = edge_conv(a1, b1m, d1, c1_w2, c1_b2)                                  # (n, 32)

    # ---- conv2 / conv3: MXU distance (f32) + bf16 first-linear projections
    def conv_layer(x, w1d_ref, w1b_ref, b1_ref, w2_ref, b2_ref):
        xb = x.astype(jnp.bfloat16)
        a = jnp.dot(xb, w1d_ref[...], preferred_element_type=jnp.float32) + b1_ref[...]
        bm = jnp.dot(xb, w1b_ref[...], preferred_element_type=jnp.float32)
        return edge_conv(a, bm, pair_dist(x), w2_ref, b2_ref)

    x2 = conv_layer(x1, c2_w1d, c2_w1b, c2_b1, c2_w2, c2_b2)                   # (n, 32)
    x3 = conv_layer(x2, c3_w1d, c3_w1b, c3_b1, c3_w2, c3_b2)                   # (n, 64)

    # ---- head MLP([128,256,256,256,2], norm=None) + log_softmax; cat([x1,x2,x3]) folded
    #      into three row blocks of the first weight matrix (x1/x2/x3 never leave VMEM).
    # TODO(synk): dropout(p=0.5) is a no-op in eval mode; training-mode dropout not implemented.
    h = (jnp.dot(x1.astype(jnp.bfloat16), m_w1a[...], preferred_element_type=jnp.float32)
         + jnp.dot(x2.astype(jnp.bfloat16), m_w1b[...], preferred_element_type=jnp.float32)
         + jnp.dot(x3.astype(jnp.bfloat16), m_w1c[...], preferred_element_type=jnp.float32)
         + m_b1[...])
    h = jnp.maximum(h, 0.0)
    h = jnp.maximum(jnp.dot(h.astype(jnp.bfloat16), m_w2[...],
                            preferred_element_type=jnp.float32) + m_b2[...], 0.0)
    h = jnp.maximum(jnp.dot(h.astype(jnp.bfloat16), m_w3[...],
                            preferred_element_type=jnp.float32) + m_b3[...], 0.0)
    o = jnp.dot(h.astype(jnp.bfloat16), m_w4[...],
                preferred_element_type=jnp.float32) + m_b4[...]                # (n, 2)
    m = jnp.max(o, axis=-1, keepdims=True)                    # stabilized log_softmax (f32)
    z = o - m
    o_ref[...] = z - jnp.log(jnp.sum(jnp.exp(z), axis=-1, keepdims=True))


# --------------------------------- forward wrapper ---------------------------------

def _wspec(arr):
    # full-array (untiled) weight block; constant index map -> DMA'd once, reused per step
    return pl.BlockSpec(arr.shape, lambda g: (0, 0))


@functools.partial(jax.jit, static_argnames=("num_graphs",))
def _forward(params, x, num_graphs):
    n_total, f_in = x.shape
    gn = n_total // num_graphs
    assert gn * num_graphs == n_total and gn % 8 == 0, "graphs must be equal-sized, multiple of 8 nodes"

    conv_keys = ('w1d', 'w1b', 'b1', 'w2', 'b2')
    mlp_keys = ('w1a', 'w1b', 'w1c', 'b1', 'w2', 'b2', 'w3', 'b3', 'w4', 'b4')
    weights = [params[l][k] for l in ('conv1', 'conv2', 'conv3') for k in conv_keys]
    weights += [params['mlp'][k] for k in mlp_keys]

    # NOTE: at gn=32 the per-step working set (distance (gn,gn) + selectors (4gn,gn) + weights)
    # is far below every generation's VMEM limit; for gn beyond ~2k the distance/kNN block
    # would need row tiling and an explicit vmem_limit_bytes.
    return pl.pallas_call(
        net_kernel,
        out_shape=jax.ShapeDtypeStruct((n_total, OUT_CHANNELS), jnp.float32),
        grid=(num_graphs,),
        in_specs=[pl.BlockSpec((gn, f_in), lambda g: (g, 0))] + [_wspec(w) for w in weights],
        out_specs=pl.BlockSpec((gn, OUT_CHANNELS), lambda g: (g, 0)),
        compiler_params=pltpu.CompilerParams(dimension_semantics=("parallel",)),
    )(x, *weights)


def net_forward(params, x, batch):
    # Graphs are assumed contiguous and equal-sized in `batch` (true for the test input).
    # TODO(synk): ragged / many-graph batches need PrefetchScalarGridSpec with per-graph
    # offsets (and packing several graphs per block with a block-diagonal mask for MXU fill).
    num_graphs = int(batch[-1]) + 1
    return _forward(params, x, num_graphs)


# ----------------------------------- parameters ------------------------------------

def _linear(key, fan_in, fan_out):
    kw, kb = jax.random.split(key)
    bound = 1.0 / jnp.sqrt(jnp.float32(fan_in))
    w = jax.random.uniform(kw, (fan_in, fan_out), jnp.float32, -bound, bound)
    b = jax.random.uniform(kb, (1, fan_out), jnp.float32, -bound, bound)
    return w, b


def _conv_params(key, f_in, h, first_on_vpu=False):
    """DynamicEdgeConv nn = MLP([2*f_in, h, h]); BatchNorm(eval, fresh stats) folded into the
    first Linear, cat[x_i, x_j-x_i] folded into two weight blocks (w1d = W1a-W1b, w1b = W1b)."""
    k1, k2 = jax.random.split(key)
    w1, b1 = _linear(k1, 2 * f_in, h)
    w2, b2 = _linear(k2, h, h)
    scale = 1.0 / jnp.sqrt(jnp.float32(1.0 + BN_EPS))   # BN eval: mean=0, var=1, gamma=1, beta=0
    w1 = w1 * scale
    b1 = b1 * scale
    w1a, w1b = w1[:f_in], w1[f_in:]
    mm_dt = jnp.float32 if first_on_vpu else jnp.bfloat16   # conv1's first linear runs on the VPU
    return {'w1d': (w1a - w1b).astype(mm_dt), 'w1b': w1b.astype(mm_dt), 'b1': b1,
            'w2': w2.astype(jnp.bfloat16), 'b2': b2}


def init_params(key):
    k1, k2, k3, k4, k5, k6, k7 = jax.random.split(key, 7)
    conv1 = _conv_params(k1, 1, N_CONV1, first_on_vpu=True)
    conv2 = _conv_params(k2, N_CONV1, N_CONV2)
    conv3 = _conv_params(k3, N_CONV2, N_CONV3)
    d_in = N_CONV1 + N_CONV2 + N_CONV3
    w1, b1 = _linear(k4, d_in, N_MLP1)
    w2, b2 = _linear(k5, N_MLP1, N_MLP2)
    w3, b3 = _linear(k6, N_MLP2, N_MLP3)
    w4, b4 = _linear(k7, N_MLP3, OUT_CHANNELS)
    bf = jnp.bfloat16
    mlp = {'w1a': w1[:N_CONV1].astype(bf),
           'w1b': w1[N_CONV1:N_CONV1 + N_CONV2].astype(bf),
           'w1c': w1[N_CONV1 + N_CONV2:].astype(bf),
           'b1': b1, 'w2': w2.astype(bf), 'b2': b2,
           'w3': w3.astype(bf), 'b3': b3, 'w4': w4.astype(bf), 'b4': b4}
    return {'conv1': conv1, 'conv2': conv2, 'conv3': conv3, 'mlp': mlp}


# --------------------------------------- main ----------------------------------------

if __name__ == "__main__":
    key = jax.random.PRNGKey(0)
    k_param, k_x = jax.random.split(key)

    N = 64                                                   # 2 graphs of 32 nodes each
    x = jax.random.normal(k_x, (N, 1), jnp.float32)          # data.x : 1 feature per node
    batch = jnp.concatenate([jnp.zeros(N // 2, jnp.int32),
                             jnp.ones(N // 2, jnp.int32)])   # data.batch

    params = init_params(k_param)
    out = net_forward(params, x, batch)
    out = jax.block_until_ready(out)

    assert out.shape == (N, OUT_CHANNELS)
    assert bool(jnp.all(jnp.isfinite(out)))
    # rows of log_softmax must (log-)sum to ~0
    assert bool(jnp.all(jnp.abs(jnp.sum(jnp.exp(out), axis=1) - 1.0) < 1e-4))
    print("KERNEL_OK")
</pallas_src>

<mosaic_0001>
module attributes {stable_mosaic.version = 11 : i64} {
  func.func @net_kernel(%arg0: i32, %arg1: memref<32x1xf32, #tpu.memory_space<vmem>>, %arg2: memref<1x32xf32, #tpu.memory_space<vmem>>, %arg3: memref<1x32xf32, #tpu.memory_space<vmem>>, %arg4: memref<1x32xf32, #tpu.memory_space<vmem>>, %arg5: memref<32x32xbf16, #tpu.memory_space<vmem>>, %arg6: memref<1x32xf32, #tpu.memory_space<vmem>>, %arg7: memref<32x32xbf16, #tpu.memory_space<vmem>>, %arg8: memref<32x32xbf16, #tpu.memory_space<vmem>>, %arg9: memref<1x32xf32, #tpu.memory_space<vmem>>, %arg10: memref<32x32xbf16, #tpu.memory_space<vmem>>, %arg11: memref<1x32xf32, #tpu.memory_space<vmem>>, %arg12: memref<32x64xbf16, #tpu.memory_space<vmem>>, %arg13: memref<32x64xbf16, #tpu.memory_space<vmem>>, %arg14: memref<1x64xf32, #tpu.memory_space<vmem>>, %arg15: memref<64x64xbf16, #tpu.memory_space<vmem>>, %arg16: memref<1x64xf32, #tpu.memory_space<vmem>>, %arg17: memref<32x256xbf16, #tpu.memory_space<vmem>>, %arg18: memref<32x256xbf16, #tpu.memory_space<vmem>>, %arg19: memref<64x256xbf16, #tpu.memory_space<vmem>>, %arg20: memref<1x256xf32, #tpu.memory_space<vmem>>, %arg21: memref<256x256xbf16, #tpu.memory_space<vmem>>, %arg22: memref<1x256xf32, #tpu.memory_space<vmem>>, %arg23: memref<256x256xbf16, #tpu.memory_space<vmem>>, %arg24: memref<1x256xf32, #tpu.memory_space<vmem>>, %arg25: memref<256x2xbf16, #tpu.memory_space<vmem>>, %arg26: memref<1x2xf32, #tpu.memory_space<vmem>>, %arg27: memref<32x2xf32, #tpu.memory_space<vmem>>) attributes {dimension_semantics = [#tpu.dimension_semantics<parallel>], iteration_bounds = array<i64: 2>, scalar_prefetch = 0 : i64, scratch_operands = 0 : i64, tpu.core_type = #tpu.core_type<tc>, window_params = [{transform_indices = @transform_0, window_bounds = array<i64: 32, 1>}, {pipeline_mode = #tpu.pipeline_mode<synchronous>, transform_indices = @transform_1, window_bounds = array<i64: 1, 32>}, {pipeline_mode = #tpu.pipeline_mode<synchronous>, transform_indices = @transform_2, window_bounds = array<i64: 1, 32>}, {pipeline_mode = #tpu.pipeline_mode<synchronous>, transform_indices = @transform_3, window_bounds = array<i64: 1, 32>}, {pipeline_mode = #tpu.pipeline_mode<synchronous>, transform_indices = @transform_4, window_bounds = array<i64: 32, 32>}, {pipeline_mode = #tpu.pipeline_mode<synchronous>, transform_indices = @transform_5, window_bounds = array<i64: 1, 32>}, {pipeline_mode = #tpu.pipeline_mode<synchronous>, transform_indices = @transform_6, window_bounds = array<i64: 32, 32>}, {pipeline_mode = #tpu.pipeline_mode<synchronous>, transform_indices = @transform_7, window_bounds = array<i64: 32, 32>}, {pipeline_mode = #tpu.pipeline_mode<synchronous>, transform_indices = @transform_8, window_bounds = array<i64: 1, 32>}, {pipeline_mode = #tpu.pipeline_mode<synchronous>, transform_indices = @transform_9, window_bounds = array<i64: 32, 32>}, {pipeline_mode = #tpu.pipeline_mode<synchronous>, transform_indices = @transform_10, window_bounds = array<i64: 1, 32>}, {pipeline_mode = #tpu.pipeline_mode<synchronous>, transform_indices = @transform_11, window_bounds = array<i64: 32, 64>}, {pipeline_mode = #tpu.pipeline_mode<synchronous>, transform_indices = @transform_12, window_bounds = array<i64: 32, 64>}, {pipeline_mode = #tpu.pipeline_mode<synchronous>, transform_indices = @transform_13, window_bounds = array<i64: 1, 64>}, {pipeline_mode = #tpu.pipeline_mode<synchronous>, transform_indices = @transform_14, window_bounds = array<i64: 64, 64>}, {pipeline_mode = #tpu.pipeline_mode<synchronous>, transform_indices = @transform_15, window_bounds = array<i64: 1, 64>}, {pipeline_mode = #tpu.pipeline_mode<synchronous>, transform_indices = @transform_16, window_bounds = array<i64: 32, 256>}, {pipeline_mode = #tpu.pipeline_mode<synchronous>, transform_indices = @transform_17, window_bounds = array<i64: 32, 256>}, {pipeline_mode = #tpu.pipeline_mode<synchronous>, transform_indices = @transform_18, window_bounds = array<i64: 64, 256>}, {pipeline_mode = #tpu.pipeline_mode<synchronous>, transform_indices = @transform_19, window_bounds = array<i64: 1, 256>}, {pipeline_mode = #tpu.pipeline_mode<synchronous>, transform_indices = @transform_20, window_bounds = array<i64: 256, 256>}, {pipeline_mode = #tpu.pipeline_mode<synchronous>, transform_indices = @transform_21, window_bounds = array<i64: 1, 256>}, {pipeline_mode = #tpu.pipeline_mode<synchronous>, transform_indices = @transform_22, window_bounds = array<i64: 256, 256>}, {pipeline_mode = #tpu.pipeline_mode<synchronous>, transform_indices = @transform_23, window_bounds = array<i64: 1, 256>}, {pipeline_mode = #tpu.pipeline_mode<synchronous>, transform_indices = @transform_24, window_bounds = array<i64: 256, 2>}, {pipeline_mode = #tpu.pipeline_mode<synchronous>, transform_indices = @transform_25, window_bounds = array<i64: 1, 2>}, {transform_indices = @transform_26, window_bounds = array<i64: 32, 2>}]} {
    %0 = tpu.iota {dimensions = array<i32: 0>} : vector<32x32xi32>
    %1 = tpu.iota {dimensions = array<i32: 1>} : vector<32x32xi32>
    %2 = arith.cmpi eq, %0, %1 : vector<32x32xi32>
    %3 = arith.extui %2 : vector<32x32xi1> to vector<32x32xi32>
    %4 = arith.sitofp %3 : vector<32x32xi32> to vector<32x32xf32>
    %5 = arith.sitofp %1 : vector<32x32xi32> to vector<32x32xf32>
    %c0 = arith.constant 0 : index
    %c0_0 = arith.constant 0 : index
    %6 = vector.load %arg1[%c0, %c0_0] : memref<32x1xf32, #tpu.memory_space<vmem>>, vector<32x1xf32>
    %7 = vector.broadcast %6 : vector<32x1xf32> to vector<32x32xf32>
    %8 = arith.mulf %4, %7 : vector<32x32xf32>
    %cst = arith.constant dense<0.000000e+00> : vector<32xf32>
    %9 = vector.multi_reduction <add>, %8, %cst [0] : vector<32x32xf32> to vector<32xf32>
    %10 = vector.shape_cast %9 : vector<32xf32> to vector<1x32xf32>
    %11 = vector.broadcast %6 : vector<32x1xf32> to vector<32x32xf32>
    %12 = vector.broadcast %10 : vector<1x32xf32> to vector<32x32xf32>
    %13 = arith.subf %11, %12 : vector<32x32xf32>
    %14 = arith.mulf %13, %13 : vector<32x32xf32>
    %c0_1 = arith.constant 0 : index
    %c0_2 = arith.constant 0 : index
    %15 = vector.load %arg2[%c0_1, %c0_2] : memref<1x32xf32, #tpu.memory_space<vmem>>, vector<1x32xf32>
    %16 = vector.broadcast %6 : vector<32x1xf32> to vector<32x32xf32>
    %17 = vector.broadcast %15 : vector<1x32xf32> to vector<32x32xf32>
    %18 = arith.mulf %16, %17 : vector<32x32xf32>
    %c0_3 = arith.constant 0 : index
    %c0_4 = arith.constant 0 : index
    %19 = vector.load %arg4[%c0_3, %c0_4] : memref<1x32xf32, #tpu.memory_space<vmem>>, vector<1x32xf32>
    %20 = vector.broadcast %19 : vector<1x32xf32> to vector<32x32xf32>
    %21 = arith.addf %18, %20 : vector<32x32xf32>
    %c0_5 = arith.constant 0 : index
    %c0_6 = arith.constant 0 : index
    %22 = vector.load %arg3[%c0_5, %c0_6] : memref<1x32xf32, #tpu.memory_space<vmem>>, vector<1x32xf32>
    %23 = vector.broadcast %6 : vector<32x1xf32> to vector<32x32xf32>
    %24 = vector.broadcast %22 : vector<1x32xf32> to vector<32x32xf32>
    %25 = arith.mulf %23, %24 : vector<32x32xf32>
    %cst_7 = arith.constant dense<0x7F800000> : vector<32xf32>
    %26 = vector.multi_reduction <minimumf>, %14, %cst_7 [1] : vector<32x32xf32> to vector<32xf32>
    %27 = vector.shape_cast %26 : vector<32xf32> to vector<32x1xf32>
    %28 = vector.broadcast %27 : vector<32x1xf32> to vector<32x32xf32>
    %29 = arith.cmpf oeq, %14, %28 : vector<32x32xf32>
    %cst_8 = arith.constant 3.200000e+01 : f32
    %30 = vector.broadcast %cst_8 : f32 to vector<32x32xf32>
    %31 = arith.select %29, %5, %30 : vector<32x32xi1>, vector<32x32xf32>
    %cst_9 = arith.constant dense<0x7F800000> : vector<32xf32>
    %32 = vector.multi_reduction <minimumf>, %31, %cst_9 [1] : vector<32x32xf32> to vector<32xf32>
    %33 = vector.shape_cast %32 : vector<32xf32> to vector<32x1xf32>
    %34 = vector.broadcast %33 : vector<32x1xf32> to vector<32x32xf32>
    %35 = arith.cmpf oeq, %5, %34 : vector<32x32xf32>
    %36 = arith.extui %35 : vector<32x32xi1> to vector<32x32xi32>
    %37 = arith.sitofp %36 : vector<32x32xi32> to vector<32x32xf32>
    %cst_10 = arith.constant 5.000000e-01 : f32
    %38 = vector.broadcast %cst_10 : f32 to vector<32x32xf32>
    %39 = arith.cmpf ogt, %37, %38 : vector<32x32xf32>
    %cst_11 = arith.constant 1.000000e+30 : f32
    %40 = vector.broadcast %cst_11 : f32 to vector<32x32xf32>
    %41 = arith.select %39, %40, %14 : vector<32x32xi1>, vector<32x32xf32>
    %cst_12 = arith.constant dense<0x7F800000> : vector<32xf32>
    %42 = vector.multi_reduction <minimumf>, %41, %cst_12 [1] : vector<32x32xf32> to vector<32xf32>
    %43 = vector.shape_cast %42 : vector<32xf32> to vector<32x1xf32>
    %44 = vector.broadcast %43 : vector<32x1xf32> to vector<32x32xf32>
    %45 = arith.cmpf oeq, %41, %44 : vector<32x32xf32>
    %cst_13 = arith.constant 3.200000e+01 : f32
    %46 = vector.broadcast %cst_13 : f32 to vector<32x32xf32>
    %47 = arith.select %45, %5, %46 : vector<32x32xi1>, vector<32x32xf32>
    %cst_14 = arith.constant dense<0x7F800000> : vector<32xf32>
    %48 = vector.multi_reduction <minimumf>, %47, %cst_14 [1] : vector<32x32xf32> to vector<32xf32>
    %49 = vector.shape_cast %48 : vector<32xf32> to vector<32x1xf32>
    %50 = vector.broadcast %49 : vector<32x1xf32> to vector<32x32xf32>
    %51 = arith.cmpf oeq, %5, %50 : vector<32x32xf32>
    %52 = arith.extui %51 : vector<32x32xi1> to vector<32x32xi32>
    %53 = arith.sitofp %52 : vector<32x32xi32> to vector<32x32xf32>
    %cst_15 = arith.constant 5.000000e-01 : f32
    %54 = vector.broadcast %cst_15 : f32 to vector<32x32xf32>
    %55 = arith.cmpf ogt, %53, %54 : vector<32x32xf32>
    %cst_16 = arith.constant 1.000000e+30 : f32
    %56 = vector.broadcast %cst_16 : f32 to vector<32x32xf32>
    %57 = arith.select %55, %56, %41 : vector<32x32xi1>, vector<32x32xf32>
    %cst_17 = arith.constant dense<0x7F800000> : vector<32xf32>
    %58 = vector.multi_reduction <minimumf>, %57, %cst_17 [1] : vector<32x32xf32> to vector<32xf32>
    %59 = vector.shape_cast %58 : vector<32xf32> to vector<32x1xf32>
    %60 = vector.broadcast %59 : vector<32x1xf32> to vector<32x32xf32>
    %61 = arith.cmpf oeq, %57, %60 : vector<32x32xf32>
    %cst_18 = arith.constant 3.200000e+01 : f32
    %62 = vector.broadcast %cst_18 : f32 to vector<32x32xf32>
    %63 = arith.select %61, %5, %62 : vector<32x32xi1>, vector<32x32xf32>
    %cst_19 = arith.constant dense<0x7F800000> : vector<32xf32>
    %64 = vector.multi_reduction <minimumf>, %63, %cst_19 [1] : vector<32x32xf32> to vector<32xf32>
    %65 = vector.shape_cast %64 : vector<32xf32> to vector<32x1xf32>
    %66 = vector.broadcast %65 : vector<32x1xf32> to vector<32x32xf32>
    %67 = arith.cmpf oeq, %5, %66 : vector<32x32xf32>
    %68 = arith.extui %67 : vector<32x32xi1> to vector<32x32xi32>
    %69 = arith.sitofp %68 : vector<32x32xi32> to vector<32x32xf32>
    %cst_20 = arith.constant 5.000000e-01 : f32
    %70 = vector.broadcast %cst_20 : f32 to vector<32x32xf32>
    %71 = arith.cmpf ogt, %69, %70 : vector<32x32xf32>
    %cst_21 = arith.constant 1.000000e+30 : f32
    %72 = vector.broadcast %cst_21 : f32 to vector<32x32xf32>
    %73 = arith.select %71, %72, %57 : vector<32x32xi1>, vector<32x32xf32>
    %cst_22 = arith.constant dense<0x7F800000> : vector<32xf32>
    %74 = vector.multi_reduction <minimumf>, %73, %cst_22 [1] : vector<32x32xf32> to vector<32xf32>
    %75 = vector.shape_cast %74 : vector<32xf32> to vector<32x1xf32>
    %76 = vector.broadcast %75 : vector<32x1xf32> to vector<32x32xf32>
    %77 = arith.cmpf oeq, %73, %76 : vector<32x32xf32>
    %cst_23 = arith.constant 3.200000e+01 : f32
    %78 = vector.broadcast %cst_23 : f32 to vector<32x32xf32>
    %79 = arith.select %77, %5, %78 : vector<32x32xi1>, vector<32x32xf32>
    %cst_24 = arith.constant dense<0x7F800000> : vector<32xf32>
    %80 = vector.multi_reduction <minimumf>, %79, %cst_24 [1] : vector<32x32xf32> to vector<32xf32>
    %81 = vector.shape_cast %80 : vector<32xf32> to vector<32x1xf32>
    %82 = vector.broadcast %81 : vector<32x1xf32> to vector<32x32xf32>
    %83 = arith.cmpf oeq, %5, %82 : vector<32x32xf32>
    %84 = arith.extui %83 : vector<32x32xi1> to vector<32x32xi32>
    %85 = arith.sitofp %84 : vector<32x32xi32> to vector<32x32xf32>
    %86 = tpu.concatenate %37, %53, %69, %85 in 0 : vector<32x32xf32>, vector<32x32xf32>, vector<32x32xf32>, vector<32x32xf32> -> vector<128x32xf32>
    %87 = arith.truncf %86 : vector<128x32xf32> to vector<128x32xbf16>
    %88 = arith.truncf %25 : vector<32x32xf32> to vector<32x32xbf16>
    %cst_25 = arith.constant dense<0.000000e+00> : vector<128x32xf32>
    %89 = tpu.matmul %87, %88, %cst_25 {dimension_numbers = #tpu.dot_dimension_numbers<[1], [0], [0], [1], [0, 0, 1, 1], [], []>} : vector<128x32xbf16>, vector<32x32xbf16>, vector<128x32xf32> -> vector<128x32xf32>
    %90 = vector.extract_strided_slice %89 {offsets = [0, 0], sizes = [32, 32], strides = [1, 1]} : vector<128x32xf32> to vector<32x32xf32>
    %91 = arith.addf %21, %90 : vector<32x32xf32>
    %cst_26 = arith.constant 0.000000e+00 : f32
    %92 = vector.broadcast %cst_26 : f32 to vector<32x32xf32>
    %93 = arith.maximumf %91, %92 : vector<32x32xf32>
    %94 = vector.extract_strided_slice %89 {offsets = [32, 0], sizes = [32, 32], strides = [1, 1]} : vector<128x32xf32> to vector<32x32xf32>
    %95 = arith.addf %21, %94 : vector<32x32xf32>
    %cst_27 = arith.constant 0.000000e+00 : f32
    %96 = vector.broadcast %cst_27 : f32 to vector<32x32xf32>
    %97 = arith.maximumf %95, %96 : vector<32x32xf32>
    %98 = vector.extract_strided_slice %89 {offsets = [64, 0], sizes = [32, 32], strides = [1, 1]} : vector<128x32xf32> to vector<32x32xf32>
    %99 = arith.addf %21, %98 : vector<32x32xf32>
    %cst_28 = arith.constant 0.000000e+00 : f32
    %100 = vector.broadcast %cst_28 : f32 to vector<32x32xf32>
    %101 = arith.maximumf %99, %100 : vector<32x32xf32>
    %102 = vector.extract_strided_slice %89 {offsets = [96, 0], sizes = [32, 32], strides = [1, 1]} : vector<128x32xf32> to vector<32x32xf32>
    %103 = arith.addf %21, %102 : vector<32x32xf32>
    %cst_29 = arith.constant 0.000000e+00 : f32
    %104 = vector.broadcast %cst_29 : f32 to vector<32x32xf32>
    %105 = arith.maximumf %103, %104 : vector<32x32xf32>
    %106 = tpu.concatenate %93, %97, %101, %105 in 0 : vector<32x32xf32>, vector<32x32xf32>, vector<32x32xf32>, vector<32x32xf32> -> vector<128x32xf32>
    %107 = arith.truncf %106 : vector<128x32xf32> to vector<128x32xbf16>
    %c0_30 = arith.constant 0 : index
    %c0_31 = arith.constant 0 : index
    %108 = vector.load %arg5[%c0_30, %c0_31] : memref<32x32xbf16, #tpu.memory_space<vmem>>, vector<32x32xbf16>
    %cst_32 = arith.constant dense<0.000000e+00> : vector<128x32xf32>
    %109 = tpu.matmul %107, %108, %cst_32 {dimension_numbers = #tpu.dot_dimension_numbers<[1], [0], [0], [1], [0, 0, 1, 1], [], []>} : vector<128x32xbf16>, vector<32x32xbf16>, vector<128x32xf32> -> vector<128x32xf32>
    %110 = vector.extract_strided_slice %109 {offsets = [0, 0], sizes = [32, 32], strides = [1, 1]} : vector<128x32xf32> to vector<32x32xf32>
    %111 = vector.extract_strided_slice %109 {offsets = [32, 0], sizes = [32, 32], strides = [1, 1]} : vector<128x32xf32> to vector<32x32xf32>
    %112 = arith.maximumf %110, %111 : vector<32x32xf32>
    %113 = vector.extract_strided_slice %109 {offsets = [64, 0], sizes = [32, 32], strides = [1, 1]} : vector<128x32xf32> to vector<32x32xf32>
    %114 = arith.maximumf %112, %113 : vector<32x32xf32>
    %115 = vector.extract_strided_slice %109 {offsets = [96, 0], sizes = [32, 32], strides = [1, 1]} : vector<128x32xf32> to vector<32x32xf32>
    %116 = arith.maximumf %114, %115 : vector<32x32xf32>
    %c0_33 = arith.constant 0 : index
    %c0_34 = arith.constant 0 : index
    %117 = vector.load %arg6[%c0_33, %c0_34] : memref<1x32xf32, #tpu.memory_space<vmem>>, vector<1x32xf32>
    %118 = vector.broadcast %117 : vector<1x32xf32> to vector<32x32xf32>
    %119 = arith.addf %116, %118 : vector<32x32xf32>
    %120 = arith.truncf %119 : vector<32x32xf32> to vector<32x32xbf16>
    %c0_35 = arith.constant 0 : index
    %c0_36 = arith.constant 0 : index
    %121 = vector.load %arg7[%c0_35, %c0_36] : memref<32x32xbf16, #tpu.memory_space<vmem>>, vector<32x32xbf16>
    %cst_37 = arith.constant dense<0.000000e+00> : vector<32x32xf32>
    %122 = tpu.matmul %120, %121, %cst_37 {dimension_numbers = #tpu.dot_dimension_numbers<[1], [0], [0], [1], [0, 0, 1, 1], [], []>} : vector<32x32xbf16>, vector<32x32xbf16>, vector<32x32xf32> -> vector<32x32xf32>
    %c0_38 = arith.constant 0 : index
    %c0_39 = arith.constant 0 : index
    %123 = vector.load %arg9[%c0_38, %c0_39] : memref<1x32xf32, #tpu.memory_space<vmem>>, vector<1x32xf32>
    %124 = vector.broadcast %123 : vector<1x32xf32> to vector<32x32xf32>
    %125 = arith.addf %122, %124 : vector<32x32xf32>
    %c0_40 = arith.constant 0 : index
    %c0_41 = arith.constant 0 : index
    %126 = vector.load %arg8[%c0_40, %c0_41] : memref<32x32xbf16, #tpu.memory_space<vmem>>, vector<32x32xbf16>
    %cst_42 = arith.constant dense<0.000000e+00> : vector<32x32xf32>
    %127 = tpu.matmul %120, %126, %cst_42 {dimension_numbers = #tpu.dot_dimension_numbers<[1], [0], [0], [1], [0, 0, 1, 1], [], []>} : vector<32x32xbf16>, vector<32x32xbf16>, vector<32x32xf32> -> vector<32x32xf32>
    "tpu.trace_start"() <{level = 10 : i32, message = "nf,mf->nm"}> : () -> ()
    %cst_43 = arith.constant dense<0.000000e+00> : vector<32x32xf32>
    %128 = tpu.matmul %119, %119, %cst_43 {dimension_numbers = #tpu.dot_dimension_numbers<[1], [1], [0], [0], [0, 0, 1, 0], [], []>} : vector<32x32xf32>, vector<32x32xf32>, vector<32x32xf32> -> vector<32x32xf32>
    "tpu.trace_stop"() : () -> ()
    %129 = arith.mulf %128, %4 : vector<32x32xf32>
    %cst_44 = arith.constant dense<0.000000e+00> : vector<32xf32>
    %130 = vector.multi_reduction <add>, %129, %cst_44 [0] : vector<32x32xf32> to vector<32xf32>
    %131 = vector.shape_cast %130 : vector<32xf32> to vector<1x32xf32>
    %cst_45 = arith.constant 2.000000e+00 : f32
    %132 = vector.broadcast %cst_45 : f32 to vector<32x32xf32>
    %133 = arith.mulf %132, %128 : vector<32x32xf32>
    %134 = vector.broadcast %131 : vector<1x32xf32> to vector<32x32xf32>
    %135 = arith.subf %134, %133 : vector<32x32xf32>
    %cst_46 = arith.constant dense<0x7F800000> : vector<32xf32>
    %136 = vector.multi_reduction <minimumf>, %135, %cst_46 [1] : vector<32x32xf32> to vector<32xf32>
    %137 = vector.shape_cast %136 : vector<32xf32> to vector<32x1xf32>
    %138 = vector.broadcast %137 : vector<32x1xf32> to vector<32x32xf32>
    %139 = arith.cmpf oeq, %135, %138 : vector<32x32xf32>
    %cst_47 = arith.constant 3.200000e+01 : f32
    %140 = vector.broadcast %cst_47 : f32 to vector<32x32xf32>
    %141 = arith.select %139, %5, %140 : vector<32x32xi1>, vector<32x32xf32>
    %cst_48 = arith.constant dense<0x7F800000> : vector<32xf32>
    %142 = vector.multi_reduction <minimumf>, %141, %cst_48 [1] : vector<32x32xf32> to vector<32xf32>
    %143 = vector.shape_cast %142 : vector<32xf32> to vector<32x1xf32>
    %144 = vector.broadcast %143 : vector<32x1xf32> to vector<32x32xf32>
    %145 = arith.cmpf oeq, %5, %144 : vector<32x32xf32>
    %146 = arith.extui %145 : vector<32x32xi1> to vector<32x32xi32>
    %147 = arith.sitofp %146 : vector<32x32xi32> to vector<32x32xf32>
    %cst_49 = arith.constant 5.000000e-01 : f32
    %148 = vector.broadcast %cst_49 : f32 to vector<32x32xf32>
    %149 = arith.cmpf ogt, %147, %148 : vector<32x32xf32>
    %cst_50 = arith.constant 1.000000e+30 : f32
    %150 = vector.broadcast %cst_50 : f32 to vector<32x32xf32>
    %151 = arith.select %149, %150, %135 : vector<32x32xi1>, vector<32x32xf32>
    %cst_51 = arith.constant dense<0x7F800000> : vector<32xf32>
    %152 = vector.multi_reduction <minimumf>, %151, %cst_51 [1] : vector<32x32xf32> to vector<32xf32>
    %153 = vector.shape_cast %152 : vector<32xf32> to vector<32x1xf32>
    %154 = vector.broadcast %153 : vector<32x1xf32> to vector<32x32xf32>
    %155 = arith.cmpf oeq, %151, %154 : vector<32x32xf32>
    %cst_52 = arith.constant 3.200000e+01 : f32
    %156 = vector.broadcast %cst_52 : f32 to vector<32x32xf32>
    %157 = arith.select %155, %5, %156 : vector<32x32xi1>, vector<32x32xf32>
    %cst_53 = arith.constant dense<0x7F800000> : vector<32xf32>
    %158 = vector.multi_reduction <minimumf>, %157, %cst_53 [1] : vector<32x32xf32> to vector<32xf32>
    %159 = vector.shape_cast %158 : vector<32xf32> to vector<32x1xf32>
    %160 = vector.broadcast %159 : vector<32x1xf32> to vector<32x32xf32>
    %161 = arith.cmpf oeq, %5, %160 : vector<32x32xf32>
    %162 = arith.extui %161 : vector<32x32xi1> to vector<32x32xi32>
    %163 = arith.sitofp %162 : vector<32x32xi32> to vector<32x32xf32>
    %cst_54 = arith.constant 5.000000e-01 : f32
    %164 = vector.broadcast %cst_54 : f32 to vector<32x32xf32>
    %165 = arith.cmpf ogt, %163, %164 : vector<32x32xf32>
    %cst_55 = arith.constant 1.000000e+30 : f32
    %166 = vector.broadcast %cst_55 : f32 to vector<32x32xf32>
    %167 = arith.select %165, %166, %151 : vector<32x32xi1>, vector<32x32xf32>
    %cst_56 = arith.constant dense<0x7F800000> : vector<32xf32>
    %168 = vector.multi_reduction <minimumf>, %167, %cst_56 [1] : vector<32x32xf32> to vector<32xf32>
    %169 = vector.shape_cast %168 : vector<32xf32> to vector<32x1xf32>
    %170 = vector.broadcast %169 : vector<32x1xf32> to vector<32x32xf32>
    %171 = arith.cmpf oeq, %167, %170 : vector<32x32xf32>
    %cst_57 = arith.constant 3.200000e+01 : f32
    %172 = vector.broadcast %cst_57 : f32 to vector<32x32xf32>
    %173 = arith.select %171, %5, %172 : vector<32x32xi1>, vector<32x32xf32>
    %cst_58 = arith.constant dense<0x7F800000> : vector<32xf32>
    %174 = vector.multi_reduction <minimumf>, %173, %cst_58 [1] : vector<32x32xf32> to vector<32xf32>
    %175 = vector.shape_cast %174 : vector<32xf32> to vector<32x1xf32>
    %176 = vector.broadcast %175 : vector<32x1xf32> to vector<32x32xf32>
    %177 = arith.cmpf oeq, %5, %176 : vector<32x32xf32>
    %178 = arith.extui %177 : vector<32x32xi1> to vector<32x32xi32>
    %179 = arith.sitofp %178 : vector<32x32xi32> to vector<32x32xf32>
    %cst_59 = arith.constant 5.000000e-01 : f32
    %180 = vector.broadcast %cst_59 : f32 to vector<32x32xf32>
    %181 = arith.cmpf ogt, %179, %180 : vector<32x32xf32>
    %cst_60 = arith.constant 1.000000e+30 : f32
    %182 = vector.broadcast %cst_60 : f32 to vector<32x32xf32>
    %183 = arith.select %181, %182, %167 : vector<32x32xi1>, vector<32x32xf32>
    %cst_61 = arith.constant dense<0x7F800000> : vector<32xf32>
    %184 = vector.multi_reduction <minimumf>, %183, %cst_61 [1] : vector<32x32xf32> to vector<32xf32>
    %185 = vector.shape_cast %184 : vector<32xf32> to vector<32x1xf32>
    %186 = vector.broadcast %185 : vector<32x1xf32> to vector<32x32xf32>
    %187 = arith.cmpf oeq, %183, %186 : vector<32x32xf32>
    %cst_62 = arith.constant 3.200000e+01 : f32
    %188 = vector.broadcast %cst_62 : f32 to vector<32x32xf32>
    %189 = arith.select %187, %5, %188 : vector<32x32xi1>, vector<32x32xf32>
    %cst_63 = arith.constant dense<0x7F800000> : vector<32xf32>
    %190 = vector.multi_reduction <minimumf>, %189, %cst_63 [1] : vector<32x32xf32> to vector<32xf32>
    %191 = vector.shape_cast %190 : vector<32xf32> to vector<32x1xf32>
    %192 = vector.broadcast %191 : vector<32x1xf32> to vector<32x32xf32>
    %193 = arith.cmpf oeq, %5, %192 : vector<32x32xf32>
    %194 = arith.extui %193 : vector<32x32xi1> to vector<32x32xi32>
    %195 = arith.sitofp %194 : vector<32x32xi32> to vector<32x32xf32>
    %196 = tpu.concatenate %147, %163, %179, %195 in 0 : vector<32x32xf32>, vector<32x32xf32>, vector<32x32xf32>, vector<32x32xf32> -> vector<128x32xf32>
    %197 = arith.truncf %196 : vector<128x32xf32> to vector<128x32xbf16>
    %198 = arith.truncf %127 : vector<32x32xf32> to vector<32x32xbf16>
    %cst_64 = arith.constant dense<0.000000e+00> : vector<128x32xf32>
    %199 = tpu.matmul %197, %198, %cst_64 {dimension_numbers = #tpu.dot_dimension_numbers<[1], [0], [0], [1], [0, 0, 1, 1], [], []>} : vector<128x32xbf16>, vector<32x32xbf16>, vector<128x32xf32> -> vector<128x32xf32>
    %200 = vector.extract_strided_slice %199 {offsets = [0, 0], sizes = [32, 32], strides = [1, 1]} : vector<128x32xf32> to vector<32x32xf32>
    %201 = arith.addf %125, %200 : vector<32x32xf32>
    %cst_65 = arith.constant 0.000000e+00 : f32
    %202 = vector.broadcast %cst_65 : f32 to vector<32x32xf32>
    %203 = arith.maximumf %201, %202 : vector<32x32xf32>
    %204 = vector.extract_strided_slice %199 {offsets = [32, 0], sizes = [32, 32], strides = [1, 1]} : vector<128x32xf32> to vector<32x32xf32>
    %205 = arith.addf %125, %204 : vector<32x32xf32>
    %cst_66 = arith.constant 0.000000e+00 : f32
    %206 = vector.broadcast %cst_66 : f32 to vector<32x32xf32>
    %207 = arith.maximumf %205, %206 : vector<32x32xf32>
    %208 = vector.extract_strided_slice %199 {offsets = [64, 0], sizes = [32, 32], strides = [1, 1]} : vector<128x32xf32> to vector<32x32xf32>
    %209 = arith.addf %125, %208 : vector<32x32xf32>
    %cst_67 = arith.constant 0.000000e+00 : f32
    %210 = vector.broadcast %cst_67 : f32 to vector<32x32xf32>
    %211 = arith.maximumf %209, %210 : vector<32x32xf32>
    %212 = vector.extract_strided_slice %199 {offsets = [96, 0], sizes = [32, 32], strides = [1, 1]} : vector<128x32xf32> to vector<32x32xf32>
    %213 = arith.addf %125, %212 : vector<32x32xf32>
    %cst_68 = arith.constant 0.000000e+00 : f32
    %214 = vector.broadcast %cst_68 : f32 to vector<32x32xf32>
    %215 = arith.maximumf %213, %214 : vector<32x32xf32>
    %216 = tpu.concatenate %203, %207, %211, %215 in 0 : vector<32x32xf32>, vector<32x32xf32>, vector<32x32xf32>, vector<32x32xf32> -> vector<128x32xf32>
    %217 = arith.truncf %216 : vector<128x32xf32> to vector<128x32xbf16>
    %c0_69 = arith.constant 0 : index
    %c0_70 = arith.constant 0 : index
    %218 = vector.load %arg10[%c0_69, %c0_70] : memref<32x32xbf16, #tpu.memory_space<vmem>>, vector<32x32xbf16>
    %cst_71 = arith.constant dense<0.000000e+00> : vector<128x32xf32>
    %219 = tpu.matmul %217, %218, %cst_71 {dimension_numbers = #tpu.dot_dimension_numbers<[1], [0], [0], [1], [0, 0, 1, 1], [], []>} : vector<128x32xbf16>, vector<32x32xbf16>, vector<128x32xf32> -> vector<128x32xf32>
    %220 = vector.extract_strided_slice %219 {offsets = [0, 0], sizes = [32, 32], strides = [1, 1]} : vector<128x32xf32> to vector<32x32xf32>
    %221 = vector.extract_strided_slice %219 {offsets = [32, 0], sizes = [32, 32], strides = [1, 1]} : vector<128x32xf32> to vector<32x32xf32>
    %222 = arith.maximumf %220, %221 : vector<32x32xf32>
    %223 = vector.extract_strided_slice %219 {offsets = [64, 0], sizes = [32, 32], strides = [1, 1]} : vector<128x32xf32> to vector<32x32xf32>
    %224 = arith.maximumf %222, %223 : vector<32x32xf32>
    %225 = vector.extract_strided_slice %219 {offsets = [96, 0], sizes = [32, 32], strides = [1, 1]} : vector<128x32xf32> to vector<32x32xf32>
    %226 = arith.maximumf %224, %225 : vector<32x32xf32>
    %c0_72 = arith.constant 0 : index
    %c0_73 = arith.constant 0 : index
    %227 = vector.load %arg11[%c0_72, %c0_73] : memref<1x32xf32, #tpu.memory_space<vmem>>, vector<1x32xf32>
    %228 = vector.broadcast %227 : vector<1x32xf32> to vector<32x32xf32>
    %229 = arith.addf %226, %228 : vector<32x32xf32>
    %230 = arith.truncf %229 : vector<32x32xf32> to vector<32x32xbf16>
    %c0_74 = arith.constant 0 : index
    %c0_75 = arith.constant 0 : index
    %231 = vector.load %arg12[%c0_74, %c0_75] : memref<32x64xbf16, #tpu.memory_space<vmem>>, vector<32x64xbf16>
    %cst_76 = arith.constant dense<0.000000e+00> : vector<32x64xf32>
    %232 = tpu.matmul %230, %231, %cst_76 {dimension_numbers = #tpu.dot_dimension_numbers<[1], [0], [0], [1], [0, 0, 1, 1], [], []>} : vector<32x32xbf16>, vector<32x64xbf16>, vector<32x64xf32> -> vector<32x64xf32>
    %c0_77 = arith.constant 0 : index
    %c0_78 = arith.constant 0 : index
    %233 = vector.load %arg14[%c0_77, %c0_78] : memref<1x64xf32, #tpu.memory_space<vmem>>, vector<1x64xf32>
    %234 = vector.broadcast %233 : vector<1x64xf32> to vector<32x64xf32>
    %235 = arith.addf %232, %234 : vector<32x64xf32>
    %c0_79 = arith.constant 0 : index
    %c0_80 = arith.constant 0 : index
    %236 = vector.load %arg13[%c0_79, %c0_80] : memref<32x64xbf16, #tpu.memory_space<vmem>>, vector<32x64xbf16>
    %cst_81 = arith.constant dense<0.000000e+00> : vector<32x64xf32>
    %237 = tpu.matmul %230, %236, %cst_81 {dimension_numbers = #tpu.dot_dimension_numbers<[1], [0], [0], [1], [0, 0, 1, 1], [], []>} : vector<32x32xbf16>, vector<32x64xbf16>, vector<32x64xf32> -> vector<32x64xf32>
    "tpu.trace_start"() <{level = 10 : i32, message = "nf,mf->nm"}> : () -> ()
    %cst_82 = arith.constant dense<0.000000e+00> : vector<32x32xf32>
    %238 = tpu.matmul %229, %229, %cst_82 {dimension_numbers = #tpu.dot_dimension_numbers<[1], [1], [0], [0], [0, 0, 1, 0], [], []>} : vector<32x32xf32>, vector<32x32xf32>, vector<32x32xf32> -> vector<32x32xf32>
    "tpu.trace_stop"() : () -> ()
    %239 = arith.mulf %238, %4 : vector<32x32xf32>
    %cst_83 = arith.constant dense<0.000000e+00> : vector<32xf32>
    %240 = vector.multi_reduction <add>, %239, %cst_83 [0] : vector<32x32xf32> to vector<32xf32>
    %241 = vector.shape_cast %240 : vector<32xf32> to vector<1x32xf32>
    %cst_84 = arith.constant 2.000000e+00 : f32
    %242 = vector.broadcast %cst_84 : f32 to vector<32x32xf32>
    %243 = arith.mulf %242, %238 : vector<32x32xf32>
    %244 = vector.broadcast %241 : vector<1x32xf32> to vector<32x32xf32>
    %245 = arith.subf %244, %243 : vector<32x32xf32>
    %cst_85 = arith.constant dense<0x7F800000> : vector<32xf32>
    %246 = vector.multi_reduction <minimumf>, %245, %cst_85 [1] : vector<32x32xf32> to vector<32xf32>
    %247 = vector.shape_cast %246 : vector<32xf32> to vector<32x1xf32>
    %248 = vector.broadcast %247 : vector<32x1xf32> to vector<32x32xf32>
    %249 = arith.cmpf oeq, %245, %248 : vector<32x32xf32>
    %cst_86 = arith.constant 3.200000e+01 : f32
    %250 = vector.broadcast %cst_86 : f32 to vector<32x32xf32>
    %251 = arith.select %249, %5, %250 : vector<32x32xi1>, vector<32x32xf32>
    %cst_87 = arith.constant dense<0x7F800000> : vector<32xf32>
    %252 = vector.multi_reduction <minimumf>, %251, %cst_87 [1] : vector<32x32xf32> to vector<32xf32>
    %253 = vector.shape_cast %252 : vector<32xf32> to vector<32x1xf32>
    %254 = vector.broadcast %253 : vector<32x1xf32> to vector<32x32xf32>
    %255 = arith.cmpf oeq, %5, %254 : vector<32x32xf32>
    %256 = arith.extui %255 : vector<32x32xi1> to vector<32x32xi32>
    %257 = arith.sitofp %256 : vector<32x32xi32> to vector<32x32xf32>
    %cst_88 = arith.constant 5.000000e-01 : f32
    %258 = vector.broadcast %cst_88 : f32 to vector<32x32xf32>
    %259 = arith.cmpf ogt, %257, %258 : vector<32x32xf32>
    %cst_89 = arith.constant 1.000000e+30 : f32
    %260 = vector.broadcast %cst_89 : f32 to vector<32x32xf32>
    %261 = arith.select %259, %260, %245 : vector<32x32xi1>, vector<32x32xf32>
    %cst_90 = arith.constant dense<0x7F800000> : vector<32xf32>
    %262 = vector.multi_reduction <minimumf>, %261, %cst_90 [1] : vector<32x32xf32> to vector<32xf32>
    %263 = vector.shape_cast %262 : vector<32xf32> to vector<32x1xf32>
    %264 = vector.broadcast %263 : vector<32x1xf32> to vector<32x32xf32>
    %265 = arith.cmpf oeq, %261, %264 : vector<32x32xf32>
    %cst_91 = arith.constant 3.200000e+01 : f32
    %266 = vector.broadcast %cst_91 : f32 to vector<32x32xf32>
    %267 = arith.select %265, %5, %266 : vector<32x32xi1>, vector<32x32xf32>
    %cst_92 = arith.constant dense<0x7F800000> : vector<32xf32>
    %268 = vector.multi_reduction <minimumf>, %267, %cst_92 [1] : vector<32x32xf32> to vector<32xf32>
    %269 = vector.shape_cast %268 : vector<32xf32> to vector<32x1xf32>
    %270 = vector.broadcast %269 : vector<32x1xf32> to vector<32x32xf32>
    %271 = arith.cmpf oeq, %5, %270 : vector<32x32xf32>
    %272 = arith.extui %271 : vector<32x32xi1> to vector<32x32xi32>
    %273 = arith.sitofp %272 : vector<32x32xi32> to vector<32x32xf32>
    %cst_93 = arith.constant 5.000000e-01 : f32
    %274 = vector.broadcast %cst_93 : f32 to vector<32x32xf32>
    %275 = arith.cmpf ogt, %273, %274 : vector<32x32xf32>
    %cst_94 = arith.constant 1.000000e+30 : f32
    %276 = vector.broadcast %cst_94 : f32 to vector<32x32xf32>
    %277 = arith.select %275, %276, %261 : vector<32x32xi1>, vector<32x32xf32>
    %cst_95 = arith.constant dense<0x7F800000> : vector<32xf32>
    %278 = vector.multi_reduction <minimumf>, %277, %cst_95 [1] : vector<32x32xf32> to vector<32xf32>
    %279 = vector.shape_cast %278 : vector<32xf32> to vector<32x1xf32>
    %280 = vector.broadcast %279 : vector<32x1xf32> to vector<32x32xf32>
    %281 = arith.cmpf oeq, %277, %280 : vector<32x32xf32>
    %cst_96 = arith.constant 3.200000e+01 : f32
    %282 = vector.broadcast %cst_96 : f32 to vector<32x32xf32>
    %283 = arith.select %281, %5, %282 : vector<32x32xi1>, vector<32x32xf32>
    %cst_97 = arith.constant dense<0x7F800000> : vector<32xf32>
    %284 = vector.multi_reduction <minimumf>, %283, %cst_97 [1] : vector<32x32xf32> to vector<32xf32>
    %285 = vector.shape_cast %284 : vector<32xf32> to vector<32x1xf32>
    %286 = vector.broadcast %285 : vector<32x1xf32> to vector<32x32xf32>
    %287 = arith.cmpf oeq, %5, %286 : vector<32x32xf32>
    %288 = arith.extui %287 : vector<32x32xi1> to vector<32x32xi32>
    %289 = arith.sitofp %288 : vector<32x32xi32> to vector<32x32xf32>
    %cst_98 = arith.constant 5.000000e-01 : f32
    %290 = vector.broadcast %cst_98 : f32 to vector<32x32xf32>
    %291 = arith.cmpf ogt, %289, %290 : vector<32x32xf32>
    %cst_99 = arith.constant 1.000000e+30 : f32
    %292 = vector.broadcast %cst_99 : f32 to vector<32x32xf32>
    %293 = arith.select %291, %292, %277 : vector<32x32xi1>, vector<32x32xf32>
    %cst_100 = arith.constant dense<0x7F800000> : vector<32xf32>
    %294 = vector.multi_reduction <minimumf>, %293, %cst_100 [1] : vector<32x32xf32> to vector<32xf32>
    %295 = vector.shape_cast %294 : vector<32xf32> to vector<32x1xf32>
    %296 = vector.broadcast %295 : vector<32x1xf32> to vector<32x32xf32>
    %297 = arith.cmpf oeq, %293, %296 : vector<32x32xf32>
    %cst_101 = arith.constant 3.200000e+01 : f32
    %298 = vector.broadcast %cst_101 : f32 to vector<32x32xf32>
    %299 = arith.select %297, %5, %298 : vector<32x32xi1>, vector<32x32xf32>
    %cst_102 = arith.constant dense<0x7F800000> : vector<32xf32>
    %300 = vector.multi_reduction <minimumf>, %299, %cst_102 [1] : vector<32x32xf32> to vector<32xf32>
    %301 = vector.shape_cast %300 : vector<32xf32> to vector<32x1xf32>
    %302 = vector.broadcast %301 : vector<32x1xf32> to vector<32x32xf32>
    %303 = arith.cmpf oeq, %5, %302 : vector<32x32xf32>
    %304 = arith.extui %303 : vector<32x32xi1> to vector<32x32xi32>
    %305 = arith.sitofp %304 : vector<32x32xi32> to vector<32x32xf32>
    %306 = tpu.concatenate %257, %273, %289, %305 in 0 : vector<32x32xf32>, vector<32x32xf32>, vector<32x32xf32>, vector<32x32xf32> -> vector<128x32xf32>
    %307 = arith.truncf %306 : vector<128x32xf32> to vector<128x32xbf16>
    %308 = arith.truncf %237 : vector<32x64xf32> to vector<32x64xbf16>
    %cst_103 = arith.constant dense<0.000000e+00> : vector<128x64xf32>
    %309 = tpu.matmul %307, %308, %cst_103 {dimension_numbers = #tpu.dot_dimension_numbers<[1], [0], [0], [1], [0, 0, 1, 1], [], []>} : vector<128x32xbf16>, vector<32x64xbf16>, vector<128x64xf32> -> vector<128x64xf32>
    %310 = vector.extract_strided_slice %309 {offsets = [0, 0], sizes = [32, 64], strides = [1, 1]} : vector<128x64xf32> to vector<32x64xf32>
    %311 = arith.addf %235, %310 : vector<32x64xf32>
    %cst_104 = arith.constant 0.000000e+00 : f32
    %312 = vector.broadcast %cst_104 : f32 to vector<32x64xf32>
    %313 = arith.maximumf %311, %312 : vector<32x64xf32>
    %314 = vector.extract_strided_slice %309 {offsets = [32, 0], sizes = [32, 64], strides = [1, 1]} : vector<128x64xf32> to vector<32x64xf32>
    %315 = arith.addf %235, %314 : vector<32x64xf32>
    %cst_105 = arith.constant 0.000000e+00 : f32
    %316 = vector.broadcast %cst_105 : f32 to vector<32x64xf32>
    %317 = arith.maximumf %315, %316 : vector<32x64xf32>
    %318 = vector.extract_strided_slice %309 {offsets = [64, 0], sizes = [32, 64], strides = [1, 1]} : vector<128x64xf32> to vector<32x64xf32>
    %319 = arith.addf %235, %318 : vector<32x64xf32>
    %cst_106 = arith.constant 0.000000e+00 : f32
    %320 = vector.broadcast %cst_106 : f32 to vector<32x64xf32>
    %321 = arith.maximumf %319, %320 : vector<32x64xf32>
    %322 = vector.extract_strided_slice %309 {offsets = [96, 0], sizes = [32, 64], strides = [1, 1]} : vector<128x64xf32> to vector<32x64xf32>
    %323 = arith.addf %235, %322 : vector<32x64xf32>
    %cst_107 = arith.constant 0.000000e+00 : f32
    %324 = vector.broadcast %cst_107 : f32 to vector<32x64xf32>
    %325 = arith.maximumf %323, %324 : vector<32x64xf32>
    %326 = tpu.concatenate %313, %317, %321, %325 in 0 : vector<32x64xf32>, vector<32x64xf32>, vector<32x64xf32>, vector<32x64xf32> -> vector<128x64xf32>
    %327 = arith.truncf %326 : vector<128x64xf32> to vector<128x64xbf16>
    %c0_108 = arith.constant 0 : index
    %c0_109 = arith.constant 0 : index
    %328 = vector.load %arg15[%c0_108, %c0_109] : memref<64x64xbf16, #tpu.memory_space<vmem>>, vector<64x64xbf16>
    %cst_110 = arith.constant dense<0.000000e+00> : vector<128x64xf32>
    %329 = tpu.matmul %327, %328, %cst_110 {dimension_numbers = #tpu.dot_dimension_numbers<[1], [0], [0], [1], [0, 0, 1, 1], [], []>} : vector<128x64xbf16>, vector<64x64xbf16>, vector<128x64xf32> -> vector<128x64xf32>
    %330 = vector.extract_strided_slice %329 {offsets = [0, 0], sizes = [32, 64], strides = [1, 1]} : vector<128x64xf32> to vector<32x64xf32>
    %331 = vector.extract_strided_slice %329 {offsets = [32, 0], sizes = [32, 64], strides = [1, 1]} : vector<128x64xf32> to vector<32x64xf32>
    %332 = arith.maximumf %330, %331 : vector<32x64xf32>
    %333 = vector.extract_strided_slice %329 {offsets = [64, 0], sizes = [32, 64], strides = [1, 1]} : vector<128x64xf32> to vector<32x64xf32>
    %334 = arith.maximumf %332, %333 : vector<32x64xf32>
    %335 = vector.extract_strided_slice %329 {offsets = [96, 0], sizes = [32, 64], strides = [1, 1]} : vector<128x64xf32> to vector<32x64xf32>
    %336 = arith.maximumf %334, %335 : vector<32x64xf32>
    %c0_111 = arith.constant 0 : index
    %c0_112 = arith.constant 0 : index
    %337 = vector.load %arg16[%c0_111, %c0_112] : memref<1x64xf32, #tpu.memory_space<vmem>>, vector<1x64xf32>
    %338 = vector.broadcast %337 : vector<1x64xf32> to vector<32x64xf32>
    %339 = arith.addf %336, %338 : vector<32x64xf32>
    %340 = arith.truncf %119 : vector<32x32xf32> to vector<32x32xbf16>
    %c0_113 = arith.constant 0 : index
    %c0_114 = arith.constant 0 : index
    %341 = vector.load %arg17[%c0_113, %c0_114] : memref<32x256xbf16, #tpu.memory_space<vmem>>, vector<32x256xbf16>
    %cst_115 = arith.constant dense<0.000000e+00> : vector<32x256xf32>
    %342 = tpu.matmul %340, %341, %cst_115 {dimension_numbers = #tpu.dot_dimension_numbers<[1], [0], [0], [1], [0, 0, 1, 1], [], []>} : vector<32x32xbf16>, vector<32x256xbf16>, vector<32x256xf32> -> vector<32x256xf32>
    %343 = arith.truncf %229 : vector<32x32xf32> to vector<32x32xbf16>
    %c0_116 = arith.constant 0 : index
    %c0_117 = arith.constant 0 : index
    %344 = vector.load %arg18[%c0_116, %c0_117] : memref<32x256xbf16, #tpu.memory_space<vmem>>, vector<32x256xbf16>
    %cst_118 = arith.constant dense<0.000000e+00> : vector<32x256xf32>
    %345 = tpu.matmul %343, %344, %cst_118 {dimension_numbers = #tpu.dot_dimension_numbers<[1], [0], [0], [1], [0, 0, 1, 1], [], []>} : vector<32x32xbf16>, vector<32x256xbf16>, vector<32x256xf32> -> vector<32x256xf32>
    %346 = arith.addf %342, %345 : vector<32x256xf32>
    %347 = arith.truncf %339 : vector<32x64xf32> to vector<32x64xbf16>
    %c0_119 = arith.constant 0 : index
    %c0_120 = arith.constant 0 : index
    %348 = vector.load %arg19[%c0_119, %c0_120] : memref<64x256xbf16, #tpu.memory_space<vmem>>, vector<64x256xbf16>
    %cst_121 = arith.constant dense<0.000000e+00> : vector<32x256xf32>
    %349 = tpu.matmul %347, %348, %cst_121 {dimension_numbers = #tpu.dot_dimension_numbers<[1], [0], [0], [1], [0, 0, 1, 1], [], []>} : vector<32x64xbf16>, vector<64x256xbf16>, vector<32x256xf32> -> vector<32x256xf32>
    %350 = arith.addf %346, %349 : vector<32x256xf32>
    %c0_122 = arith.constant 0 : index
    %c0_123 = arith.constant 0 : index
    %351 = vector.load %arg20[%c0_122, %c0_123] : memref<1x256xf32, #tpu.memory_space<vmem>>, vector<1x256xf32>
    %352 = vector.broadcast %351 : vector<1x256xf32> to vector<32x256xf32>
    %353 = arith.addf %350, %352 : vector<32x256xf32>
    %cst_124 = arith.constant 0.000000e+00 : f32
    %354 = vector.broadcast %cst_124 : f32 to vector<32x256xf32>
    %355 = arith.maximumf %353, %354 : vector<32x256xf32>
    %356 = arith.truncf %355 : vector<32x256xf32> to vector<32x256xbf16>
    %c0_125 = arith.constant 0 : index
    %c0_126 = arith.constant 0 : index
    %357 = vector.load %arg21[%c0_125, %c0_126] : memref<256x256xbf16, #tpu.memory_space<vmem>>, vector<256x256xbf16>
    %cst_127 = arith.constant dense<0.000000e+00> : vector<32x256xf32>
    %358 = tpu.matmul %356, %357, %cst_127 {dimension_numbers = #tpu.dot_dimension_numbers<[1], [0], [0], [1], [0, 0, 1, 1], [], []>} : vector<32x256xbf16>, vector<256x256xbf16>, vector<32x256xf32> -> vector<32x256xf32>
    %c0_128 = arith.constant 0 : index
    %c0_129 = arith.constant 0 : index
    %359 = vector.load %arg22[%c0_128, %c0_129] : memref<1x256xf32, #tpu.memory_space<vmem>>, vector<1x256xf32>
    %360 = vector.broadcast %359 : vector<1x256xf32> to vector<32x256xf32>
    %361 = arith.addf %358, %360 : vector<32x256xf32>
    %cst_130 = arith.constant 0.000000e+00 : f32
    %362 = vector.broadcast %cst_130 : f32 to vector<32x256xf32>
    %363 = arith.maximumf %361, %362 : vector<32x256xf32>
    %364 = arith.truncf %363 : vector<32x256xf32> to vector<32x256xbf16>
    %c0_131 = arith.constant 0 : index
    %c0_132 = arith.constant 0 : index
    %365 = vector.load %arg23[%c0_131, %c0_132] : memref<256x256xbf16, #tpu.memory_space<vmem>>, vector<256x256xbf16>
    %cst_133 = arith.constant dense<0.000000e+00> : vector<32x256xf32>
    %366 = tpu.matmul %364, %365, %cst_133 {dimension_numbers = #tpu.dot_dimension_numbers<[1], [0], [0], [1], [0, 0, 1, 1], [], []>} : vector<32x256xbf16>, vector<256x256xbf16>, vector<32x256xf32> -> vector<32x256xf32>
    %c0_134 = arith.constant 0 : index
    %c0_135 = arith.constant 0 : index
    %367 = vector.load %arg24[%c0_134, %c0_135] : memref<1x256xf32, #tpu.memory_space<vmem>>, vector<1x256xf32>
    %368 = vector.broadcast %367 : vector<1x256xf32> to vector<32x256xf32>
    %369 = arith.addf %366, %368 : vector<32x256xf32>
    %cst_136 = arith.constant 0.000000e+00 : f32
    %370 = vector.broadcast %cst_136 : f32 to vector<32x256xf32>
    %371 = arith.maximumf %369, %370 : vector<32x256xf32>
    %372 = arith.truncf %371 : vector<32x256xf32> to vector<32x256xbf16>
    %c0_137 = arith.constant 0 : index
    %c0_138 = arith.constant 0 : index
    %373 = vector.load %arg25[%c0_137, %c0_138] : memref<256x2xbf16, #tpu.memory_space<vmem>>, vector<256x2xbf16>
    %cst_139 = arith.constant dense<0.000000e+00> : vector<32x2xf32>
    %374 = tpu.matmul %372, %373, %cst_139 {dimension_numbers = #tpu.dot_dimension_numbers<[1], [0], [0], [1], [0, 0, 1, 1], [], []>} : vector<32x256xbf16>, vector<256x2xbf16>, vector<32x2xf32> -> vector<32x2xf32>
    %c0_140 = arith.constant 0 : index
    %c0_141 = arith.constant 0 : index
    %375 = vector.load %arg26[%c0_140, %c0_141] : memref<1x2xf32, #tpu.memory_space<vmem>>, vector<1x2xf32>
    %376 = vector.broadcast %375 : vector<1x2xf32> to vector<32x2xf32>
    %377 = arith.addf %374, %376 : vector<32x2xf32>
    %cst_142 = arith.constant dense<0xFF800000> : vector<32xf32>
    %378 = vector.multi_reduction <maximumf>, %377, %cst_142 [1] : vector<32x2xf32> to vector<32xf32>
    %379 = vector.shape_cast %378 : vector<32xf32> to vector<32x1xf32>
    %380 = vector.broadcast %379 : vector<32x1xf32> to vector<32x2xf32>
    %381 = arith.subf %377, %380 : vector<32x2xf32>
    %382 = math.exp %381 : vector<32x2xf32>
    %cst_143 = arith.constant dense<0.000000e+00> : vector<32xf32>
    %383 = vector.multi_reduction <add>, %382, %cst_143 [1] : vector<32x2xf32> to vector<32xf32>
    %384 = vector.shape_cast %383 : vector<32xf32> to vector<32x1xf32>
    %385 = math.log %384 : vector<32x1xf32>
    %386 = vector.broadcast %385 : vector<32x1xf32> to vector<32x2xf32>
    %387 = arith.subf %381, %386 : vector<32x2xf32>
    %c0_144 = arith.constant 0 : index
    %c0_145 = arith.constant 0 : index
    %388 = vector.load %arg27[%c0_144, %c0_145] : memref<32x2xf32, #tpu.memory_space<vmem>>, vector<32x2xf32>
    tpu.vector_store %arg27[%c0_144, %c0_145], %387 {strides = array<i32>} : memref<32x2xf32, #tpu.memory_space<vmem>>, vector<32x2xf32>,
    return
  }
  func.func @transform_0(%arg0: i32) -> (i32, i32) {
    %c0_i32 = arith.constant 0 : i32
    %c0_i32_0 = arith.constant 0 : i32
    return %arg0, %c0_i32 : i32, i32
  }
  func.func @transform_1(%arg0: i32) -> (i32, i32) {
    %c0_i32 = arith.constant 0 : i32
    %c0_i32_0 = arith.constant 0 : i32
    %c0_i32_1 = arith.constant 0 : i32
    return %c0_i32, %c0_i32_0 : i32, i32
  }
  func.func @transform_2(%arg0: i32) -> (i32, i32) {
    %c0_i32 = arith.constant 0 : i32
    %c0_i32_0 = arith.constant 0 : i32
    %c0_i32_1 = arith.constant 0 : i32
    return %c0_i32, %c0_i32_0 : i32, i32
  }
  func.func @transform_3(%arg0: i32) -> (i32, i32) {
    %c0_i32 = arith.constant 0 : i32
    %c0_i32_0 = arith.constant 0 : i32
    %c0_i32_1 = arith.constant 0 : i32
    return %c0_i32, %c0_i32_0 : i32, i32
  }
  func.func @transform_4(%arg0: i32) -> (i32, i32) {
    %c0_i32 = arith.constant 0 : i32
    %c0_i32_0 = arith.constant 0 : i32
    %c0_i32_1 = arith.constant 0 : i32
    return %c0_i32, %c0_i32_0 : i32, i32
  }
  func.func @transform_5(%arg0: i32) -> (i32, i32) {
    %c0_i32 = arith.constant 0 : i32
    %c0_i32_0 = arith.constant 0 : i32
    %c0_i32_1 = arith.constant 0 : i32
    return %c0_i32, %c0_i32_0 : i32, i32
  }
  func.func @transform_6(%arg0: i32) -> (i32, i32) {
    %c0_i32 = arith.constant 0 : i32
    %c0_i32_0 = arith.constant 0 : i32
    %c0_i32_1 = arith.constant 0 : i32
    return %c0_i32, %c0_i32_0 : i32, i32
  }
  func.func @transform_7(%arg0: i32) -> (i32, i32) {
    %c0_i32 = arith.constant 0 : i32
    %c0_i32_0 = arith.constant 0 : i32
    %c0_i32_1 = arith.constant 0 : i32
    return %c0_i32, %c0_i32_0 : i32, i32
  }
  func.func @transform_8(%arg0: i32) -> (i32, i32) {
    %c0_i32 = arith.constant 0 : i32
    %c0_i32_0 = arith.constant 0 : i32
    %c0_i32_1 = arith.constant 0 : i32
    return %c0_i32, %c0_i32_0 : i32, i32
  }
  func.func @transform_9(%arg0: i32) -> (i32, i32) {
    %c0_i32 = arith.constant 0 : i32
    %c0_i32_0 = arith.constant 0 : i32
    %c0_i32_1 = arith.constant 0 : i32
    return %c0_i32, %c0_i32_0 : i32, i32
  }
  func.func @transform_10(%arg0: i32) -> (i32, i32) {
    %c0_i32 = arith.constant 0 : i32
    %c0_i32_0 = arith.constant 0 : i32
    %c0_i32_1 = arith.constant 0 : i32
    return %c0_i32, %c0_i32_0 : i32, i32
  }
  func.func @transform_11(%arg0: i32) -> (i32, i32) {
    %c0_i32 = arith.constant 0 : i32
    %c0_i32_0 = arith.constant 0 : i32
    %c0_i32_1 = arith.constant 0 : i32
    return %c0_i32, %c0_i32_0 : i32, i32
  }
  func.func @transform_12(%arg0: i32) -> (i32, i32) {
    %c0_i32 = arith.constant 0 : i32
    %c0_i32_0 = arith.constant 0 : i32
    %c0_i32_1 = arith.constant 0 : i32
    return %c0_i32, %c0_i32_0 : i32, i32
  }
  func.func @transform_13(%arg0: i32) -> (i32, i32) {
    %c0_i32 = arith.constant 0 : i32
    %c0_i32_0 = arith.constant 0 : i32
    %c0_i32_1 = arith.constant 0 : i32
    return %c0_i32, %c0_i32_0 : i32, i32
  }
  func.func @transform_14(%arg0: i32) -> (i32, i32) {
    %c0_i32 = arith.constant 0 : i32
    %c0_i32_0 = arith.constant 0 : i32
    %c0_i32_1 = arith.constant 0 : i32
    return %c0_i32, %c0_i32_0 : i32, i32
  }
  func.func @transform_15(%arg0: i32) -> (i32, i32) {
    %c0_i32 = arith.constant 0 : i32
    %c0_i32_0 = arith.constant 0 : i32
    %c0_i32_1 = arith.constant 0 : i32
    return %c0_i32, %c0_i32_0 : i32, i32
  }
  func.func @transform_16(%arg0: i32) -> (i32, i32) {
    %c0_i32 = arith.constant 0 : i32
    %c0_i32_0 = arith.constant 0 : i32
    %c0_i32_1 = arith.constant 0 : i32
    return %c0_i32, %c0_i32_0 : i32, i32
  }
  func.func @transform_17(%arg0: i32) -> (i32, i32) {
    %c0_i32 = arith.constant 0 : i32
    %c0_i32_0 = arith.constant 0 : i32
    %c0_i32_1 = arith.constant 0 : i32
    return %c0_i32, %c0_i32_0 : i32, i32
  }
  func.func @transform_18(%arg0: i32) -> (i32, i32) {
    %c0_i32 = arith.constant 0 : i32
    %c0_i32_0 = arith.constant 0 : i32
    %c0_i32_1 = arith.constant 0 : i32
    return %c0_i32, %c0_i32_0 : i32, i32
  }
  func.func @transform_19(%arg0: i32) -> (i32, i32) {
    %c0_i32 = arith.constant 0 : i32
    %c0_i32_0 = arith.constant 0 : i32
    %c0_i32_1 = arith.constant 0 : i32
    return %c0_i32, %c0_i32_0 : i32, i32
  }
  func.func @transform_20(%arg0: i32) -> (i32, i32) {
    %c0_i32 = arith.constant 0 : i32
    %c0_i32_0 = arith.constant 0 : i32
    %c0_i32_1 = arith.constant 0 : i32
    return %c0_i32, %c0_i32_0 : i32, i32
  }
  func.func @transform_21(%arg0: i32) -> (i32, i32) {
    %c0_i32 = arith.constant 0 : i32
    %c0_i32_0 = arith.constant 0 : i32
    %c0_i32_1 = arith.constant 0 : i32
    return %c0_i32, %c0_i32_0 : i32, i32
  }
  func.func @transform_22(%arg0: i32) -> (i32, i32) {
    %c0_i32 = arith.constant 0 : i32
    %c0_i32_0 = arith.constant 0 : i32
    %c0_i32_1 = arith.constant 0 : i32
    return %c0_i32, %c0_i32_0 : i32, i32
  }
  func.func @transform_23(%arg0: i32) -> (i32, i32) {
    %c0_i32 = arith.constant 0 : i32
    %c0_i32_0 = arith.constant 0 : i32
    %c0_i32_1 = arith.constant 0 : i32
    return %c0_i32, %c0_i32_0 : i32, i32
  }
  func.func @transform_24(%arg0: i32) -> (i32, i32) {
    %c0_i32 = arith.constant 0 : i32
    %c0_i32_0 = arith.constant 0 : i32
    %c0_i32_1 = arith.constant 0 : i32
    return %c0_i32, %c0_i32_0 : i32, i32
  }
  func.func @transform_25(%arg0: i32) -> (i32, i32) {
    %c0_i32 = arith.constant 0 : i32
    %c0_i32_0 = arith.constant 0 : i32
    %c0_i32_1 = arith.constant 0 : i32
    return %c0_i32, %c0_i32_0 : i32, i32
  }
  func.func @transform_26(%arg0: i32) -> (i32, i32) {
    %c0_i32 = arith.constant 0 : i32
    %c0_i32_0 = arith.constant 0 : i32
    return %arg0, %c0_i32 : i32, i32
  }
}

</mosaic_0001>

<bundles_post_ra>
// kernel: _forward.1
= control target key start
LH: loop header
LB: loop body
LE: loop exit
PB: predicated region body
PF: predicated region fallthrough
CT: control target
= control target key end

     0   :  { %s6871_s0 = inlined_call_operand.vmem [shape: f32[64,1], index: 0, kind: input, shape index: {}]   ;;  %s6872_s1 = inlined_call_operand.hbm [shape: f32[1,32], index: 1, kind: input, shape index: {}]   ;;  %s6873_s2 = inlined_call_operand.hbm [shape: f32[1,32], index: 2, kind: input, shape index: {}]   ;;  %s6874_s3 = inlined_call_operand.hbm [shape: f32[1,32], index: 3, kind: input, shape index: {}]   ;;  %s6875_s4 = inlined_call_operand.vmem [shape: bf16[32,32], index: 4, kind: input, shape index: {}]   ;;  %s6876_s5 = inlined_call_operand.hbm [shape: f32[1,32], index: 5, kind: input, shape index: {}]   ;;  %s6877_s6 = inlined_call_operand.vmem [shape: bf16[32,32], index: 6, kind: input, shape index: {}]   ;;  %s6878_s7 = inlined_call_operand.hbm [shape: bf16[32,32], index: 7, kind: input, shape index: {}]   ;;  %s6879_s8 = inlined_call_operand.hbm [shape: f32[1,32], index: 8, kind: input, shape index: {}]   ;;  %s6880_s9 = inlined_call_operand.vmem [shape: bf16[32,32], index: 9, kind: input, shape index: {}]   ;;  %s6881_s10 = inlined_call_operand.hbm [shape: f32[1,32], index: 10, kind: input, shape index: {}]   ;;  %s6882_s11 = inlined_call_operand.hbm [shape: bf16[32,64], index: 11, kind: input, shape index: {}]   ;;  %s6883_s12 = inlined_call_operand.hbm [shape: bf16[32,64], index: 12, kind: input, shape index: {}]   ;;  %s6884_s13 = inlined_call_operand.hbm [shape: f32[1,64], index: 13, kind: input, shape index: {}]   ;;  %s6885_s14 = inlined_call_operand.vmem [shape: bf16[64,64], index: 14, kind: input, shape index: {}]   ;;  %s6886_s15 = inlined_call_operand.hbm [shape: f32[1,64], index: 15, kind: input, shape index: {}]   ;;  %s6887_s16 = inlined_call_operand.vmem [shape: bf16[32,256], index: 16, kind: input, shape index: {}]   ;;  %s6888_s17 = inlined_call_operand.vmem [shape: bf16[32,256], index: 17, kind: input, shape index: {}]   ;;  %s6889_s18 = inlined_call_operand.vmem [shape: bf16[64,256], index: 18, kind: input, shape index: {}]   ;;  %s6890_s19 = inlined_call_operand.vmem [shape: f32[1,256], index: 19, kind: input, shape index: {}]   ;;  %s6891_s20 = inlined_call_operand.hbm [shape: bf16[256,256], index: 20, kind: input, shape index: {}]   ;;  %s6892_s21 = inlined_call_operand.vmem [shape: f32[1,256], index: 21, kind: input, shape index: {}]   ;;  %s6893_s22 = inlined_call_operand.hbm [shape: bf16[256,256], index: 22, kind: input, shape index: {}]   ;;  %s6894_s23 = inlined_call_operand.vmem [shape: f32[1,256], index: 23, kind: input, shape index: {}]   ;;  %s6895_s24 = inlined_call_operand.vmem [shape: bf16[256,2], index: 24, kind: input, shape index: {}]   ;;  %s6896_s25 = inlined_call_operand.vmem [shape: f32[1,2], index: 25, kind: input, shape index: {}]   ;;  %s6897_s26 = inlined_call_operand.vmem [shape: f32[64,2], index: 26, kind: output, shape index: {}]  }
   0x1   :  { %6911 = sst [smem:[#allocation29_spill]] %s6871_s0 }
   0x2   :  { %6912 = sst [smem:[#allocation30_spill]] %s6872_s1 }
   0x3   :  { %6913 = sst [smem:[#allocation31_spill]] %s6873_s2 }
   0x4   :  { %6914 = sst [smem:[#allocation32_spill]] %s6874_s3 }
   0x5   :  { %6915 = sst [smem:[#allocation33_spill]] %s6875_s4 }
   0x6   :  { %6916 = sst [smem:[#allocation34_spill]] %s6876_s5 }
   0x7   :  { %6917 = sst [smem:[#allocation35_spill]] %s6877_s6 }
   0x8   :  { %6918 = sst [smem:[#allocation36_spill]] %s6878_s7 }
   0x9   :  { %6919 = sst [smem:[#allocation37_spill]] %s6879_s8 }
   0xa   :  { %6920 = sst [smem:[#allocation38_spill]] %s6880_s9 }
   0xb   :  { %6921 = sst [smem:[#allocation39_spill]] %s6881_s10 }
   0xc   :  { %6922 = sst [smem:[#allocation40_spill]] %s6882_s11 }
   0xd   :  { %6923 = sst [smem:[#allocation41_spill]] %s6884_s13 }
   0xe   :  { %6924 = sst [smem:[#allocation42_spill]] %s6897_s26 }
   0xf   :  { %31 = vsyncpa [#allocation3], 0 }
  0x10   :  { %32 = vsyncpa [#allocation5], 0 }
  0x11   :  { %33 = vsyncpa [#allocation8], 0 }
  0x12   :  { %34 = vsyncpa [#allocation11], 0 }
  0x13   :  { %35 = vsyncpa [#allocation14], 0 }
  0x14   :  { %36 = vsyncpa [#allocation17], 0 }
  0x15   :  { %37 = vsyncpa [#allocation20], 0  ;;  %s5917_s27 = smov 0  }
  0x16 LB: > { %s5763_s3 = smov [#allocation4]   ;;  %s6901_s28 = sadd.s32 4294967295, %s5761_s27   ;;  %s5761_s27 = sphi %s5917_s27, %s43_s27  }
  0x17   : > { %s649_s7 = sshll.u32 %s5763_s3, 4  ;;  %p4478_p0 = scmp.ge.s32.totalorder %s5761_s27, 1  ;;  %s650_s7 = int_to_ptr.vmem [resolvable:$true] %s649_s7 }
  0x18   : > { %p625_p1 = scmp.lt.s32.totalorder %s5761_s27, 3  ;;  %p5927_p2 = scmp.eq.s32.totalorder %s6901_s28, 0 }
  0x19   : > { %s5764_s29 = smov [#allocation7]   ;;  %s5765_s9 = smov [#allocation10]  }
  0x1a   : > { %s6925_s8 = scalar_select %p5927_p2, 1, 0 }
  0x1b   : > { %p5931_p3 = pnand %p4478_p0, %p625_p1  ;;  %s674_s0 = sshll.u32 %s5764_s29, 4  ;;  %s5937_s0 = int_to_ptr.vmem [resolvable:$true] %s674_s0 }
  0x1c   : > { %s701_s30 = sshll.u32 %s5765_s9, 4  ;;  %s5766_s5 = smov [#allocation13]   ;;  %s5945_s30 = int_to_ptr.vmem [resolvable:$true] %s701_s30 }
  0x1d   : > { %s6926_s4 = scalar_select %p5931_p3, 1, 0 }
  0x1e   : > { %p5126_p4 = pneg %p5931_p3  ;;  %s5947_s10 = sshll.u32 %s5766_s5, 4  ;;  %s726_s10 = int_to_ptr.vmem [resolvable:$true] %s5947_s10 }
  0x1f   : > { %s5400_s1 = scalar_lea.vmem %s650_s7, 16  ;;  %s5407_s3 = scalar_lea.vmem %s650_s7, 32 }
  0x20   : > { %p5941_p5 = pnand %p5927_p2, %p5126_p4  ;;  %p5401_p7 = scmp.ne.s32.totalorder %s650_s7, %s5400_s1 }
  0x21   : > { %p5408_p10 = scmp.lt.s32.totalorder %s650_s7, %s650_s7  ;;  %p5409_p11 = scmp.lt.s32.totalorder %s5407_s3, %s5400_s1 }
  0x22   : > { %p5951_p6 = pneg %p5941_p5 }
  0x23   : > { %p5410_p12 = por %p5409_p11, %p5408_p10 }
  0x24   : > { %p5403_p8 = pnand %p5401_p7, %p5951_p6 }
  0x26   : > { %p5404_p9 = pneg %p5403_p8 }
  0x28   : > { %p5411_p13 = pnand %p5410_p12, %p5404_p9 }
  0x2a   : > { %5414 = shalt.err (!%p5411_p13)
}
  0x2b   : > { %s6929_s5 = sld [smem:[#allocation31_spill]]  ;;  %s5426_s28 = scalar_lea.vmem %s5937_s0, 16 }
  0x2c   : > { %p5427_p0 = scmp.ne.s32.totalorder %s5937_s0, %s5426_s28  ;;  %s5433_s1 = scalar_lea.vmem %s5937_s0, 32 }
  0x2d   : > { %p5434_p7 = scmp.lt.s32.totalorder %s5937_s0, %s5937_s0  ;;  %p5435_p8 = scmp.lt.s32.totalorder %s5433_s1, %s5426_s28 }
  0x2e   : > { %p5429_p1 = pnand %p5427_p0, %p5951_p6 }
  0x2f   : > { %p5436_p9 = por %p5435_p8, %p5434_p7 }
  0x30   : > { %p5430_p4 = pneg %p5429_p1 }
  0x31   : > { %5132 = dma.hbm_to_vmem [thread:$0]  (!%p5941_p5), %s6929_s5, 16, %s650_s7, [#allocation5]  }
  0x32   : > { %p5437_p10 = pnand %p5436_p9, %p5430_p4 }
  0x34   : > { %5440 = shalt.err (!%p5437_p10)
}
  0x35   : > { %s6930_s9 = sld [smem:[#allocation34_spill]]  ;;  %s5452_s7 = scalar_lea.vmem %s5945_s30, 16 }
  0x36   : > { %p5453_p11 = scmp.ne.s32.totalorder %s5945_s30, %s5452_s7  ;;  %s5459_s28 = scalar_lea.vmem %s5945_s30, 32 }
  0x37   : > { %p5460_p0 = scmp.lt.s32.totalorder %s5945_s30, %s5945_s30  ;;  %p5461_p1 = scmp.lt.s32.totalorder %s5459_s28, %s5452_s7 }
  0x38   : > { %p5455_p12 = pnand %p5453_p11, %p5951_p6 }
  0x39   : > { %p5462_p4 = por %p5461_p1, %p5460_p0 }
  0x3a   : > { %p5456_p13 = pneg %p5455_p12 }
  0x3b   : > { %5138 = dma.hbm_to_vmem [thread:$0]  (!%p5941_p5), %s6930_s9, 16, %s5937_s0, [#allocation8]  }
  0x3c   : > { %p5463_p7 = pnand %p5462_p4, %p5456_p13 }
  0x3e   : > { %5466 = shalt.err (!%p5463_p7)
}
  0x3f   : > { %s6931_s3 = sld [smem:[#allocation37_spill]]  ;;  %s5478_s0 = scalar_lea.vmem %s726_s10, 256 }
  0x40   : > { %p5479_p8 = scmp.ne.s32.totalorder %s726_s10, %s5478_s0  ;;  %p5486_p11 = scmp.lt.s32.totalorder %s726_s10, %s726_s10 }
  0x41   : > { %p5487_p12 = scmp.lt.s32.totalorder %s5478_s0, %s5478_s0 }
  0x42   : > { %p5481_p9 = pnand %p5479_p8, %p5951_p6 }
  0x43   : > { %p5488_p0 = por %p5487_p12, %p5486_p11 }
  0x44   : > { %p5482_p10 = pneg %p5481_p9 }
  0x45   : > { %5144 = dma.hbm_to_vmem [thread:$0]  (!%p5941_p5), %s6931_s3, 16, %s5945_s30, [#allocation11]  }
  0x46   : > { %p5489_p13 = pnand %p5488_p0, %p5482_p10 }
  0x48   : > { %5492 = shalt.err (!%p5489_p13)
}
  0x49   : > { %s6905_s29 = smov 64   ;;  %s6907_s9 = smov 4  }
  0x4a   : > { %s6932_s11 = sld [smem:[#allocation40_spill]]  ;;  %s5769_s28 = smov [#allocation16]  }
  0x4b   : > { %s752_s5 = sshll.u32 %s5769_s28, 4  ;;  %s5770_s1 = smov [#allocation19]   ;;  %s753_s5 = int_to_ptr.vmem [resolvable:$true] %s752_s5 }
  0x4c   : > { %s788_s3 = sshll.u32 %s5770_s1, 4  ;;  %s5504_s0 = scalar_lea.vmem %s753_s5, 16  ;;  %s789_s3 = int_to_ptr.vmem [resolvable:$true] %s788_s3 }
  0x4d   : > { %p5505_p1 = scmp.ne.s32.totalorder %s753_s5, %s5504_s0  ;;  %s5511_s26 = scalar_lea.vmem %s753_s5, 32 }
  0x4e   : > { %p5512_p8 = scmp.lt.s32.totalorder %s753_s5, %s753_s5  ;;  %p5513_p9 = scmp.lt.s32.totalorder %s5511_s26, %s5504_s0 }
  0x4f   : > { %p5507_p4 = pnand %p5505_p1, %p5951_p6 }
  0x50   : > { %5150 = dma.hbm_to_vmem [thread:$0]  (!%p5941_p5), %s6932_s11, 256, %s726_s10, [#allocation14], %s6905_s29, %s6905_s29, %s6907_s9  }
  0x51   : > { %p5508_p7 = pneg %p5507_p4  ;;  %p5514_p10 = por %p5513_p9, %p5512_p8 }
  0x53   : > { %p5515_p11 = pnand %p5514_p10, %p5508_p7 }
  0x55   : > { %5518 = shalt.err (!%p5515_p11)
}
  0x56   : > { %s6933_s13 = sld [smem:[#allocation41_spill]]  ;;  %s5530_s7 = scalar_lea.vmem %s789_s3, 4096 }
  0x57   : > { %p5531_p12 = scmp.ne.s32.totalorder %s789_s3, %s5530_s7  ;;  %p5538_p1 = scmp.lt.s32.totalorder %s789_s3, %s789_s3 }
  0x58   : > { %p5539_p4 = scmp.lt.s32.totalorder %s5530_s7, %s5530_s7 }
  0x59   : > { %p5533_p0 = pnand %p5531_p12, %p5951_p6 }
  0x5a   : > { %p5540_p2 = por %p5539_p4, %p5538_p1 }
  0x5b   : > { %p5534_p13 = pneg %p5533_p0 }
  0x5c   : > { %5156 = dma.hbm_to_vmem [thread:$0]  (!%p5941_p5), %s6933_s13, 16, %s753_s5, [#allocation17]  }
  0x5d   : > { %p5541_p3 = pnand %p5540_p2, %p5534_p13 }
  0x5f   : > { %5544 = shalt.err (!%p5541_p3)
}
  0x60   : > { %s6909_s26 = smov 128   ;;  %s6910_s28 = smov 8  }
  0x61   : > { %5162 = dma.hbm_to_vmem [thread:$0]  (!%p5941_p5), %s6891_s20, 4096, %s789_s3, [#allocation20], %s6909_s26, %s6909_s26, %s6910_s28  }
  0x62   : > { %s5773_s0 = smov [#allocation2]   ;;  %s5774_s10 = smov [#allocation6]  }
  0x63   : > { %s638_s30 = sshll.u32 %s5773_s0, 4  ;;  %s660_s7 = sshll.u32 %s5774_s10, 4  ;;  %s639_s30 = int_to_ptr.vmem [resolvable:$true] %s638_s30  ;;  %s661_s7 = int_to_ptr.vmem [resolvable:$true] %s660_s7 }
  0x64   : > { %s5556_s29 = scalar_lea.vmem %s639_s30, 16  ;;  %s5563_s9 = scalar_lea.vmem %s639_s30, 32 }
  0x65   : > { %p5557_p2 = scmp.ne.s32.totalorder %s639_s30, %s5556_s29  ;;  %p5564_p8 = scmp.lt.s32.totalorder %s639_s30, %s639_s30 }
  0x66   : > { %p5565_p9 = scmp.lt.s32.totalorder %s5563_s9, %s5556_s29 }
  0x67   : > { %p5559_p3 = pnand %p5557_p2, %p5951_p6 }
  0x68   : > { %p5566_p10 = por %p5565_p9, %p5564_p8 }
  0x69   : > { %p5560_p7 = pneg %p5559_p3 }
  0x6b   : > { %p5567_p11 = pnand %p5566_p10, %p5560_p7 }
  0x6d   : > { %5570 = shalt.err (!%p5567_p11)
}
  0x6e   : > { %s6934_s1 = sld [smem:[#allocation30_spill]]  ;;  %s5582_s0 = scalar_lea.vmem %s661_s7, 16 }
  0x6f   : > { %p5583_p12 = scmp.ne.s32.totalorder %s661_s7, %s5582_s0  ;;  %s5589_s10 = scalar_lea.vmem %s661_s7, 32 }
  0x70   : > { %p5590_p1 = scmp.lt.s32.totalorder %s661_s7, %s661_s7  ;;  %p5591_p4 = scmp.lt.s32.totalorder %s5589_s10, %s5582_s0 }
  0x71   : > { %p5585_p0 = pnand %p5583_p12, %p5951_p6 }
  0x72   : > { %p5592_p2 = por %p5591_p4, %p5590_p1 }
  0x73   : > { %p5586_p13 = pneg %p5585_p0 }
  0x74   : > { %5129 = dma.hbm_to_vmem [thread:$0]  (!%p5941_p5), %s6934_s1, 16, %s639_s30, [#allocation3]  }
  0x75   : > { %p5593_p3 = pnand %p5592_p2, %p5586_p13 }
  0x77   : > { %5596 = shalt.err (!%p5593_p3)
}
  0x78   : > { %s6935_s26 = sld [smem:[#allocation32_spill]]  ;;  %s5775_s30 = smov [#allocation9]  }
  0x79   : > { %s687_s5 = sshll.u32 %s5775_s30, 4  ;;  %s5776_s3 = smov [#allocation12]   ;;  %s688_s5 = int_to_ptr.vmem [resolvable:$true] %s687_s5 }
  0x7a   : > { %s715_s1 = sshll.u32 %s5776_s3, 4  ;;  %s5608_s28 = scalar_lea.vmem %s688_s5, 256  ;;  %s716_s1 = int_to_ptr.vmem [resolvable:$true] %s715_s1 }
  0x7b   : > { %p5609_p7 = scmp.ne.s32.totalorder %s688_s5, %s5608_s28  ;;  %p5616_p10 = scmp.lt.s32.totalorder %s688_s5, %s688_s5 }
  0x7c   : > { %p5617_p11 = scmp.lt.s32.totalorder %s5608_s28, %s5608_s28 }
  0x7d   : > { %p5611_p8 = pnand %p5609_p7, %p5951_p6 }
  0x7e   : > { %5135 = dma.hbm_to_vmem [thread:$0]  (!%p5941_p5), %s6935_s26, 16, %s661_s7, [#allocation5]  }
  0x7f   : > { %p5612_p9 = pneg %p5611_p8  ;;  %p5618_p12 = por %p5617_p11, %p5616_p10 }
  0x81   : > { %p5619_p0 = pnand %p5618_p12, %p5612_p9 }
  0x83   : > { %5622 = shalt.err (!%p5619_p0)
}
  0x84   : > { %s6936_s0 = smov 4   ;;  %s6937_s10 = smov 64  }
  0x85   : > { %s6938_s29 = sld [smem:[#allocation36_spill]]  ;;  %s5634_s9 = scalar_lea.vmem %s716_s1, 16 }
  0x86   : > { %p5635_p13 = scmp.ne.s32.totalorder %s716_s1, %s5634_s9  ;;  %s5641_s28 = scalar_lea.vmem %s716_s1, 32 }
  0x87   : > { %p5642_p2 = scmp.lt.s32.totalorder %s716_s1, %s716_s1  ;;  %p5643_p3 = scmp.lt.s32.totalorder %s5641_s28, %s5634_s9 }
  0x88   : > { %p5637_p1 = pnand %p5635_p13, %p5951_p6 }
  0x89   : > { %p5644_p7 = por %p5643_p3, %p5642_p2 }
  0x8a   : > { %p5638_p4 = pneg %p5637_p1 }
  0x8b   : > { %5141 = dma.hbm_to_vmem [thread:$0]  (!%p5941_p5), %s6938_s29, 256, %s688_s5, [#allocation8], %s6937_s10, %s6937_s10, %s6936_s0  }
  0x8c   : > { %p5645_p8 = pnand %p5644_p7, %p5638_p4 }
  0x8e   : > { %5648 = shalt.err (!%p5645_p8)
}
  0x8f   : > { %s6939_s11 = sld [smem:[#allocation39_spill]]  ;;  %s5777_s5 = smov [#allocation15]  }
  0x90   : > { %s738_s26 = sshll.u32 %s5777_s5, 4  ;;  %s5778_s7 = smov [#allocation18]   ;;  %s739_s26 = int_to_ptr.vmem [resolvable:$true] %s738_s26 }
  0x91   : > { %s766_s29 = sshll.u32 %s5778_s7, 4  ;;  %s5660_s13 = scalar_lea.vmem %s739_s26, 256  ;;  %s767_s29 = int_to_ptr.vmem [resolvable:$true] %s766_s29 }
  0x92   : > { %p5661_p9 = scmp.ne.s32.totalorder %s739_s26, %s5660_s13  ;;  %p5668_p12 = scmp.lt.s32.totalorder %s739_s26, %s739_s26 }
  0x93   : > { %p5669_p0 = scmp.lt.s32.totalorder %s5660_s13, %s5660_s13 }
  0x94   : > { %p5663_p10 = pnand %p5661_p9, %p5951_p6 }
  0x95   : > { %5147 = dma.hbm_to_vmem [thread:$0]  (!%p5941_p5), %s6939_s11, 16, %s716_s1, [#allocation11]  }
  0x96   : > { %p5664_p11 = pneg %p5663_p10  ;;  %p5670_p13 = por %p5669_p0, %p5668_p12 }
  0x98   : > { %p5671_p1 = pnand %p5670_p13, %p5664_p11 }
  0x9a   : > { %5674 = shalt.err (!%p5671_p1)
}
  0x9b   : > { %5153 = dma.hbm_to_vmem [thread:$0]  (!%p5941_p5), %s6883_s12, 256, %s739_s26, [#allocation14], %s6937_s10, %s6937_s10, %s6936_s0  }
  0x9c   : > { %s5686_s9 = scalar_lea.vmem %s767_s29, 16  ;;  %s5693_s13 = scalar_lea.vmem %s767_s29, 32 }
  0x9d   : > { %p5687_p4 = scmp.ne.s32.totalorder %s767_s29, %s5686_s9  ;;  %p5694_p7 = scmp.lt.s32.totalorder %s767_s29, %s767_s29 }
  0x9e   : > { %p5695_p8 = scmp.lt.s32.totalorder %s5693_s13, %s5686_s9 }
  0x9f   : > { %p5689_p2 = pnand %p5687_p4, %p5951_p6 }
  0xa0   : > { %p5696_p9 = por %p5695_p8, %p5694_p7 }
  0xa1   : > { %p5690_p3 = pneg %p5689_p2 }
  0xa3   : > { %p5697_p10 = pnand %p5696_p9, %p5690_p3 }
  0xa5   : > { %5700 = shalt.err (!%p5697_p10)
}
  0xa6   : > { %5159 = dma.hbm_to_vmem [thread:$0]  (!%p5941_p5), %s6886_s15, 16, %s767_s29, [#allocation17]  }
  0xa7   : > { %s5779_s0 = smov [#allocation21]  }
  0xa8   : > { %s804_s10 = sshll.u32 %s5779_s0, 4  ;;  %s805_s10 = int_to_ptr.vmem [resolvable:$true] %s804_s10 }
  0xa9   : > { %s5712_s3 = scalar_lea.vmem %s805_s10, 4096  ;;  %p5720_p13 = scmp.lt.s32.totalorder %s805_s10, %s805_s10 }
  0xaa   : > { %p5713_p11 = scmp.ne.s32.totalorder %s805_s10, %s5712_s3  ;;  %p5721_p1 = scmp.lt.s32.totalorder %s5712_s3, %s5712_s3 }
  0xac   : > { %p5715_p12 = pnand %p5713_p11, %p5951_p6  ;;  %p5722_p4 = por %p5721_p1, %p5720_p13 }
  0xae   : > { %p5716_p0 = pneg %p5715_p12 }
  0xb0   : > { %p5723_p2 = pnand %p5722_p4, %p5716_p0 }
  0xb2   : > { %5726 = shalt.err (!%p5723_p2)
}
  0xb3   : > { %s6940_s5 = smov 8   ;;  %s6941_s26 = smov 128  }
  0xb4   : > { %5165 = dma.hbm_to_vmem [thread:$0]  (!%p5941_p5), %s6893_s22, 4096, %s805_s10, [#allocation20], %s6941_s26, %s6941_s26, %s6940_s5  }
  0xb5   : > { %p6942_p3 = scmp.ne.s32.totalorder %s6926_s4, 0 }
  0xb6   : > { %p6943_p6 = scmp.ne.s32.totalorder (!%p6942_p3), %s6925_s8, 0 }
  0xb7   : > { %838 = sbr.rel (%p6942_p3) target bundleno = 6634 (0x19ea), region = 124 }
  0xbc   : > { %5732 = dma.done.wait (%p6943_p6), [#allocation3], 16  }
  0xbd   : > { %5734 = vsyncadd (%p6943_p6), [#allocation3], 4294967280 }
  0xbe   : > { %5736 = dma.done.wait (%p6943_p6), [#allocation5], 32  }
  0xbf   : > { %5738 = vsyncadd (%p6943_p6), [#allocation5], 4294967264 }
  0xc0   : > { %5740 = dma.done.wait (%p6943_p6), [#allocation8], 272  }
  0xc1   : > { %5742 = vsyncadd (%p6943_p6), [#allocation8], 4294967024 }
  0xc2   : > { %5744 = dma.done.wait (%p6943_p6), [#allocation11], 32  }
  0xc3   : > { %5746 = vsyncadd (%p6943_p6), [#allocation11], 4294967264 }
  0xc4   : > { %5748 = dma.done.wait (%p6943_p6), [#allocation14], 512  }
  0xc5   : > { %5750 = vsyncadd (%p6943_p6), [#allocation14], 4294966784 }
  0xc6   : > { %5752 = dma.done.wait (%p6943_p6), [#allocation17], 32  }
  0xc7   : > { %5754 = vsyncadd (%p6943_p6), [#allocation17], 4294967264 }
  0xc8   : > { %5756 = dma.done.wait (%p6943_p6), [#allocation20], 8192  }
  0xc9   : > { %5758 = vsyncadd (%p6943_p6), [#allocation20], 4294959104  ;;  %s6944_s4 = sadd.s32 4294967295, %s5761_s27   ;;  %v5780_v0 = vmov 0   ;;  %s6945_s9 = sld [smem:[#allocation29_spill]]  ;;  %v969_v5 = vlaneseq  ;;  %v5781_v12 = vmov 0.0  }
  0xca   : > { %s4507_s2 = sshll.u32 %s6944_s4, 2  ;;  %5220 = vset.pattern.permute.xlu1 %v5780_v0  ;;  %5219 = vset.pattern.permute.xlu0 %v5780_v0  ;;  %v4517_v16 = vld [vmem:[#allocation4] ss:$0 sm:$0xff]  ;;  %vm1017_vm4 = vcmask 261120   ;;  %s6946_s30 = sld [smem:[#allocation33_spill]] }
  0xcb   : > { %p957_p5 = scmp.lt.s32.totalorder %s4507_s2, 7  ;;  %v6116_v6 = vshrl.u32 %v969_v5, 7  ;;  %v6118_v7 = vand.u32 127, %v969_v5  ;;  %s6947_s26 = sld [smem:[#allocation35_spill]] }
  0xcc   : > { %s6948_s1 = sld [smem:[#allocation38_spill]] }
  0xcd   : > { %s6951_s2 = smov (!%p957_p5, %s4507_s2), 7  ;;  %v972_v8 = vadd.s32 16, %v6116_v6  ;;  %v971_v9 = vadd.s32 8, %v6116_v6  ;;  %vm976_vm0 = vcmp.eq.s32.totalorder %v6116_v6, %v6118_v7  ;;  %v973_v10 = vadd.s32 24, %v6116_v6 }
  0xce   : > { %s4508_s6 = sshll.u32 %s6951_s2, 3  ;;  %v6130_v13 = vsel %vm976_vm0, 1.0, %v5781_v12  ;;  %v6173_v56 = vcvt.s32.f32 %v6118_v7 }
  0xcf   : > { %s960_s8 = scalar_lea.vmem %s6945_s9, %s4508_s6  ;;  %vm978_vm1 = vcmp.eq.s32.totalorder %v972_v8, %v6118_v7  ;;  %vm977_vm2 = vcmp.eq.s32.totalorder %v971_v9, %v6118_v7  ;;  %vm979_vm3 = vcmp.eq.s32.totalorder %v973_v10, %v6118_v7  ;;  %s6949_s9 = sld [smem:[#allocation42_spill]] }
  0xd0   : > { %v991_v1 = vld [vmem:[%s960_s8 + $0x10] sm:$0xff]  ;;  %v989_v2 = vld [vmem:[%s960_s8] sm:$0xff]  ;;  %v992_v3 = vld [vmem:[%s960_s8 + $0x18] sm:$0xff]  ;;  %v6136_v15 = vsel %vm978_vm1, 1.0, %v5781_v12  ;;  %v6139_v17 = vsel %vm977_vm2, 1.0, %v5781_v12  ;;  %v6145_v20 = vsel %vm979_vm3, 1.0, %v5781_v12 }
  0xd1   : > { %1005 = vperm.xlu1 %5220, %v991_v1   ;;  %995 = vperm.xlu0 %5219, %v989_v2   ;;  %v990_v4 = vld [vmem:[%s960_s8 + $0x8] sm:$0xff] }
  0xd5   : > { %1010 = vperm.xlu1 %5220, %v992_v3   ;;  %1000 = vperm.xlu0 %5219, %v990_v4   ;;  %s966_s8 = scalar_lea.vmem %s6949_s9, %s4508_s6 }
 0x14c   : > { %v6127_v11 = vpop.permute.xlu1 %1005  ;;  %v6132_v14 = vpop.permute.xlu0 %995 }
 0x14d   : > { %v1070_v18 = vmul.f32 %v4517_v16, %v6127_v11  ;;  %v1013_v19 = vmul.f32 %v6130_v13, %v6132_v14  ;;  %v1015_v23 = vmul.f32 %v6136_v15, %v6127_v11  ;;  %v1068_v26 = vmul.f32 %v4517_v16, %v6132_v14 }
 0x14f   : > { %v1018_v28 = vsel %vm1017_vm4, %v1013_v19, 0.0  ;;  %v1021_v33 = vsel %vm1017_vm4, %v1015_v23, 0.0 }
 0x150   : > { %v6147_v21 = vpop.permute.xlu1 %1010  ;;  %v6149_v22 = vpop.permute.xlu0 %1000 }
 0x151   : > { %v1071_v24 = vmul.f32 %v4517_v16, %v6147_v21  ;;  %v1014_v25 = vmul.f32 %v6139_v17, %v6149_v22  ;;  %v1069_v27 = vmul.f32 %v4517_v16, %v6149_v22  ;;  %v1016_v29 = vmul.f32 %v6145_v20, %v6147_v21 }
 0x153   : > { %v1019_v30 = vsel %vm1017_vm4, %v1014_v25, 0.0  ;;  %v1281_v31 = vpack.c.bf16 %v1071_v24, %v1070_v18  ;;  %v1280_v34 = vpack.c.bf16 %v1069_v27, %v1068_v26  ;;  %v1023_v36 = vsel %vm1017_vm4, %v1016_v29, 0.0 }
 0x154   : > { %v1020_v32 = vadd.f32 %v1019_v30, %v1018_v28 }
 0x155   : > { %4886 = vmatprep.subr.bf16.mxu0 %v1281_v31  ;;  %5070 = vmatprep.subr.bf16.mxu1 %v1281_v31 }
 0x156   : > { %v1022_v35 = vadd.f32 %v1021_v33, %v1020_v32  ;;  %4887 = vmatpush3.bf16.msra.mxu0 %v1281_v31  ;;  %5072 = vmatpush3.bf16.msra.mxu1 %v1281_v31 }
 0x157   : > { %4888 = vmatprep.subr.bf16.mxu0 %v1280_v34  ;;  %5071 = vmatprep.subr.bf16.mxu1 %v1280_v34 }
 0x158   : > { %v1024_v37 = vadd.f32 %v1023_v36, %v1022_v35 }
 0x15a   : > { %v1025_v38 = vrot.slane %v1024_v37, 4  ;;  %4889 = vmatpush3.bf16.msra.mxu0 %v1280_v34  ;;  %5073 = vmatpush3.bf16.msra.mxu1 %v1280_v34 }
 0x15c   : > { %v1026_v39 = vadd.f32 %v1025_v38, %v1024_v37 }
 0x15e   : > { %v1027_v40 = vrot.slane %v1026_v39, 2 }
 0x160   : > { %v1028_v41 = vadd.f32 %v1027_v40, %v1026_v39 }
 0x162   : > { %v1029_v42 = vrot.slane %v1028_v41, 1 }
 0x164   : > { %v1030_v43 = vadd.f32 %v1029_v42, %v1028_v41 }
 0x166   : > { %v1032_v44 = vsub.f32 %v6149_v22, %v1030_v43  ;;  %v1031_v45 = vsub.f32 %v6132_v14, %v1030_v43  ;;  %v1033_v46 = vsub.f32 %v6127_v11, %v1030_v43  ;;  %v1034_v52 = vsub.f32 %v6147_v21, %v1030_v43 }
 0x168   : > { %v1036_v47 = vmul.f32 %v1032_v44, %v1032_v44  ;;  %v1035_v48 = vmul.f32 %v1031_v45, %v1031_v45  ;;  %v1037_v51 = vmul.f32 %v1033_v46, %v1033_v46  ;;  %v1038_v54 = vmul.f32 %v1034_v52, %v1034_v52 }
 0x16a   : > { %v1075_v49 = vsel %vm1017_vm4, %v1036_v47, inf  ;;  %v1072_v50 = vsel %vm1017_vm4, %v1035_v48, inf  ;;  %v1078_v53 = vsel %vm1017_vm4, %v1037_v51, inf  ;;  %v1081_v55 = vsel %vm1017_vm4, %v1038_v54, inf }
 0x16b   : > { %1076 = vmin.xlane.f32.xlu1 %v1075_v49  ;;  %1073 = vmin.xlane.f32.xlu0 %v1072_v50 }
 0x16f   : > { %1079 = vmin.xlane.f32.xlu0 %v1078_v53 }
 0x173   : > { %1082 = vmin.xlane.f32.xlu0 %v1081_v55 }
 0x1f4   : > { %v1077_v57 = vpop.xlane.xlu1 %1076  ;;  %v1074_v58 = vpop.xlane.xlu0 %1073 }
 0x1f5   : > { %vm1085_vm5 = vcmp.eq.f32.partialorder %v1036_v47, %v1077_v57  ;;  %vm1084_vm6 = vcmp.eq.f32.partialorder %v1035_v48, %v1074_v58 }
 0x1f6   : > { %v1089_v59 = vsel %vm1085_vm5, %v6173_v56, 32.0  ;;  %v1088_v60 = vsel %vm1084_vm6, %v6173_v56, 32.0 }
 0x1f7   : > { %v1095_v61 = vsel %vm1017_vm4, %v1089_v59, inf  ;;  %v1092_v62 = vsel %vm1017_vm4, %v1088_v60, inf }
 0x1f8   : > { %1096 = vmin.xlane.f32.xlu0 %v1095_v61  ;;  %1093 = vmin.xlane.f32.xlu1 %v1092_v62  ;;  %v1080_v63 = vpop.xlane.xlu0 %1079 }
 0x1f9   : > { %vm1086_vm7 = vcmp.eq.f32.partialorder %v1037_v51, %v1080_v63 }
 0x1fa   : > { %v1090_v1 = vsel %vm1086_vm7, %v6173_v56, 32.0 }
 0x1fb   : > { %v1098_v2 = vsel %vm1017_vm4, %v1090_v1, inf }
 0x1fc   : > { %1099 = vmin.xlane.f32.xlu1 %v1098_v2  ;;  %v1083_v3 = vpop.xlane.xlu0 %1082 }
 0x1fd   : > { %vm1087_vm8 = vcmp.eq.f32.partialorder %v1038_v54, %v1083_v3 }
 0x1fe   : > { %v1091_v4 = vsel %vm1087_vm8, %v6173_v56, 32.0 }
 0x1ff   : > { %v1101_v5 = vsel %vm1017_vm4, %v1091_v4, inf }
 0x200   : > { %1102 = vmin.xlane.f32.xlu0 %v1101_v5 }
 0x281   : > { %v1094_v7 = vpop.xlane.xlu1 %1093  ;;  %v1097_v8 = vpop.xlane.xlu0 %1096 }
 0x282   : > { %vm1104_vm9 = vcmp.eq.f32.partialorder %v6173_v56, %v1094_v7  ;;  %vm1105_vm10 = vcmp.eq.f32.partialorder %v6173_v56, %v1097_v8 }
 0x283   : > { %v4518_v9 = vsel %vm1104_vm9, 1.0, %v5781_v12  ;;  %v4519_v10 = vsel %vm1105_vm10, 1.0, %v5781_v12 }
 0x284   : > { %vm1116_vm11 = vcmp.gt.f32.partialorder %v4518_v9, 0.5  ;;  %vm1117_vm12 = vcmp.gt.f32.partialorder %v4519_v10, 0.5  ;;  %v1272_v16 = vpack.c.bf16 %v4519_v10, %v4518_v9 }
 0x285   : > { %v1100_v18 = vpop.xlane.xlu1 %1099  ;;  %v1120_v19 = vsel %vm1116_vm11, 1e+30, %v1035_v48  ;;  %v1121_v23 = vsel %vm1117_vm12, 1e+30, %v1036_v47 }
 0x286   : > { %vm1106_vm13 = vcmp.eq.f32.partialorder %v6173_v56, %v1100_v18  ;;  %4890 = vmatprep.mubr.msk.bf16.mxu0 %vm1017_vm4, %v1272_v16  ;;  %v1124_v24 = vsel %vm1017_vm4, %v1120_v19, inf  ;;  %v1127_v25 = vsel %vm1017_vm4, %v1121_v23, inf }
 0x287   : > { %v4520_v26 = vsel %vm1106_vm13, 1.0, %v5781_v12  ;;  %1125 = vmin.xlane.f32.xlu1 %v1124_v24  ;;  %1128 = vmin.xlane.f32.xlu0 %v1127_v25 }
 0x288   : > { %vm1118_vm14 = vcmp.gt.f32.partialorder %v4520_v26, 0.5 }
 0x289   : > { %v1103_v27 = vpop.xlane.xlu0 %1102  ;;  %v1122_v28 = vsel %vm1118_vm14, 1e+30, %v1037_v51 }
 0x28a   : > { %vm1107_vm15 = vcmp.eq.f32.partialorder %v6173_v56, %v1103_v27  ;;  %v1130_v29 = vsel %vm1017_vm4, %v1122_v28, inf }
 0x28b   : > { %v4521_v30 = vsel %vm1107_vm15, 1.0, %v5781_v12  ;;  %1131 = vmin.xlane.f32.xlu1 %v1130_v29 }
 0x28c   : > { %vm1119_vm0 = vcmp.gt.f32.partialorder %v4521_v30, 0.5  ;;  %v1273_v31 = vpack.c.bf16 %v4521_v30, %v4520_v26 }
 0x28d   : > { %v1123_v32 = vsel %vm1119_vm0, 1e+30, %v1038_v54 }
 0x28e   : > { %4891 = vmatmul.mubr.msk.bf16.vlgmr.msra.gmra.mxu0 %vm1017_vm4, %v1273_v31  ;;  %v1133_v33 = vsel %vm1017_vm4, %v1123_v32, inf }
 0x28f   : > { %1134 = vmin.xlane.f32.xlu0 %v1133_v33 }
 0x310   : > { %v1126_v34 = vpop.xlane.xlu1 %1125  ;;  %v1129_v35 = vpop.xlane.xlu0 %1128 }
 0x311   : > { %vm1136_vm1 = vcmp.eq.f32.partialorder %v1120_v19, %v1126_v34  ;;  %vm1137_vm2 = vcmp.eq.f32.partialorder %v1121_v23, %v1129_v35 }
 0x312   : > { %v1140_v36 = vsel %vm1136_vm1, %v6173_v56, 32.0  ;;  %v1141_v37 = vsel %vm1137_vm2, %v6173_v56, 32.0 }
 0x313   : > { %v1144_v38 = vsel %vm1017_vm4, %v1140_v36, inf  ;;  %v1147_v39 = vsel %vm1017_vm4, %v1141_v37, inf }
 0x314   : > { %1145 = vmin.xlane.f32.xlu1 %v1144_v38  ;;  %v1132_v40 = vpop.xlane.xlu1 %1131  ;;  %1148 = vmin.xlane.f32.xlu0 %v1147_v39 }
 0x315   : > { %vm1138_vm3 = vcmp.eq.f32.partialorder %v1122_v28, %v1132_v40 }
 0x316   : > { %v1142_v41 = vsel %vm1138_vm3, %v6173_v56, 32.0 }
 0x317   : > { %v1150_v42 = vsel %vm1017_vm4, %v1142_v41, inf }
 0x318   : > { %1151 = vmin.xlane.f32.xlu1 %v1150_v42  ;;  %v1135_v43 = vpop.xlane.xlu0 %1134 }
 0x319   : > { %vm1139_vm5 = vcmp.eq.f32.partialorder %v1123_v32, %v1135_v43 }
 0x31a   : > { %v1143_v44 = vsel %vm1139_vm5, %v6173_v56, 32.0 }
 0x31b   : > { %v1153_v45 = vsel %vm1017_vm4, %v1143_v44, inf }
 0x31c   : > { %1154 = vmin.xlane.f32.xlu0 %v1153_v45 }
 0x39d   : > { %v1146_v46 = vpop.xlane.xlu1 %1145  ;;  %v1149_v47 = vpop.xlane.xlu0 %1148 }
 0x39e   : > { %vm1156_vm6 = vcmp.eq.f32.partialorder %v6173_v56, %v1146_v46  ;;  %vm1157_vm7 = vcmp.eq.f32.partialorder %v6173_v56, %v1149_v47 }
 0x39f   : > { %v4522_v48 = vsel %vm1156_vm6, 1.0, %v5781_v12  ;;  %v4523_v49 = vsel %vm1157_vm7, 1.0, %v5781_v12 }
 0x3a0   : > { %vm1168_vm8 = vcmp.gt.f32.partialorder %v4522_v48, 0.5  ;;  %vm1169_vm9 = vcmp.gt.f32.partialorder %v4523_v49, 0.5  ;;  %v1274_v50 = vpack.c.bf16 %v4523_v49, %v4522_v48 }
 0x3a1   : > { %v1152_v51 = vpop.xlane.xlu1 %1151  ;;  %v1172_v52 = vsel %vm1168_vm8, 1e+30, %v1120_v19  ;;  %v1173_v53 = vsel %vm1169_vm9, 1e+30, %v1121_v23 }
 0x3a2   : > { %vm1158_vm10 = vcmp.eq.f32.partialorder %v6173_v56, %v1152_v51  ;;  %4894 = vmatprep.mubr.msk.bf16.mxu0 %vm1017_vm4, %v1274_v50  ;;  %v1176_v54 = vsel %vm1017_vm4, %v1172_v52, inf  ;;  %v1179_v55 = vsel %vm1017_vm4, %v1173_v53, inf }
 0x3a3   : > { %v4524_v57 = vsel %vm1158_vm10, 1.0, %v5781_v12  ;;  %1177 = vmin.xlane.f32.xlu1 %v1176_v54  ;;  %1180 = vmin.xlane.f32.xlu0 %v1179_v55  ;;  %v5221_v54 = vld [vmem:[%s6946_s30 + $0x8] sm:$0xff]   ;;  %v5222_v55 = vld [vmem:[%s6946_s30] sm:$0xff]  }
 0x3a4   : > { %vm1170_vm11 = vcmp.gt.f32.partialorder %v4524_v57, 0.5  ;;  %4906 = vmatprep.subr.bf16.mxu1 %v5221_v54 }
 0x3a5   : > { %v1155_v58 = vpop.xlane.xlu0 %1154  ;;  %v1174_v59 = vsel %vm1170_vm11, 1e+30, %v1122_v28 }
 0x3a6   : > { %vm1159_vm12 = vcmp.eq.f32.partialorder %v6173_v56, %v1155_v58  ;;  %v1182_v60 = vsel %vm1017_vm4, %v1174_v59, inf }
 0x3a7   : > { %v4525_v61 = vsel %vm1159_vm12, 1.0, %v5781_v12  ;;  %1183 = vmin.xlane.f32.xlu1 %v1182_v60 }
 0x3a8   : > { %vm1171_vm13 = vcmp.gt.f32.partialorder %v4525_v61, 0.5  ;;  %v1275_v62 = vpack.c.bf16 %v4525_v61, %v4524_v57  ;;  %v4892_v57 = vpop.f32.mrf.mxu0  ;;  %v4515_v61 = vld [vmem:[#allocation2] ss:$0 sm:$0xff] }
 0x3a9   : > { %v1175_v63 = vsel %vm1171_vm13, 1e+30, %v1123_v32 }
 0x3aa   : > { %4895 = vmatmul.mubr.msk.bf16.gmra.mxu0 %vm1017_vm4, %v1275_v62  ;;  %v1185_v1 = vsel %vm1017_vm4, %v1175_v63, inf  ;;  %v1340_v58 = vpop.f32.mrf.mxu0 }
 0x3ab   : > { %1186 = vmin.xlane.f32.xlu0 %v1185_v1  ;;  %v1046_v1 = vmul.f32 %v4515_v61, %v6132_v14  ;;  %v1049_v14 = vmul.f32 %v4515_v61, %v6147_v21 }
 0x42c   : > { %v1178_v2 = vpop.xlane.xlu1 %1177  ;;  %v1181_v3 = vpop.xlane.xlu0 %1180 }
 0x42d   : > { %vm1188_vm14 = vcmp.eq.f32.partialorder %v1172_v52, %v1178_v2  ;;  %vm1189_vm15 = vcmp.eq.f32.partialorder %v1173_v53, %v1181_v3 }
 0x42e   : > { %v1192_v4 = vsel %vm1188_vm14, %v6173_v56, 32.0  ;;  %v1193_v5 = vsel %vm1189_vm15, %v6173_v56, 32.0 }
 0x42f   : > { %v1196_v7 = vsel %vm1017_vm4, %v1192_v4, inf  ;;  %v1199_v8 = vsel %vm1017_vm4, %v1193_v5, inf  ;;  %v4516_v4 = vld [vmem:[#allocation6] ss:$0 sm:$0xff] }
 0x430   : > { %1197 = vmin.xlane.f32.xlu1 %v1196_v7  ;;  %v1184_v9 = vpop.xlane.xlu1 %1183  ;;  %1200 = vmin.xlane.f32.xlu0 %v1199_v8 }
 0x431   : > { %vm1190_vm0 = vcmp.eq.f32.partialorder %v1174_v59, %v1184_v9 }
 0x432   : > { %v1194_v10 = vsel %vm1190_vm0, %v6173_v56, 32.0 }
 0x433   : > { %v1202_v16 = vsel %vm1017_vm4, %v1194_v10, inf }
 0x434   : > { %1203 = vmin.xlane.f32.xlu1 %v1202_v16  ;;  %v1187_v18 = vpop.xlane.xlu0 %1186  ;;  %v1057_v16 = vadd.f32 %v4516_v4, %v1046_v1 }
 0x435   : > { %vm1191_vm1 = vcmp.eq.f32.partialorder %v1175_v63, %v1187_v18 }
 0x436   : > { %v1195_v19 = vsel %vm1191_vm1, %v6173_v56, 32.0 }
 0x437   : > { %v1205_v23 = vsel %vm1017_vm4, %v1195_v19, inf }
 0x438   : > { %1206 = vmin.xlane.f32.xlu0 %v1205_v23 }
 0x4b9   : > { %v1198_v24 = vpop.xlane.xlu1 %1197  ;;  %v1201_v25 = vpop.xlane.xlu0 %1200 }
 0x4ba   : > { %vm1208_vm2 = vcmp.eq.f32.partialorder %v6173_v56, %v1198_v24  ;;  %vm1209_vm3 = vcmp.eq.f32.partialorder %v6173_v56, %v1201_v25  ;;  %v1403_v24 = vadd.f32 %v1340_v58, %v1057_v16  ;;  %v1048_v25 = vmul.f32 %v4515_v61, %v6127_v11 }
 0x4bb   : > { %v4526_v26 = vsel %vm1208_vm2, 1.0, %v5781_v12  ;;  %v4527_v27 = vsel %vm1209_vm3, 1.0, %v5781_v12 }
 0x4bc   : > { %v1276_v28 = vpack.c.bf16 %v4527_v27, %v4526_v26  ;;  %vm1220_vm5 = vcmp.gt.f32.partialorder %v4526_v26, 0.5  ;;  %vm1221_vm6 = vcmp.gt.f32.partialorder %v4527_v27, 0.5 }
 0x4bd   : > { %v1204_v29 = vpop.xlane.xlu1 %1203  ;;  %v1224_v30 = vsel %vm1220_vm5, 1e+30, %v1172_v52  ;;  %v1225_v31 = vsel %vm1221_vm6, 1e+30, %v1173_v53 }
 0x4be   : > { %vm1210_vm7 = vcmp.eq.f32.partialorder %v6173_v56, %v1204_v29  ;;  %4898 = vmatprep.mubr.msk.bf16.mxu1 %vm1017_vm4, %v1276_v28  ;;  %v1228_v32 = vsel %vm1017_vm4, %v1224_v30, inf  ;;  %v1231_v33 = vsel %vm1017_vm4, %v1225_v31, inf  ;;  %v1060_v28 = vadd.f32 %v4516_v4, %v1049_v14 }
 0x4bf   : > { %v4528_v34 = vsel %vm1210_vm7, 1.0, %v5781_v12  ;;  %1229 = vmin.xlane.f32.xlu1 %v1228_v32  ;;  %1232 = vmin.xlane.f32.xlu0 %v1231_v33  ;;  %v1059_v33 = vadd.f32 %v4516_v4, %v1048_v25  ;;  %v5226_v25 = vld [vmem:[#allocation9] sm:$0xff]  }
 0x4c0   : > { %vm1222_vm8 = vcmp.gt.f32.partialorder %v4528_v34, 0.5 }
 0x4c1   : > { %v1207_v35 = vpop.xlane.xlu0 %1206  ;;  %v1226_v36 = vsel %vm1222_vm8, 1e+30, %v1174_v59  ;;  %v4893_v59 = vpop.f32.mrf.mxu0 }
 0x4c2   : > { %vm1211_vm9 = vcmp.eq.f32.partialorder %v6173_v56, %v1207_v35  ;;  %v1234_v37 = vsel %vm1017_vm4, %v1226_v36, inf }
 0x4c3   : > { %v4529_v38 = vsel %vm1211_vm9, 1.0, %v5781_v12  ;;  %1235 = vmin.xlane.f32.xlu1 %v1234_v37  ;;  %v1343_v60 = vpop.f32.mrf.mxu0  ;;  %v1405_v37 = vadd.f32 %v4892_v57, %v1059_v33 }
 0x4c4   : > { %v1277_v39 = vpack.c.bf16 %v4529_v38, %v4528_v34  ;;  %vm1223_vm10 = vcmp.gt.f32.partialorder %v4529_v38, 0.5  ;;  %v1406_v34 = vadd.f32 %v4893_v59, %v1060_v28 }
 0x4c5   : > { %v1227_v40 = vsel %vm1223_vm10, 1e+30, %v1175_v63  ;;  %v4896_v62 = vpop.f32.mrf.mxu0  ;;  %v1047_v63 = vmul.f32 %v4515_v61, %v6149_v22 }
 0x4c6   : > { %4899 = vmatmul.mubr.msk.bf16.vlgmr.msra.gmra.mxu1 %vm1017_vm4, %v1277_v39  ;;  %v1237_v41 = vsel %vm1017_vm4, %v1227_v40, inf }
 0x4c7   : > { %1238 = vmin.xlane.f32.xlu0 %v1237_v41  ;;  %4907 = vmatpush3.bf16.msra.mxu1 %v5221_v54  ;;  %v1356_v5 = vpop.f32.mrf.mxu0  ;;  %v6259_v7 = vadd.f32 %v4516_v4, %v1047_v63 }
 0x4c8   : > { %4908 = vmatprep.subr.bf16.mxu1 %v5222_v55  ;;  %v1411_v39 = vadd.f32 %v1356_v5, %v1057_v16 }
 0x4c9   : > { %v1404_v22 = vadd.f32 %v1343_v60, %v6259_v7  ;;  %v4897_v19 = vpop.f32.mrf.mxu0 }
 0x4cb   : > { %4909 = vmatpush3.bf16.msra.mxu1 %v5222_v55  ;;  %v1408_v26 = vmax.f32 %v1404_v22, 0.0  ;;  %v1359_v29 = vpop.f32.mrf.mxu0 }
 0x4cc   : > { %v1412_v11 = vadd.f32 %v1359_v29, %v6259_v7 }
 0x4ce   : > { %v1416_v41 = vmax.f32 %v1412_v11, 0.0 }
 0x548   : > { %v1230_v42 = vpop.xlane.xlu1 %1229  ;;  %v1233_v43 = vpop.xlane.xlu0 %1232 }
 0x549   : > { %vm1240_vm11 = vcmp.eq.f32.partialorder %v1224_v30, %v1230_v42  ;;  %vm1241_vm12 = vcmp.eq.f32.partialorder %v1225_v31, %v1233_v43  ;;  %v1407_v31 = vmax.f32 %v1403_v24, 0.0  ;;  %v1409_v42 = vmax.f32 %v1405_v37, 0.0  ;;  %v5223_v24 = vld [vmem:[%s6947_s26 + $0x8] sm:$0xff]  }
 0x54a   : > { %v1244_v44 = vsel %vm1240_vm11, %v6173_v56, 32.0  ;;  %v1245_v45 = vsel %vm1241_vm12, %v6173_v56, 32.0  ;;  %4926 = vmatprep.subr.bf16.mxu0 %v5223_v24 }
 0x54b   : > { %v1248_v46 = vsel %vm1017_vm4, %v1244_v44, inf  ;;  %v1251_v47 = vsel %vm1017_vm4, %v1245_v45, inf  ;;  %v1415_v44 = vmax.f32 %v1411_v39, 0.0  ;;  %4927 = vmatpush3.bf16.msra.mxu0 %v5223_v24 }
 0x54c   : > { %1249 = vmin.xlane.f32.xlu1 %v1248_v46  ;;  %v1236_v48 = vpop.xlane.xlu1 %1235  ;;  %1252 = vmin.xlane.f32.xlu0 %v1251_v47  ;;  %v1414_v46 = vadd.f32 %v4897_v19, %v1060_v28 }
 0x54d   : > { %vm1242_vm13 = vcmp.eq.f32.partialorder %v1226_v36, %v1236_v48  ;;  %v1435_v36 = vpack.c.bf16 %v1408_v26, %v1407_v31  ;;  %v1437_v47 = vpack.c.bf16 %v1416_v41, %v1415_v44 }
 0x54e   : > { %v1246_v49 = vsel %vm1242_vm13, %v6173_v56, 32.0 }
 0x54f   : > { %v1254_v50 = vsel %vm1017_vm4, %v1246_v49, inf  ;;  %v1413_v49 = vadd.f32 %v4896_v62, %v1059_v33 }
 0x550   : > { %1255 = vmin.xlane.f32.xlu1 %v1254_v50  ;;  %v1239_v51 = vpop.xlane.xlu0 %1238 }
 0x551   : > { %vm1243_vm14 = vcmp.eq.f32.partialorder %v1227_v40, %v1239_v51  ;;  %v1410_v40 = vmax.f32 %v1406_v34, 0.0  ;;  %v1418_v51 = vmax.f32 %v1414_v46, 0.0 }
 0x552   : > { %v1247_v52 = vsel %vm1243_vm14, %v6173_v56, 32.0 }
 0x553   : > { %v1257_v53 = vsel %vm1017_vm4, %v1247_v52, inf  ;;  %v1436_v45 = vpack.c.bf16 %v1410_v40, %v1409_v42 }
 0x554   : > { %1258 = vmin.xlane.f32.xlu0 %v1257_v53  ;;  %v1417_v53 = vmax.f32 %v1413_v49, 0.0 }
 0x556   : > { %v1438_v55 = vpack.c.bf16 %v1418_v51, %v1417_v53 }
 0x586   : > { %v4900_v23 = vpop.f32.mrf.mxu1 }
 0x587   : > { %v1421_v59 = vadd.f32 %v4900_v23, %v1059_v33 }
 0x588   : > { %v1372_v30 = vpop.f32.mrf.mxu1 }
 0x589   : > { %v1419_v50 = vadd.f32 %v1372_v30, %v1057_v16  ;;  %v1425_v61 = vmax.f32 %v1421_v59, 0.0 }
 0x58a   : > { %v4901_v38 = vpop.f32.mrf.mxu1 }
 0x58b   : > { %v1423_v54 = vmax.f32 %v1419_v50, 0.0  ;;  %v1422_v57 = vadd.f32 %v4901_v38, %v1060_v28  ;;  %v4552_v50 = vld [vmem:[#allocation7] ss:$0 sm:$0xff] }
 0x58c   : > { %v1375_v43 = vpop.f32.mrf.mxu1 }
 0x58d   : > { %v1420_v48 = vadd.f32 %v1375_v43, %v6259_v7  ;;  %v1426_v60 = vmax.f32 %v1422_v57, 0.0 }
 0x58f   : > { %v1424_v52 = vmax.f32 %v1420_v48, 0.0  ;;  %v1440_v62 = vpack.c.bf16 %v1426_v60, %v1425_v61 }
 0x591   : > { %v1439_v58 = vpack.c.bf16 %v1424_v52, %v1423_v54 }
 0x5d5   : > { %v1250_v2 = vpop.xlane.xlu1 %1249  ;;  %v1253_v3 = vpop.xlane.xlu0 %1252 }
 0x5d6   : > { %vm1260_vm15 = vcmp.eq.f32.partialorder %v6173_v56, %v1250_v2  ;;  %vm1261_vm0 = vcmp.eq.f32.partialorder %v6173_v56, %v1253_v3 }
 0x5d7   : > { %v4530_v8 = vsel %vm1260_vm15, 1.0, %v5781_v12  ;;  %v4531_v9 = vsel %vm1261_vm0, 1.0, %v5781_v12 }
 0x5d8   : > { %v1278_v10 = vpack.c.bf16 %v4531_v9, %v4530_v8 }
 0x5d9   : > { %v1256_v18 = vpop.xlane.xlu1 %1255 }
 0x5da   : > { %4902 = vmatprep.mubr.msk.bf16.mxu1 %vm1017_vm4, %v1278_v10  ;;  %vm1262_vm1 = vcmp.eq.f32.partialorder %v6173_v56, %v1256_v18 }
 0x5db   : > { %v4532_v32 = vsel %vm1262_vm1, 1.0, %v5781_v12 }
 0x5dd   : > { %v1259_v27 = vpop.xlane.xlu0 %1258 }
 0x5de   : > { %vm1263_vm2 = vcmp.eq.f32.partialorder %v6173_v56, %v1259_v27 }
 0x5df   : > { %v4533_v21 = vsel %vm1263_vm2, 1.0, %v5781_v12 }
 0x5e0   : > { %v1279_v35 = vpack.c.bf16 %v4533_v21, %v4532_v32 }
 0x5e2   : > { %4903 = vmatmul.mubr.msk.bf16.gmra.mxu1 %vm1017_vm4, %v1279_v35 }
 0x5e3   : > { %4910 = vmatprep.mubr.msk.bf16.mxu1 %vm1017_vm4, %v1435_v36 }
 0x5ea   : > { %4911 = vmatmul.mubr.msk.bf16.vlgmr.msra.gmra.mxu1 %vm1017_vm4, %v1436_v45 }
 0x5eb   : > { %4914 = vmatprep.mubr.msk.bf16.mxu1 %vm1017_vm4, %v1437_v47 }
 0x5f2   : > { %4915 = vmatmul.mubr.msk.bf16.gmra.mxu1 %vm1017_vm4, %v1438_v55 }
 0x5f3   : > { %4918 = vmatprep.mubr.msk.bf16.mxu1 %vm1017_vm4, %v1439_v58 }
 0x5fa   : > { %4919 = vmatmul.mubr.msk.bf16.gmra.mxu1 %vm1017_vm4, %v1440_v62 }
 0x6a2   : > { %v4904_v63 = vpop.f32.mrf.mxu1 }
 0x6a3   : > { %v1429_v5 = vadd.f32 %v4904_v63, %v1059_v33 }
 0x6a4   : > { %v1388_v1 = vpop.f32.mrf.mxu1 }
 0x6a5   : > { %v1427_v3 = vadd.f32 %v1388_v1, %v1057_v16  ;;  %v1433_v14 = vmax.f32 %v1429_v5, 0.0  ;;  %v5224_v16 = vld [vmem:[#allocation9 + $0x8] sm:$0xff]  }
 0x6a6   : > { %v4905_v2 = vpop.f32.mrf.mxu1  ;;  %4934 = vmatprep.subr.bf16.mxu1 %v5224_v16 }
 0x6a7   : > { %v1430_v4 = vadd.f32 %v4905_v2, %v1060_v28  ;;  %v1431_v22 = vmax.f32 %v1427_v3, 0.0  ;;  %4935 = vmatpush3.bf16.msra.mxu1 %v5224_v16 }
 0x6a8   : > { %v1391_v8 = vpop.f32.mrf.mxu1  ;;  %4936 = vmatprep.subr.bf16.mxu1 %v5226_v25 }
 0x6a9   : > { %v1428_v9 = vadd.f32 %v1391_v8, %v6259_v7  ;;  %v1434_v10 = vmax.f32 %v1430_v4, 0.0  ;;  %v5225_v7 = vld [vmem:[%s6947_s26] sm:$0xff]  }
 0x6aa   : > { %4928 = vmatprep.subr.bf16.mxu0 %v5225_v7  ;;  %v4912_v26 = vpop.f32.mrf.mxu1 }
 0x6ab   : > { %v1432_v18 = vmax.f32 %v1428_v9, 0.0  ;;  %v1442_v23 = vpack.c.bf16 %v1434_v10, %v1433_v14  ;;  %4929 = vmatpush3.bf16.msra.mxu0 %v5225_v7  ;;  %4937 = vmatpush3.bf16.msra.mxu1 %v5226_v25 }
 0x6ac   : > { %v1517_v27 = vpop.f32.mrf.mxu1 }
 0x6ad   : > { %v1441_v19 = vpack.c.bf16 %v1432_v18, %v1431_v22 }
 0x6ae   : > { %v4913_v28 = vpop.f32.mrf.mxu1 }
 0x6af   : > { %4922 = vmatprep.mubr.msk.bf16.mxu1 %vm1017_vm4, %v1441_v19 }
 0x6b0   : > { %4923 = vmatmul.mubr.msk.bf16.gmra.mxu1 %vm1017_vm4, %v1442_v23  ;;  %v1520_v29 = vpop.f32.mrf.mxu1 }
 0x6b2   : > { %v4916_v30 = vpop.f32.mrf.mxu1 }
 0x6b3   : > { %v1582_v39 = vmax.f32 %v4912_v26, %v4916_v30 }
 0x6b4   : > { %v1533_v31 = vpop.f32.mrf.mxu1 }
 0x6b5   : > { %v1580_v37 = vmax.f32 %v1517_v27, %v1533_v31 }
 0x6b6   : > { %v4917_v32 = vpop.f32.mrf.mxu1 }
 0x6b7   : > { %v1583_v38 = vmax.f32 %v4913_v28, %v4917_v32 }
 0x6b8   : > { %v1536_v21 = vpop.f32.mrf.mxu1 }
 0x6b9   : > { %v1581_v41 = vmax.f32 %v1520_v29, %v1536_v21 }
 0x6ba   : > { %v4920_v33 = vpop.f32.mrf.mxu1 }
 0x6bb   : > { %v1586_v44 = vmax.f32 %v1582_v39, %v4920_v33 }
 0x6bc   : > { %v1549_v34 = vpop.f32.mrf.mxu1 }
 0x6bd   : > { %v1584_v42 = vmax.f32 %v1580_v37, %v1549_v34 }
 0x6be   : > { %v4921_v35 = vpop.f32.mrf.mxu1 }
 0x6bf   : > { %v1587_v43 = vmax.f32 %v1583_v38, %v4921_v35 }
 0x6c0   : > { %v1552_v36 = vpop.f32.mrf.mxu1 }
 0x6c1   : > { %v1585_v46 = vmax.f32 %v1581_v41, %v1552_v36 }
 0x770   : > { %v4924_v11 = vpop.f32.mrf.mxu1 }
 0x771   : > { %v1590_v49 = vmax.f32 %v1586_v44, %v4924_v11 }
 0x772   : > { %v1565_v40 = vpop.f32.mrf.mxu1 }
 0x773   : > { %v1588_v47 = vmax.f32 %v1584_v42, %v1565_v40  ;;  %v1601_v57 = vadd.f32 %v4552_v50, %v1590_v49 }
 0x774   : > { %v4925_v45 = vpop.f32.mrf.mxu1 }
 0x775   : > { %v1591_v48 = vmax.f32 %v1587_v43, %v4925_v45  ;;  %v1599_v54 = vadd.f32 %v4552_v50, %v1588_v47 }
 0x776   : > { %v1568_v51 = vpop.f32.mrf.mxu1 }
 0x777   : > { %v1602_v52 = vadd.f32 %v4552_v50, %v1591_v48  ;;  %v1589_v53 = vmax.f32 %v1585_v46, %v1568_v51 }
 0x779   : > { %v1600_v55 = vadd.f32 %v4552_v50, %v1589_v53  ;;  %4942 = vmatprep.subr.msk.mxu0 %vm1017_vm4, %v1602_v52  ;;  %v6292_v59 = vpack.c.bf16 %v1602_v52, %v1601_v57 }
 0x77b   : > { %v6290_v58 = vpack.c.bf16 %v1600_v55, %v1599_v54 }
 0x77d   : > { %4930 = vmatprep.mubr.msk.bf16.mxu0 %vm1017_vm4, %v6290_v58  ;;  %4938 = vmatprep.mubr.msk.bf16.mxu1 %vm1017_vm4, %v6290_v58 }
 0x77e   : > { %4931 = vmatmul.mubr.msk.bf16.vlgmr.msra.gmra.mxu0 %vm1017_vm4, %v6292_v59  ;;  %4939 = vmatmul.mubr.msk.bf16.vlgmr.msra.gmra.mxu1 %vm1017_vm4, %v6292_v59 }
 0x77f   : > { %4943 = vmatpush3.xpose.msk.msra.mxu0 %vm1017_vm4, %v1602_v52  ;;  %4950 = vmatprep.mubr.msk.f32.mxu0 %vm1017_vm4, %v1599_v54 }
 0x780   : > { %4944 = vmatprep.subr.msk.mxu0 %vm1017_vm4, %v1601_v57 }
 0x783   : > { %4945 = vmatpush3.xpose.msk.msra.mxu0 %vm1017_vm4, %v1601_v57 }
 0x784   : > { %4946 = vmatprep.subr.msk.mxu0 %vm1017_vm4, %v1600_v55 }
 0x787   : > { %4947 = vmatpush3.xpose.msk.msra.mxu0 %vm1017_vm4, %v1600_v55 }
 0x788   : > { %4948 = vmatprep.subr.msk.mxu0 %vm1017_vm4, %v1599_v54 }
 0x78b   : > { %4949 = vmatpush3.xpose.msk.msra.mxu0 %vm1017_vm4, %v1599_v54 }
 0x78e   : > { %4951 = vmatmul.mubr.msk.f32.vlgmr.msra.gmra.mxu0 %vm1017_vm4, %v1600_v55 }
 0x78f   : > { %4953 = vmatprep.mubr.msk.f32.mxu0 %vm1017_vm4, %v1601_v57 }
 0x792   : > { %4954 = vmatmul.mubr.msk.f32.gmra.mxu0 %vm1017_vm4, %v1602_v52 }
 0x83e   : > { %v4940_v60 = vpop.f32.mrf.mxu1  ;;  %v6313_v61 = vpop.f32.mrf.mxu0 }
 0x840   : > { %v1733_v62 = vpop.f32.mrf.mxu1  ;;  %v6315_v2 = vpop.f32.mrf.mxu0 }
 0x842   : > { %v4941_v63 = vpop.f32.mrf.mxu1  ;;  %v6317_v5 = vpop.f32.mrf.mxu0 }
 0x843   : > { %v2079_v1 = vpack.c.bf16 %v4941_v63, %v4940_v60 }
 0x844   : > { %v1736_v3 = vpop.f32.mrf.mxu1  ;;  %v6319_v8 = vpop.f32.mrf.mxu0 }
 0x845   : > { %v2078_v4 = vpack.c.bf16 %v1736_v3, %v1733_v62  ;;  %4956 = vmatprep.subr.bf16.mxu1 %v2079_v1 }
 0x846   : > { %4957 = vmatpush3.bf16.msra.mxu1 %v2079_v1 }
 0x847   : > { %4958 = vmatprep.subr.bf16.mxu1 %v2078_v4 }
 0x84a   : > { %4959 = vmatpush3.bf16.msra.mxu1 %v2078_v4 }
 0x84e   : > { %v4952_v9 = vpop.f32.mrf.mxu0 }
 0x84f   : > { %v1846_v22 = vmul.f32 %v4952_v9, %v6139_v17  ;;  %v1863_v34 = vmul.f32 2.0, %v4952_v9 }
 0x850   : > { %v1826_v10 = vpop.f32.mrf.mxu0 }
 0x851   : > { %v1845_v18 = vmul.f32 %v6130_v13, %v1826_v10  ;;  %v1850_v24 = vsel %vm1017_vm4, %v1846_v22, 0.0  ;;  %v1862_v35 = vmul.f32 2.0, %v1826_v10 }
 0x852   : > { %v4955_v14 = vpop.f32.mrf.mxu0 }
 0x853   : > { %v1849_v19 = vsel %vm1017_vm4, %v1845_v18, 0.0  ;;  %v1848_v16 = vmul.f32 %v4955_v14, %v6145_v20  ;;  %v1865_v11 = vmul.f32 2.0, %v4955_v14 }
 0x854   : > { %v1836_v23 = vpop.f32.mrf.mxu0  ;;  %v1851_v25 = vadd.f32 %v1850_v24, %v1849_v19 }
 0x855   : > { %v1847_v7 = vmul.f32 %v6136_v15, %v1836_v23  ;;  %v1854_v28 = vsel %vm1017_vm4, %v1848_v16, 0.0  ;;  %v1864_v37 = vmul.f32 2.0, %v1836_v23 }
 0x857   : > { %v1852_v26 = vsel %vm1017_vm4, %v1847_v7, 0.0 }
 0x858   : > { %v1853_v27 = vadd.f32 %v1852_v26, %v1851_v25 }
 0x85a   : > { %v1855_v29 = vadd.f32 %v1854_v28, %v1853_v27  ;;  %v5227_v28 = vld [vmem:[%s6948_s1 + $0x8] sm:$0xff]  }
 0x85b   : > { %4976 = vmatprep.subr.bf16.mxu0 %v5227_v28 }
 0x85c   : > { %v1856_v30 = vrot.slane %v1855_v29, 4  ;;  %4977 = vmatpush3.bf16.msra.mxu0 %v5227_v28 }
 0x85e   : > { %v1857_v31 = vadd.f32 %v1856_v30, %v1855_v29  ;;  %v5228_v29 = vld [vmem:[%s6948_s1] sm:$0xff]  }
 0x85f   : > { %4978 = vmatprep.subr.bf16.mxu0 %v5228_v29 }
 0x860   : > { %v1858_v32 = vrot.slane %v1857_v31, 2  ;;  %4979 = vmatpush3.bf16.msra.mxu0 %v5228_v29 }
 0x862   : > { %v1859_v21 = vadd.f32 %v1858_v32, %v1857_v31 }
 0x864   : > { %v1860_v33 = vrot.slane %v1859_v21, 1 }
 0x866   : > { %v1861_v36 = vadd.f32 %v1860_v33, %v1859_v21 }
 0x868   : > { %v1867_v38 = vsub.f32 %v1861_v36, %v1863_v34  ;;  %v1866_v39 = vsub.f32 %v1861_v36, %v1862_v35  ;;  %v1868_v40 = vsub.f32 %v1861_v36, %v1864_v37  ;;  %v1869_v43 = vsub.f32 %v1861_v36, %v1865_v11 }
 0x86a   : > { %v1873_v41 = vsel %vm1017_vm4, %v1867_v38, inf  ;;  %v1870_v42 = vsel %vm1017_vm4, %v1866_v39, inf  ;;  %v1879_v44 = vsel %vm1017_vm4, %v1869_v43, inf  ;;  %v1876_v45 = vsel %vm1017_vm4, %v1868_v40, inf }
 0x86b   : > { %1874 = vmin.xlane.f32.xlu0 %v1873_v41  ;;  %1871 = vmin.xlane.f32.xlu1 %v1870_v42  ;;  %v4553_v41 = vld [vmem:[#allocation10] ss:$0 sm:$0xff] }
 0x86f   : > { %1880 = vmin.xlane.f32.xlu0 %v1879_v44  ;;  %1877 = vmin.xlane.f32.xlu1 %v1876_v45  ;;  %v6389_v44 = vadd.f32 %v6317_v5, %v4553_v41  ;;  %v6392_v45 = vadd.f32 %v6313_v61, %v4553_v41 }
 0x8f4   : > { %v1875_v46 = vpop.xlane.xlu0 %1874  ;;  %v1872_v47 = vpop.xlane.xlu1 %1871 }
 0x8f5   : > { %vm1883_vm3 = vcmp.eq.f32.partialorder %v1867_v38, %v1875_v46  ;;  %vm1882_vm5 = vcmp.eq.f32.partialorder %v1866_v39, %v1872_v47  ;;  %v6395_v47 = vadd.f32 %v4553_v41, %v6319_v8 }
 0x8f6   : > { %v1887_v48 = vsel %vm1883_vm3, %v6173_v56, 32.0  ;;  %v1886_v49 = vsel %vm1882_vm5, %v6173_v56, 32.0 }
 0x8f7   : > { %v1893_v50 = vsel %vm1017_vm4, %v1887_v48, inf  ;;  %v1890_v51 = vsel %vm1017_vm4, %v1886_v49, inf }
 0x8f8   : > { %1894 = vmin.xlane.f32.xlu0 %v1893_v50  ;;  %v1881_v52 = vpop.xlane.xlu0 %1880  ;;  %1891 = vmin.xlane.f32.xlu1 %v1890_v51  ;;  %v1878_v53 = vpop.xlane.xlu1 %1877 }
 0x8f9   : > { %vm1885_vm6 = vcmp.eq.f32.partialorder %v1869_v43, %v1881_v52  ;;  %vm1884_vm7 = vcmp.eq.f32.partialorder %v1868_v40, %v1878_v53 }
 0x8fa   : > { %v1889_v54 = vsel %vm1885_vm6, %v6173_v56, 32.0  ;;  %v1888_v55 = vsel %vm1884_vm7, %v6173_v56, 32.0 }
 0x8fb   : > { %v1899_v57 = vsel %vm1017_vm4, %v1889_v54, inf  ;;  %v1896_v60 = vsel %vm1017_vm4, %v1888_v55, inf }
 0x8fc   : > { %1900 = vmin.xlane.f32.xlu0 %v1899_v57  ;;  %1897 = vmin.xlane.f32.xlu1 %v1896_v60 }
 0x981   : > { %v1895_v62 = vpop.xlane.xlu0 %1894  ;;  %v1892_v63 = vpop.xlane.xlu1 %1891 }
 0x982   : > { %vm1903_vm8 = vcmp.eq.f32.partialorder %v6173_v56, %v1895_v62  ;;  %vm1902_vm9 = vcmp.eq.f32.partialorder %v6173_v56, %v1892_v63 }
 0x983   : > { %v4571_v1 = vsel %vm1903_vm8, 1.0, %v5781_v12  ;;  %v4570_v3 = vsel %vm1902_vm9, 1.0, %v5781_v12 }
 0x984   : > { %vm1915_vm10 = vcmp.gt.f32.partialorder %v4571_v1, 0.5  ;;  %vm1914_vm11 = vcmp.gt.f32.partialorder %v4570_v3, 0.5  ;;  %v2070_v4 = vpack.c.bf16 %v4571_v1, %v4570_v3 }
 0x985   : > { %v1901_v9 = vpop.xlane.xlu0 %1900  ;;  %v1898_v10 = vpop.xlane.xlu1 %1897  ;;  %v6345_v22 = vsel %vm1915_vm10, 1e+30, %v1867_v38  ;;  %v6347_v18 = vsel %vm1914_vm11, 1e+30, %v1866_v39 }
 0x986   : > { %vm1905_vm12 = vcmp.eq.f32.partialorder %v6173_v56, %v1901_v9  ;;  %vm1904_vm13 = vcmp.eq.f32.partialorder %v6173_v56, %v1898_v10  ;;  %4960 = vmatprep.mubr.msk.bf16.mxu1 %vm1017_vm4, %v2070_v4  ;;  %v1925_v14 = vsel %vm1017_vm4, %v6345_v22, inf  ;;  %v1922_v19 = vsel %vm1017_vm4, %v6347_v18, inf }
 0x987   : > { %v4573_v23 = vsel %vm1905_vm12, 1.0, %v5781_v12  ;;  %v4572_v24 = vsel %vm1904_vm13, 1.0, %v5781_v12  ;;  %1926 = vmin.xlane.f32.xlu0 %v1925_v14  ;;  %1923 = vmin.xlane.f32.xlu1 %v1922_v19 }
 0x988   : > { %vm1917_vm14 = vcmp.gt.f32.partialorder %v4573_v23, 0.5  ;;  %vm1916_vm15 = vcmp.gt.f32.partialorder %v4572_v24, 0.5  ;;  %v2071_v16 = vpack.c.bf16 %v4573_v23, %v4572_v24 }
 0x989   : > { %v6358_v7 = vsel %vm1917_vm14, 1e+30, %v1869_v43  ;;  %v6360_v25 = vsel %vm1916_vm15, 1e+30, %v1868_v40  ;;  %v6386_v43 = vadd.f32 %v4553_v41, %v6315_v2 }
 0x98a   : > { %4961 = vmatmul.mubr.msk.bf16.vlgmr.msra.gmra.mxu1 %vm1017_vm4, %v2071_v16  ;;  %v1931_v26 = vsel %vm1017_vm4, %v6358_v7, inf  ;;  %v1928_v27 = vsel %vm1017_vm4, %v6360_v25, inf }
 0x98b   : > { %1932 = vmin.xlane.f32.xlu0 %v1931_v26  ;;  %1929 = vmin.xlane.f32.xlu1 %v1928_v27 }
 0xa10   : > { %v1927_v30 = vpop.xlane.xlu0 %1926  ;;  %v1924_v31 = vpop.xlane.xlu1 %1923 }
 0xa11   : > { %vm1935_vm0 = vcmp.eq.f32.partialorder %v6345_v22, %v1927_v30  ;;  %vm1934_vm1 = vcmp.eq.f32.partialorder %v6347_v18, %v1924_v31 }
 0xa12   : > { %v1939_v32 = vsel %vm1935_vm0, %v6173_v56, 32.0  ;;  %v1938_v21 = vsel %vm1934_vm1, %v6173_v56, 32.0 }
 0xa13   : > { %v1945_v33 = vsel %vm1017_vm4, %v1939_v32, inf  ;;  %v1942_v34 = vsel %vm1017_vm4, %v1938_v21, inf }
 0xa14   : > { %1946 = vmin.xlane.f32.xlu0 %v1945_v33  ;;  %v1933_v35 = vpop.xlane.xlu0 %1932  ;;  %1943 = vmin.xlane.f32.xlu1 %v1942_v34  ;;  %v1930_v36 = vpop.xlane.xlu1 %1929 }
 0xa15   : > { %vm1937_vm2 = vcmp.eq.f32.partialorder %v6358_v7, %v1933_v35  ;;  %vm1936_vm3 = vcmp.eq.f32.partialorder %v6360_v25, %v1930_v36 }
 0xa16   : > { %v1941_v11 = vsel %vm1937_vm2, %v6173_v56, 32.0  ;;  %v1940_v37 = vsel %vm1936_vm3, %v6173_v56, 32.0 }
 0xa17   : > { %v1951_v38 = vsel %vm1017_vm4, %v1941_v11, inf  ;;  %v1948_v39 = vsel %vm1017_vm4, %v1940_v37, inf }
 0xa18   : > { %1952 = vmin.xlane.f32.xlu0 %v1951_v38  ;;  %1949 = vmin.xlane.f32.xlu1 %v1948_v39 }
 0xa4a   : > { %v4962_v40 = vpop.f32.mrf.mxu1 }
 0xa4b   : > { %v2203_v50 = vadd.f32 %v4962_v40, %v6392_v45 }
 0xa4c   : > { %v2138_v42 = vpop.f32.mrf.mxu1 }
 0xa4d   : > { %v2201_v48 = vadd.f32 %v2138_v42, %v6386_v43  ;;  %v2207_v54 = vmax.f32 %v2203_v50, 0.0 }
 0xa4e   : > { %v4963_v46 = vpop.f32.mrf.mxu1 }
 0xa4f   : > { %v2204_v49 = vadd.f32 %v4963_v46, %v6389_v44  ;;  %v2205_v53 = vmax.f32 %v2201_v48, 0.0 }
 0xa50   : > { %v2141_v51 = vpop.f32.mrf.mxu1 }
 0xa51   : > { %v2202_v2 = vadd.f32 %v2141_v51, %v6395_v47  ;;  %v2208_v52 = vmax.f32 %v2204_v49, 0.0 }
 0xa53   : > { %v2206_v5 = vmax.f32 %v2202_v2, 0.0  ;;  %v2234_v61 = vpack.c.bf16 %v2208_v52, %v2207_v54 }
 0xa55   : > { %v2233_v55 = vpack.c.bf16 %v2206_v5, %v2205_v53 }
 0xa57   : > { %4980 = vmatprep.mubr.msk.bf16.mxu0 %vm1017_vm4, %v2233_v55 }
 0xa58   : > { %4981 = vmatmul.mubr.msk.bf16.vlgmr.msra.gmra.mxu0 %vm1017_vm4, %v2234_v61 }
 0xa9d   : > { %v1947_v8 = vpop.xlane.xlu0 %1946  ;;  %v1944_v57 = vpop.xlane.xlu1 %1943 }
 0xa9e   : > { %vm1955_vm5 = vcmp.eq.f32.partialorder %v6173_v56, %v1947_v8  ;;  %vm1954_vm6 = vcmp.eq.f32.partialorder %v6173_v56, %v1944_v57 }
 0xa9f   : > { %v4575_v60 = vsel %vm1955_vm5, 1.0, %v5781_v12  ;;  %v4574_v62 = vsel %vm1954_vm6, 1.0, %v5781_v12 }
 0xaa0   : > { %vm1967_vm7 = vcmp.gt.f32.partialorder %v4575_v60, 0.5  ;;  %vm1966_vm8 = vcmp.gt.f32.partialorder %v4574_v62, 0.5  ;;  %v2072_v63 = vpack.c.bf16 %v4575_v60, %v4574_v62 }
 0xaa1   : > { %v1953_v1 = vpop.xlane.xlu0 %1952  ;;  %v1950_v3 = vpop.xlane.xlu1 %1949  ;;  %v6408_v4 = vsel %vm1967_vm7, 1e+30, %v6345_v22  ;;  %v6411_v9 = vsel %vm1966_vm8, 1e+30, %v6347_v18 }
 0xaa2   : > { %vm1957_vm9 = vcmp.eq.f32.partialorder %v6173_v56, %v1953_v1  ;;  %vm1956_vm10 = vcmp.eq.f32.partialorder %v6173_v56, %v1950_v3  ;;  %4964 = vmatprep.mubr.msk.bf16.mxu1 %vm1017_vm4, %v2072_v63  ;;  %v1977_v10 = vsel %vm1017_vm4, %v6408_v4, inf  ;;  %v1974_v14 = vsel %vm1017_vm4, %v6411_v9, inf }
 0xaa3   : > { %v4577_v19 = vsel %vm1957_vm9, 1.0, %v5781_v12  ;;  %v4576_v22 = vsel %vm1956_vm10, 1.0, %v5781_v12  ;;  %1978 = vmin.xlane.f32.xlu0 %v1977_v10  ;;  %1975 = vmin.xlane.f32.xlu1 %v1974_v14 }
 0xaa4   : > { %vm1969_vm11 = vcmp.gt.f32.partialorder %v4577_v19, 0.5  ;;  %vm1968_vm12 = vcmp.gt.f32.partialorder %v4576_v22, 0.5  ;;  %v2073_v18 = vpack.c.bf16 %v4577_v19, %v4576_v22 }
 0xaa5   : > { %v6423_v23 = vsel %vm1969_vm11, 1e+30, %v6358_v7  ;;  %v6426_v24 = vsel %vm1968_vm12, 1e+30, %v6360_v25 }
 0xaa6   : > { %4965 = vmatmul.mubr.msk.bf16.gmra.mxu1 %vm1017_vm4, %v2073_v18  ;;  %v1983_v16 = vsel %vm1017_vm4, %v6423_v23, inf  ;;  %v1980_v26 = vsel %vm1017_vm4, %v6426_v24, inf }
 0xaa7   : > { %1984 = vmin.xlane.f32.xlu0 %v1983_v16  ;;  %1981 = vmin.xlane.f32.xlu1 %v1980_v26 }
 0xb2c   : > { %v1979_v27 = vpop.xlane.xlu0 %1978  ;;  %v1976_v28 = vpop.xlane.xlu1 %1975 }
 0xb2d   : > { %vm1987_vm13 = vcmp.eq.f32.partialorder %v6408_v4, %v1979_v27  ;;  %vm1986_vm14 = vcmp.eq.f32.partialorder %v6411_v9, %v1976_v28 }
 0xb2e   : > { %v1991_v7 = vsel %vm1987_vm13, %v6173_v56, 32.0  ;;  %v1990_v25 = vsel %vm1986_vm14, %v6173_v56, 32.0 }
 0xb2f   : > { %v1997_v29 = vsel %vm1017_vm4, %v1991_v7, inf  ;;  %v1994_v30 = vsel %vm1017_vm4, %v1990_v25, inf }
 0xb30   : > { %1998 = vmin.xlane.f32.xlu0 %v1997_v29  ;;  %v1985_v31 = vpop.xlane.xlu0 %1984  ;;  %1995 = vmin.xlane.f32.xlu1 %v1994_v30  ;;  %v1982_v32 = vpop.xlane.xlu1 %1981 }
 0xb31   : > { %vm1989_vm15 = vcmp.eq.f32.partialorder %v6423_v23, %v1985_v31  ;;  %vm1988_vm0 = vcmp.eq.f32.partialorder %v6426_v24, %v1982_v32 }
 0xb32   : > { %v1993_v21 = vsel %vm1989_vm15, %v6173_v56, 32.0  ;;  %v1992_v33 = vsel %vm1988_vm0, %v6173_v56, 32.0 }
 0xb33   : > { %v2003_v34 = vsel %vm1017_vm4, %v1993_v21, inf  ;;  %v2000_v35 = vsel %vm1017_vm4, %v1992_v33, inf }
 0xb34   : > { %2004 = vmin.xlane.f32.xlu0 %v2003_v34  ;;  %2001 = vmin.xlane.f32.xlu1 %v2000_v35 }
 0xb66   : > { %v4966_v36 = vpop.f32.mrf.mxu1 }
 0xb67   : > { %v2211_v40 = vadd.f32 %v4966_v36, %v6392_v45 }
 0xb68   : > { %v2154_v11 = vpop.f32.mrf.mxu1 }
 0xb69   : > { %v2209_v38 = vadd.f32 %v2154_v11, %v6386_v43  ;;  %v2215_v50 = vmax.f32 %v2211_v40, 0.0 }
 0xb6a   : > { %v4967_v37 = vpop.f32.mrf.mxu1 }
 0xb6b   : > { %v2212_v39 = vadd.f32 %v4967_v37, %v6389_v44  ;;  %v2213_v48 = vmax.f32 %v2209_v38, 0.0 }
 0xb6c   : > { %v2157_v41 = vpop.f32.mrf.mxu1 }
 0xb6d   : > { %v2210_v42 = vadd.f32 %v2157_v41, %v6395_v47  ;;  %v2216_v46 = vmax.f32 %v2212_v39, 0.0 }
 0xb6f   : > { %v2214_v49 = vmax.f32 %v2210_v42, 0.0  ;;  %v2236_v2 = vpack.c.bf16 %v2216_v46, %v2215_v50 }
 0xb71   : > { %v2235_v51 = vpack.c.bf16 %v2214_v49, %v2213_v48 }
 0xb73   : > { %4984 = vmatprep.mubr.msk.bf16.mxu0 %vm1017_vm4, %v2235_v51 }
 0xb74   : > { %4985 = vmatmul.mubr.msk.bf16.gmra.mxu0 %vm1017_vm4, %v2236_v2 }
 0xbb9   : > { %v1999_v52 = vpop.xlane.xlu0 %1998  ;;  %v1996_v53 = vpop.xlane.xlu1 %1995 }
 0xbba   : > { %vm2007_vm1 = vcmp.eq.f32.partialorder %v6173_v56, %v1999_v52  ;;  %vm2006_vm2 = vcmp.eq.f32.partialorder %v6173_v56, %v1996_v53 }
 0xbbb   : > { %v4579_v5 = vsel %vm2007_vm1, 1.0, %v5781_v12  ;;  %v4578_v54 = vsel %vm2006_vm2, 1.0, %v5781_v12 }
 0xbbc   : > { %v2074_v55 = vpack.c.bf16 %v4579_v5, %v4578_v54  ;;  %vm2019_vm3 = vcmp.gt.f32.partialorder %v4579_v5, 0.5  ;;  %vm2018_vm5 = vcmp.gt.f32.partialorder %v4578_v54, 0.5 }
 0xbbd   : > { %v2005_v61 = vpop.xlane.xlu0 %2004  ;;  %v2002_v8 = vpop.xlane.xlu1 %2001  ;;  %v2023_v57 = vsel %vm2019_vm3, 1e+30, %v6408_v4  ;;  %v2022_v60 = vsel %vm2018_vm5, 1e+30, %v6411_v9 }
 0xbbe   : > { %vm2009_vm6 = vcmp.eq.f32.partialorder %v6173_v56, %v2005_v61  ;;  %vm2008_vm7 = vcmp.eq.f32.partialorder %v6173_v56, %v2002_v8  ;;  %4968 = vmatprep.mubr.msk.bf16.mxu1 %vm1017_vm4, %v2074_v55  ;;  %v2029_v62 = vsel %vm1017_vm4, %v2023_v57, inf  ;;  %v2026_v63 = vsel %vm1017_vm4, %v2022_v60, inf }
 0xbbf   : > { %v4581_v1 = vsel %vm2009_vm6, 1.0, %v5781_v12  ;;  %v4580_v3 = vsel %vm2008_vm7, 1.0, %v5781_v12  ;;  %2030 = vmin.xlane.f32.xlu0 %v2029_v62  ;;  %2027 = vmin.xlane.f32.xlu1 %v2026_v63 }
 0xbc0   : > { %v2075_v10 = vpack.c.bf16 %v4581_v1, %v4580_v3  ;;  %vm2021_vm8 = vcmp.gt.f32.partialorder %v4581_v1, 0.5  ;;  %vm2020_vm9 = vcmp.gt.f32.partialorder %v4580_v3, 0.5 }
 0xbc1   : > { %v2025_v4 = vsel %vm2021_vm8, 1e+30, %v6423_v23  ;;  %v2024_v9 = vsel %vm2020_vm9, 1e+30, %v6426_v24 }
 0xbc2   : > { %4969 = vmatmul.mubr.msk.bf16.gmra.mxu1 %vm1017_vm4, %v2075_v10  ;;  %v2035_v14 = vsel %vm1017_vm4, %v2025_v4, inf  ;;  %v2032_v19 = vsel %vm1017_vm4, %v2024_v9, inf }
 0xbc3   : > { %2036 = vmin.xlane.f32.xlu0 %v2035_v14  ;;  %2033 = vmin.xlane.f32.xlu1 %v2032_v19 }
 0xc48   : > { %v2031_v22 = vpop.xlane.xlu0 %2030  ;;  %v2028_v18 = vpop.xlane.xlu1 %2027 }
 0xc49   : > { %vm2039_vm10 = vcmp.eq.f32.partialorder %v2023_v57, %v2031_v22  ;;  %vm2038_vm11 = vcmp.eq.f32.partialorder %v2022_v60, %v2028_v18  ;;  %v5229_v22 = vld [vmem:[#allocation13 + $0x8] sm:$0xff]  }
 0xc4a   : > { %v2043_v16 = vsel %vm2039_vm10, %v6173_v56, 32.0  ;;  %v2042_v26 = vsel %vm2038_vm11, %v6173_v56, 32.0  ;;  %4996 = vmatprep.subr.bf16.mxu1 %v5229_v22 }
 0xc4b   : > { %v2049_v23 = vsel %vm1017_vm4, %v2043_v16, inf  ;;  %v2046_v24 = vsel %vm1017_vm4, %v2042_v26, inf  ;;  %4997 = vmatpush3.bf16.msra.mxu1 %v5229_v22 }
 0xc4c   : > { %2050 = vmin.xlane.f32.xlu0 %v2049_v23  ;;  %v2037_v27 = vpop.xlane.xlu0 %2036  ;;  %2047 = vmin.xlane.f32.xlu1 %v2046_v24  ;;  %v2034_v28 = vpop.xlane.xlu1 %2033 }
 0xc4d   : > { %vm2041_vm12 = vcmp.eq.f32.partialorder %v2025_v4, %v2037_v27  ;;  %vm2040_vm13 = vcmp.eq.f32.partialorder %v2024_v9, %v2034_v28 }
 0xc4e   : > { %v2045_v7 = vsel %vm2041_vm12, %v6173_v56, 32.0  ;;  %v2044_v25 = vsel %vm2040_vm13, %v6173_v56, 32.0 }
 0xc4f   : > { %v2055_v29 = vsel %vm1017_vm4, %v2045_v7, inf  ;;  %v2052_v30 = vsel %vm1017_vm4, %v2044_v25, inf }
 0xc50   : > { %2056 = vmin.xlane.f32.xlu0 %v2055_v29  ;;  %2053 = vmin.xlane.f32.xlu1 %v2052_v30 }
 0xc82   : > { %v4970_v31 = vpop.f32.mrf.mxu1 }
 0xc83   : > { %v2219_v35 = vadd.f32 %v4970_v31, %v6392_v45 }
 0xc84   : > { %v2170_v32 = vpop.f32.mrf.mxu1 }
 0xc85   : > { %v2217_v33 = vadd.f32 %v2170_v32, %v6386_v43  ;;  %v2223_v40 = vmax.f32 %v2219_v35, 0.0 }
 0xc86   : > { %v4971_v21 = vpop.f32.mrf.mxu1 }
 0xc87   : > { %v2220_v34 = vadd.f32 %v4971_v21, %v6389_v44  ;;  %v2221_v38 = vmax.f32 %v2217_v33, 0.0 }
 0xc88   : > { %v2173_v36 = vpop.f32.mrf.mxu1 }
 0xc89   : > { %v2218_v11 = vadd.f32 %v2173_v36, %v6395_v47  ;;  %v2224_v37 = vmax.f32 %v2220_v34, 0.0 }
 0xc8b   : > { %v2222_v39 = vmax.f32 %v2218_v11, 0.0  ;;  %v2238_v42 = vpack.c.bf16 %v2224_v37, %v2223_v40 }
 0xc8d   : > { %v2237_v41 = vpack.c.bf16 %v2222_v39, %v2221_v38  ;;  %v4604_v38 = vld [vmem:[#allocation12] ss:$0 sm:$0xff] }
 0xc8f   : > { %4988 = vmatprep.mubr.msk.bf16.mxu0 %vm1017_vm4, %v2237_v41 }
 0xc90   : > { %4989 = vmatmul.mubr.msk.bf16.gmra.mxu0 %vm1017_vm4, %v2238_v42 }
 0xcd5   : > { %v2051_v46 = vpop.xlane.xlu0 %2050  ;;  %v2048_v48 = vpop.xlane.xlu1 %2047 }
 0xcd6   : > { %vm2059_vm14 = vcmp.eq.f32.partialorder %v6173_v56, %v2051_v46  ;;  %vm2058_vm15 = vcmp.eq.f32.partialorder %v6173_v56, %v2048_v48 }
 0xcd7   : > { %v4583_v49 = vsel %vm2059_vm14, 1.0, %v5781_v12  ;;  %v4582_v50 = vsel %vm2058_vm15, 1.0, %v5781_v12 }
 0xcd8   : > { %v2076_v51 = vpack.c.bf16 %v4583_v49, %v4582_v50 }
 0xcd9   : > { %v2057_v2 = vpop.xlane.xlu0 %2056  ;;  %v2054_v52 = vpop.xlane.xlu1 %2053 }
 0xcda   : > { %vm2061_vm0 = vcmp.eq.f32.partialorder %v6173_v56, %v2057_v2  ;;  %vm2060_vm1 = vcmp.eq.f32.partialorder %v6173_v56, %v2054_v52  ;;  %4972 = vmatprep.mubr.msk.bf16.mxu1 %vm1017_vm4, %v2076_v51 }
 0xcdb   : > { %v4585_v53 = vsel %vm2061_vm0, 1.0, %v5781_v12  ;;  %v4584_v5 = vsel %vm2060_vm1, 1.0, %v5781_v12 }
 0xcdc   : > { %v2077_v54 = vpack.c.bf16 %v4585_v53, %v4584_v5  ;;  %v5232_v5 = vld [vmem:[#allocation15] sm:$0xff]  }
 0xcde   : > { %4973 = vmatmul.mubr.msk.bf16.gmra.mxu1 %vm1017_vm4, %v2077_v54 }
 0xd9e   : > { %v4974_v55 = vpop.f32.mrf.mxu1 }
 0xd9f   : > { %v2227_v62 = vadd.f32 %v4974_v55, %v6392_v45  ;;  %v4982_v45 = vpop.f32.mrf.mxu0 }
 0xda0   : > { %v2186_v61 = vpop.f32.mrf.mxu1 }
 0xda1   : > { %v2225_v57 = vadd.f32 %v2186_v61, %v6386_v43  ;;  %v2231_v9 = vmax.f32 %v2227_v62, 0.0  ;;  %v5230_v43 = vld [vmem:[#allocation13] sm:$0xff]  }
 0xda2   : > { %v4975_v8 = vpop.f32.mrf.mxu1  ;;  %4998 = vmatprep.subr.bf16.mxu1 %v5230_v43 }
 0xda3   : > { %v2228_v60 = vadd.f32 %v4975_v8, %v6389_v44  ;;  %v2229_v10 = vmax.f32 %v2225_v57, 0.0  ;;  %4999 = vmatpush3.bf16.msra.mxu1 %v5230_v43  ;;  %v5231_v44 = vld [vmem:[#allocation15 + $0x8] sm:$0xff]  }
 0xda4   : > { %v2189_v63 = vpop.f32.mrf.mxu1  ;;  %5004 = vmatprep.subr.bf16.mxu1 %v5231_v44 }
 0xda5   : > { %v2226_v1 = vadd.f32 %v2189_v63, %v6395_v47  ;;  %v2232_v3 = vmax.f32 %v2228_v60, 0.0  ;;  %v2315_v47 = vpop.f32.mrf.mxu0 }
 0xda7   : > { %v2230_v4 = vmax.f32 %v2226_v1, 0.0  ;;  %v2240_v19 = vpack.c.bf16 %v2232_v3, %v2231_v9  ;;  %v4983_v18 = vpop.f32.mrf.mxu0 }
 0xda9   : > { %v2239_v14 = vpack.c.bf16 %v2230_v4, %v2229_v10  ;;  %v2318_v16 = vpop.f32.mrf.mxu0 }
 0xdab   : > { %4992 = vmatprep.mubr.msk.bf16.mxu0 %vm1017_vm4, %v2239_v14  ;;  %v4986_v26 = vpop.f32.mrf.mxu0 }
 0xdac   : > { %4993 = vmatmul.mubr.msk.bf16.gmra.mxu0 %vm1017_vm4, %v2240_v19  ;;  %v2380_v32 = vmax.f32 %v4982_v45, %v4986_v26 }
 0xdad   : > { %v2331_v23 = vpop.f32.mrf.mxu0 }
 0xdae   : > { %v2378_v30 = vmax.f32 %v2315_v47, %v2331_v23 }
 0xdaf   : > { %v4987_v24 = vpop.f32.mrf.mxu0 }
 0xdb0   : > { %v2381_v21 = vmax.f32 %v4983_v18, %v4987_v24 }
 0xdb1   : > { %v2334_v27 = vpop.f32.mrf.mxu0 }
 0xdb2   : > { %v2379_v35 = vmax.f32 %v2318_v16, %v2334_v27 }
 0xdb3   : > { %v4990_v28 = vpop.f32.mrf.mxu0 }
 0xdb4   : > { %v2384_v36 = vmax.f32 %v2380_v32, %v4990_v28 }
 0xdb5   : > { %v2347_v7 = vpop.f32.mrf.mxu0 }
 0xdb6   : > { %v2382_v33 = vmax.f32 %v2378_v30, %v2347_v7 }
 0xdb7   : > { %v4991_v25 = vpop.f32.mrf.mxu0 }
 0xdb8   : > { %v2385_v11 = vmax.f32 %v2381_v21, %v4991_v25 }
 0xdb9   : > { %v2350_v29 = vpop.f32.mrf.mxu0 }
 0xdba   : > { %v2383_v40 = vmax.f32 %v2379_v35, %v2350_v29 }
 0xe6c   : > { %v4994_v31 = vpop.f32.mrf.mxu0 }
 0xe6d   : > { %v2388_v41 = vmax.f32 %v2384_v36, %v4994_v31 }
 0xe6e   : > { %v2363_v34 = vpop.f32.mrf.mxu0 }
 0xe6f   : > { %v2386_v37 = vmax.f32 %v2382_v33, %v2363_v34  ;;  %v2399_v51 = vadd.f32 %v4604_v38, %v2388_v41 }
 0xe70   : > { %v4995_v39 = vpop.f32.mrf.mxu0 }
 0xe71   : > { %v2397_v42 = vadd.f32 %v4604_v38, %v2386_v37  ;;  %v2389_v46 = vmax.f32 %v2385_v11, %v4995_v39 }
 0xe72   : > { %v2366_v48 = vpop.f32.mrf.mxu0 }
 0xe73   : > { %v2400_v49 = vadd.f32 %v4604_v38, %v2389_v46  ;;  %v2387_v50 = vmax.f32 %v2383_v40, %v2366_v48  ;;  %5020 = vmatprep.mubr.msk.f32.mxu0 %vm1017_vm4, %v2397_v42 }
 0xe75   : > { %v2398_v2 = vadd.f32 %v4604_v38, %v2387_v50  ;;  %5012 = vmatprep.subr.msk.mxu0 %vm1017_vm4, %v2400_v49  ;;  %v6505_v53 = vpack.c.bf16 %v2400_v49, %v2399_v51 }
 0xe76   : > { %5013 = vmatpush3.xpose.msk.msra.mxu0 %vm1017_vm4, %v2400_v49 }
 0xe77   : > { %5014 = vmatprep.subr.msk.mxu0 %vm1017_vm4, %v2399_v51  ;;  %v6503_v52 = vpack.c.bf16 %v2398_v2, %v2397_v42 }
 0xe79   : > { %5000 = vmatprep.mubr.msk.bf16.mxu1 %vm1017_vm4, %v6503_v52 }
 0xe7a   : > { %5001 = vmatmul.mubr.msk.bf16.vlgmr.msra.gmra.mxu1 %vm1017_vm4, %v6505_v53  ;;  %5015 = vmatpush3.xpose.msk.msra.mxu0 %vm1017_vm4, %v2399_v51 }
 0xe7b   : > { %5005 = vmatpush3.bf16.msra.mxu1 %v5231_v44  ;;  %5008 = vmatprep.mubr.msk.bf16.mxu1 %vm1017_vm4, %v6503_v52 }
 0xe7c   : > { %5016 = vmatprep.subr.msk.mxu0 %vm1017_vm4, %v2398_v2  ;;  %5006 = vmatprep.subr.bf16.mxu1 %v5232_v5 }
 0xe7e   : > { %5017 = vmatpush3.xpose.msk.msra.mxu0 %vm1017_vm4, %v2398_v2 }
 0xe7f   : > { %5007 = vmatpush3.bf16.msra.mxu1 %v5232_v5  ;;  %5018 = vmatprep.subr.msk.mxu0 %vm1017_vm4, %v2397_v42 }
 0xe82   : > { %5009 = vmatmul.mubr.msk.bf16.vlgmr.msra.gmra.mxu1 %vm1017_vm4, %v6505_v53  ;;  %5019 = vmatpush3.xpose.msk.msra.mxu0 %vm1017_vm4, %v2397_v42 }
 0xe85   : > { %5021 = vmatmul.mubr.msk.f32.vlgmr.msra.gmra.mxu0 %vm1017_vm4, %v2398_v2 }
 0xe86   : > { %5023 = vmatprep.mubr.msk.f32.mxu0 %vm1017_vm4, %v2399_v51 }
 0xe89   : > { %5024 = vmatmul.mubr.msk.f32.gmra.mxu0 %vm1017_vm4, %v2400_v49 }
 0xf3a   : > { %v6523_v54 = vpop.f32.mrf.mxu1 }
 0xf3c   : > { %v6525_v55 = vpop.f32.mrf.mxu1 }
 0xf3e   : > { %v6527_v61 = vpop.f32.mrf.mxu1 }
 0xf40   : > { %v6529_v8 = vpop.f32.mrf.mxu1 }
 0xf42   : > { %v5010_v57 = vpop.f32.mrf.mxu1 }
 0xf44   : > { %v2531_v60 = vpop.f32.mrf.mxu1 }
 0xf45   : > { %v5022_v62 = vpop.f32.mrf.mxu0 }
 0xf46   : > { %v5011_v63 = vpop.f32.mrf.mxu1  ;;  %v2644_v10 = vmul.f32 %v5022_v62, %v6139_v17  ;;  %v2661_v25 = vmul.f32 2.0, %v5022_v62 }
 0xf47   : > { %v2877_v1 = vpack.c.bf16 %v5011_v63, %v5010_v57  ;;  %v2624_v3 = vpop.f32.mrf.mxu0 }
 0xf48   : > { %v2643_v4 = vmul.f32 %v6130_v13, %v2624_v3  ;;  %v2534_v9 = vpop.f32.mrf.mxu1  ;;  %v2648_v44 = vsel %vm1017_vm4, %v2644_v10, 0.0  ;;  %v2660_v29 = vmul.f32 2.0, %v2624_v3 }
 0xf49   : > { %v2876_v14 = vpack.c.bf16 %v2534_v9, %v2531_v60  ;;  %v5025_v19 = vpop.f32.mrf.mxu0  ;;  %5026 = vmatprep.subr.bf16.mxu1 %v2877_v1 }
 0xf4a   : > { %v2647_v22 = vsel %vm1017_vm4, %v2643_v4, 0.0  ;;  %5027 = vmatpush3.bf16.msra.mxu1 %v2877_v1  ;;  %v2646_v45 = vmul.f32 %v5025_v19, %v6145_v20  ;;  %v2663_v31 = vmul.f32 2.0, %v5025_v19 }
 0xf4b   : > { %v2634_v43 = vpop.f32.mrf.mxu0  ;;  %5028 = vmatprep.subr.bf16.mxu1 %v2876_v14  ;;  %v2649_v18 = vadd.f32 %v2648_v44, %v2647_v22 }
 0xf4c   : > { %v2645_v47 = vmul.f32 %v6136_v15, %v2634_v43  ;;  %v2652_v16 = vsel %vm1017_vm4, %v2646_v45, 0.0  ;;  %v2662_v20 = vmul.f32 2.0, %v2634_v43 }
 0xf4e   : > { %v2650_v17 = vsel %vm1017_vm4, %v2645_v47, 0.0  ;;  %5029 = vmatpush3.bf16.msra.mxu1 %v2876_v14 }
 0xf4f   : > { %v2651_v13 = vadd.f32 %v2650_v17, %v2649_v18  ;;  %v5233_v17 = vld [vmem:[%s6885_s14 + $0x18] sm:$0xff]  }
 0xf50   : > { %5046 = vmatprep.subr.bf16.mxu0 %v5233_v17 }
 0xf51   : > { %v2653_v26 = vadd.f32 %v2652_v16, %v2651_v13  ;;  %5047 = vmatpush3.bf16.msra.mxu0 %v5233_v17  ;;  %v5234_v13 = vld [vmem:[%s6885_s14 + $0x10] sm:$0xff]   ;;  %v5235_v16 = vld [vmem:[%s6885_s14 + $0x8] sm:$0xff]  }
 0xf52   : > { %5048 = vmatprep.subr.bf16.mxu0 %v5234_v13 }
 0xf53   : > { %v2654_v23 = vrot.slane %v2653_v26, 4 }
 0xf55   : > { %v2655_v24 = vadd.f32 %v2654_v23, %v2653_v26  ;;  %5049 = vmatpush3.bf16.msra.mxu0 %v5234_v13  ;;  %v5236_v26 = vld [vmem:[%s6885_s14] sm:$0xff]  }
 0xf56   : > { %5050 = vmatprep.subr.bf16.mxu0 %v5235_v16 }
 0xf57   : > { %v2656_v27 = vrot.slane %v2655_v24, 2 }
 0xf59   : > { %v2657_v28 = vadd.f32 %v2656_v27, %v2655_v24  ;;  %5051 = vmatpush3.bf16.msra.mxu0 %v5235_v16 }
 0xf5a   : > { %5052 = vmatprep.subr.bf16.mxu0 %v5236_v26 }
 0xf5b   : > { %v2658_v7 = vrot.slane %v2657_v28, 1 }
 0xf5d   : > { %v2659_v30 = vadd.f32 %v2658_v7, %v2657_v28  ;;  %5053 = vmatpush3.bf16.msra.mxu0 %v5236_v26 }
 0xf5f   : > { %v2665_v32 = vsub.f32 %v2659_v30, %v2661_v25  ;;  %v2664_v15 = vsub.f32 %v2659_v30, %v2660_v29  ;;  %v2666_v21 = vsub.f32 %v2659_v30, %v2662_v20  ;;  %v2667_v35 = vsub.f32 %v2659_v30, %v2663_v31 }
 0xf61   : > { %v2671_v33 = vsel %vm1017_vm4, %v2665_v32, inf  ;;  %v2668_v34 = vsel %vm1017_vm4, %v2664_v15, inf  ;;  %v2677_v36 = vsel %vm1017_vm4, %v2667_v35, inf  ;;  %v2674_v11 = vsel %vm1017_vm4, %v2666_v21, inf }
 0xf62   : > { %2672 = vmin.xlane.f32.xlu0 %v2671_v33  ;;  %2669 = vmin.xlane.f32.xlu1 %v2668_v34  ;;  %v4605_v33 = vld [vmem:[#allocation16] ss:$0 sm:$0xff] }
 0xf66   : > { %2678 = vmin.xlane.f32.xlu0 %v2677_v36  ;;  %2675 = vmin.xlane.f32.xlu1 %v2674_v11  ;;  %v6605_v36 = vadd.f32 %v6527_v61, %v4605_v33  ;;  %v6608_v11 = vadd.f32 %v6523_v54, %v4605_v33 }
 0xfeb   : > { %v2673_v37 = vpop.xlane.xlu0 %2672  ;;  %v2670_v38 = vpop.xlane.xlu1 %2669 }
 0xfec   : > { %vm2681_vm2 = vcmp.eq.f32.partialorder %v2665_v32, %v2673_v37  ;;  %vm2680_vm3 = vcmp.eq.f32.partialorder %v2664_v15, %v2670_v38  ;;  %v6611_v38 = vadd.f32 %v4605_v33, %v6529_v8 }
 0xfed   : > { %v2685_v39 = vsel %vm2681_vm2, %v6173_v56, 32.0  ;;  %v2684_v40 = vsel %vm2680_vm3, %v6173_v56, 32.0  ;;  %vm3071_vm3 = vcmask 523264  }
 0xfee   : > { %v2691_v41 = vsel %vm1017_vm4, %v2685_v39, inf  ;;  %v2688_v42 = vsel %vm1017_vm4, %v2684_v40, inf }
 0xfef   : > { %2692 = vmin.xlane.f32.xlu0 %v2691_v41  ;;  %v2679_v46 = vpop.xlane.xlu0 %2678  ;;  %2689 = vmin.xlane.f32.xlu1 %v2688_v42  ;;  %v2676_v48 = vpop.xlane.xlu1 %2675 }
 0xff0   : > { %vm2683_vm5 = vcmp.eq.f32.partialorder %v2667_v35, %v2679_v46  ;;  %vm2682_vm6 = vcmp.eq.f32.partialorder %v2666_v21, %v2676_v48 }
 0xff1   : > { %v2687_v49 = vsel %vm2683_vm5, %v6173_v56, 32.0  ;;  %v2686_v50 = vsel %vm2682_vm6, %v6173_v56, 32.0 }
 0xff2   : > { %v2697_v51 = vsel %vm1017_vm4, %v2687_v49, inf  ;;  %v2694_v2 = vsel %vm1017_vm4, %v2686_v50, inf }
 0xff3   : > { %2698 = vmin.xlane.f32.xlu0 %v2697_v51  ;;  %2695 = vmin.xlane.f32.xlu1 %v2694_v2 }
0x1078   : > { %v2693_v5 = vpop.xlane.xlu0 %2692  ;;  %v2690_v57 = vpop.xlane.xlu1 %2689 }
0x1079   : > { %vm2701_vm7 = vcmp.eq.f32.partialorder %v6173_v56, %v2693_v5  ;;  %vm2700_vm8 = vcmp.eq.f32.partialorder %v6173_v56, %v2690_v57 }
0x107a   : > { %v4623_v60 = vsel %vm2701_vm7, 1.0, %v5781_v12  ;;  %v4622_v62 = vsel %vm2700_vm8, 1.0, %v5781_v12 }
0x107b   : > { %vm2713_vm9 = vcmp.gt.f32.partialorder %v4623_v60, 0.5  ;;  %vm2712_vm10 = vcmp.gt.f32.partialorder %v4622_v62, 0.5  ;;  %v2868_v63 = vpack.c.bf16 %v4623_v60, %v4622_v62 }
0x107c   : > { %v2699_v1 = vpop.xlane.xlu0 %2698  ;;  %v2696_v3 = vpop.xlane.xlu1 %2695  ;;  %v6555_v10 = vsel %vm2713_vm9, 1e+30, %v2665_v32  ;;  %v6557_v4 = vsel %vm2712_vm10, 1e+30, %v2664_v15 }
0x107d   : > { %vm2703_vm11 = vcmp.eq.f32.partialorder %v6173_v56, %v2699_v1  ;;  %vm2702_vm12 = vcmp.eq.f32.partialorder %v6173_v56, %v2696_v3  ;;  %5030 = vmatprep.mubr.msk.bf16.mxu1 %vm1017_vm4, %v2868_v63  ;;  %v2723_v9 = vsel %vm1017_vm4, %v6555_v10, inf  ;;  %v2720_v14 = vsel %vm1017_vm4, %v6557_v4, inf }
0x107e   : > { %v4625_v19 = vsel %vm2703_vm11, 1.0, %v5781_v12  ;;  %v4624_v22 = vsel %vm2702_vm12, 1.0, %v5781_v12  ;;  %2724 = vmin.xlane.f32.xlu0 %v2723_v9  ;;  %2721 = vmin.xlane.f32.xlu1 %v2720_v14 }
0x107f   : > { %vm2715_vm13 = vcmp.gt.f32.partialorder %v4625_v19, 0.5  ;;  %vm2714_vm14 = vcmp.gt.f32.partialorder %v4624_v22, 0.5  ;;  %v2869_v43 = vpack.c.bf16 %v4625_v19, %v4624_v22 }
0x1080   : > { %v6568_v44 = vsel %vm2715_vm13, 1e+30, %v2667_v35  ;;  %v6570_v45 = vsel %vm2714_vm14, 1e+30, %v2666_v21  ;;  %v6602_v35 = vadd.f32 %v4605_v33, %v6525_v55 }
0x1081   : > { %5031 = vmatmul.mubr.msk.bf16.vlgmr.msra.gmra.mxu1 %vm1017_vm4, %v2869_v43  ;;  %v2729_v47 = vsel %vm1017_vm4, %v6568_v44, inf  ;;  %v2726_v18 = vsel %vm1017_vm4, %v6570_v45, inf }
0x1082   : > { %2730 = vmin.xlane.f32.xlu0 %v2729_v47  ;;  %2727 = vmin.xlane.f32.xlu1 %v2726_v18 }
0x1107   : > { %v2725_v23 = vpop.xlane.xlu0 %2724  ;;  %v2722_v24 = vpop.xlane.xlu1 %2721 }
0x1108   : > { %vm2733_vm15 = vcmp.eq.f32.partialorder %v6555_v10, %v2725_v23  ;;  %vm2732_vm0 = vcmp.eq.f32.partialorder %v6557_v4, %v2722_v24 }
0x1109   : > { %v2737_v27 = vsel %vm2733_vm15, %v6173_v56, 32.0  ;;  %v2736_v28 = vsel %vm2732_vm0, %v6173_v56, 32.0 }
0x110a   : > { %v2743_v7 = vsel %vm1017_vm4, %v2737_v27, inf  ;;  %v2740_v25 = vsel %vm1017_vm4, %v2736_v28, inf }
0x110b   : > { %2744 = vmin.xlane.f32.xlu0 %v2743_v7  ;;  %v2731_v29 = vpop.xlane.xlu0 %2730  ;;  %2741 = vmin.xlane.f32.xlu1 %v2740_v25  ;;  %v2728_v30 = vpop.xlane.xlu1 %2727 }
0x110c   : > { %vm2735_vm1 = vcmp.eq.f32.partialorder %v6568_v44, %v2731_v29  ;;  %vm2734_vm2 = vcmp.eq.f32.partialorder %v6570_v45, %v2728_v30 }
0x110d   : > { %v2739_v31 = vsel %vm2735_vm1, %v6173_v56, 32.0  ;;  %v2738_v20 = vsel %vm2734_vm2, %v6173_v56, 32.0 }
0x110e   : > { %v2749_v32 = vsel %vm1017_vm4, %v2739_v31, inf  ;;  %v2746_v15 = vsel %vm1017_vm4, %v2738_v20, inf }
0x110f   : > { %2750 = vmin.xlane.f32.xlu0 %v2749_v32  ;;  %2747 = vmin.xlane.f32.xlu1 %v2746_v15 }
0x1141   : > { %v5032_v21 = vpop.f32.mrf.mxu1 }
0x1142   : > { %v3001_v41 = vadd.f32 %v5032_v21, %v6608_v11 }
0x1143   : > { %v2936_v34 = vpop.f32.mrf.mxu1 }
0x1144   : > { %v2999_v39 = vadd.f32 %v2936_v34, %v6602_v35  ;;  %v3005_v49 = vmax.f32 %v3001_v41, 0.0 }
0x1145   : > { %v5033_v37 = vpop.f32.mrf.mxu1 }
0x1146   : > { %v3002_v40 = vadd.f32 %v5033_v37, %v6605_v36  ;;  %v3003_v48 = vmax.f32 %v2999_v39, 0.0 }
0x1147   : > { %v2939_v42 = vpop.f32.mrf.mxu1 }
0x1148   : > { %v3000_v55 = vadd.f32 %v2939_v42, %v6611_v38  ;;  %v3006_v46 = vmax.f32 %v3002_v40, 0.0 }
0x114a   : > { %v3004_v61 = vmax.f32 %v3000_v55, 0.0  ;;  %v3032_v50 = vpack.c.bf16 %v3006_v46, %v3005_v49 }
0x114c   : > { %v3031_v54 = vpack.c.bf16 %v3004_v61, %v3003_v48 }
0x114e   : > { %5054 = vmatprep.mubr.msk.bf16.mxu0 %vm3071_vm3, %v3031_v54 }
0x114f   : > { %5055 = vmatmul.mubr.msk.bf16.vlgmr.msra.gmra.mxu0 %vm3071_vm3, %v3032_v50 }
0x1194   : > { %v2745_v8 = vpop.xlane.xlu0 %2744  ;;  %v2742_v51 = vpop.xlane.xlu1 %2741 }
0x1195   : > { %vm2753_vm5 = vcmp.eq.f32.partialorder %v6173_v56, %v2745_v8  ;;  %vm2752_vm6 = vcmp.eq.f32.partialorder %v6173_v56, %v2742_v51 }
0x1196   : > { %v4627_v2 = vsel %vm2753_vm5, 1.0, %v5781_v12  ;;  %v4626_v5 = vsel %vm2752_vm6, 1.0, %v5781_v12 }
0x1197   : > { %vm2765_vm7 = vcmp.gt.f32.partialorder %v4627_v2, 0.5  ;;  %vm2764_vm8 = vcmp.gt.f32.partialorder %v4626_v5, 0.5  ;;  %v2870_v57 = vpack.c.bf16 %v4627_v2, %v4626_v5 }
0x1198   : > { %v2751_v60 = vpop.xlane.xlu0 %2750  ;;  %v2748_v62 = vpop.xlane.xlu1 %2747  ;;  %v6624_v63 = vsel %vm2765_vm7, 1e+30, %v6555_v10  ;;  %v6627_v1 = vsel %vm2764_vm8, 1e+30, %v6557_v4 }
0x1199   : > { %vm2755_vm9 = vcmp.eq.f32.partialorder %v6173_v56, %v2751_v60  ;;  %vm2754_vm10 = vcmp.eq.f32.partialorder %v6173_v56, %v2748_v62  ;;  %5034 = vmatprep.mubr.msk.bf16.mxu1 %vm1017_vm4, %v2870_v57  ;;  %v2775_v3 = vsel %vm1017_vm4, %v6624_v63, inf  ;;  %v2772_v9 = vsel %vm1017_vm4, %v6627_v1, inf }
0x119a   : > { %v4629_v14 = vsel %vm2755_vm9, 1.0, %v5781_v12  ;;  %v4628_v10 = vsel %vm2754_vm10, 1.0, %v5781_v12  ;;  %2776 = vmin.xlane.f32.xlu0 %v2775_v3  ;;  %2773 = vmin.xlane.f32.xlu1 %v2772_v9 }
0x119b   : > { %vm2767_vm11 = vcmp.gt.f32.partialorder %v4629_v14, 0.5  ;;  %vm2766_vm12 = vcmp.gt.f32.partialorder %v4628_v10, 0.5  ;;  %v2871_v4 = vpack.c.bf16 %v4629_v14, %v4628_v10 }
0x119c   : > { %v6639_v19 = vsel %vm2767_vm11, 1e+30, %v6568_v44  ;;  %v6642_v22 = vsel %vm2766_vm12, 1e+30, %v6570_v45 }
0x119d   : > { %5035 = vmatmul.mubr.msk.bf16.gmra.mxu1 %vm1017_vm4, %v2871_v4  ;;  %v2781_v43 = vsel %vm1017_vm4, %v6639_v19, inf  ;;  %v2778_v47 = vsel %vm1017_vm4, %v6642_v22, inf }
0x119e   : > { %2782 = vmin.xlane.f32.xlu0 %v2781_v43  ;;  %2779 = vmin.xlane.f32.xlu1 %v2778_v47 }
0x1223   : > { %v2777_v18 = vpop.xlane.xlu0 %2776  ;;  %v2774_v17 = vpop.xlane.xlu1 %2773 }
0x1224   : > { %vm2785_vm13 = vcmp.eq.f32.partialorder %v6624_v63, %v2777_v18  ;;  %vm2784_vm14 = vcmp.eq.f32.partialorder %v6627_v1, %v2774_v17 }
0x1225   : > { %v2789_v44 = vsel %vm2785_vm13, %v6173_v56, 32.0  ;;  %v2788_v45 = vsel %vm2784_vm14, %v6173_v56, 32.0 }
0x1226   : > { %v2795_v13 = vsel %vm1017_vm4, %v2789_v44, inf  ;;  %v2792_v16 = vsel %vm1017_vm4, %v2788_v45, inf }
0x1227   : > { %2796 = vmin.xlane.f32.xlu0 %v2795_v13  ;;  %v2783_v26 = vpop.xlane.xlu0 %2782  ;;  %2793 = vmin.xlane.f32.xlu1 %v2792_v16  ;;  %v2780_v23 = vpop.xlane.xlu1 %2779  ;;  %v5239_v13 = vld [vmem:[%s6888_s17 + $0x14] ss:$8 sps:$4 sm:$0xff]   ;;  %v5237_v16 = vld [vmem:[%s6888_s17 + $0x10] ss:$8 sps:$4 sm:$0xff]  }
0x1228   : > { %vm2787_vm15 = vcmp.eq.f32.partialorder %v6639_v19, %v2783_v26  ;;  %vm2786_vm0 = vcmp.eq.f32.partialorder %v6642_v22, %v2780_v23  ;;  %v5242_v26 = vld [vmem:[%s6888_s17 + $0x4] ss:$8 sps:$4 sm:$0xff]   ;;  %3256 = vmatprep.subr.bf16.mxu1 %v5239_v13  ;;  %v5240_v23 = vld [vmem:[%s6888_s17] ss:$8 sps:$4 sm:$0xff]   ;;  %v5275_v13 = vld [vmem:[#allocation19 + $0x34] ss:$8 sps:$4 sm:$0xff]  }
0x1229   : > { %v2791_v24 = vsel %vm2787_vm15, %v6173_v56, 32.0  ;;  %v2790_v27 = vsel %vm2786_vm0, %v6173_v56, 32.0  ;;  %3257 = vmatpush1.bf16.msra.mxu1 %v5237_v16  ;;  %v5273_v16 = vld [vmem:[#allocation19 + $0x30] ss:$8 sps:$4 sm:$0xff]  }
0x122a   : > { %v2801_v28 = vsel %vm1017_vm4, %v2791_v24, inf  ;;  %v2798_v7 = vsel %vm1017_vm4, %v2790_v27, inf  ;;  %3258 = vmatprep.subr.bf16.mxu1 %v5242_v26  ;;  %v5278_v26 = vld [vmem:[#allocation19 + $0x24] ss:$8 sps:$4 sm:$0xff]  }
0x122b   : > { %2802 = vmin.xlane.f32.xlu0 %v2801_v28  ;;  %2799 = vmin.xlane.f32.xlu1 %v2798_v7 }
0x122d   : > { %3259 = vmatpush1.bf16.msra.mxu1 %v5240_v23  ;;  %v5276_v23 = vld [vmem:[#allocation19 + $0x20] ss:$8 sps:$4 sm:$0xff]  }
0x125d   : > { %v5036_v25 = vpop.f32.mrf.mxu1 }
0x125e   : > { %v3009_v32 = vadd.f32 %v5036_v25, %v6608_v11 }
0x125f   : > { %v2952_v29 = vpop.f32.mrf.mxu1 }
0x1260   : > { %v3007_v31 = vadd.f32 %v2952_v29, %v6602_v35  ;;  %v3013_v39 = vmax.f32 %v3009_v32, 0.0 }
0x1261   : > { %v5037_v30 = vpop.f32.mrf.mxu1 }
0x1262   : > { %v3010_v20 = vadd.f32 %v5037_v30, %v6605_v36  ;;  %v3011_v34 = vmax.f32 %v3007_v31, 0.0 }
0x1263   : > { %v2955_v15 = vpop.f32.mrf.mxu1 }
0x1264   : > { %v3008_v21 = vadd.f32 %v2955_v15, %v6611_v38  ;;  %v3014_v33 = vmax.f32 %v3010_v20, 0.0 }
0x1266   : > { %v3012_v37 = vmax.f32 %v3008_v21, 0.0  ;;  %v3034_v41 = vpack.c.bf16 %v3014_v33, %v3013_v39 }
0x1268   : > { %v3033_v40 = vpack.c.bf16 %v3012_v37, %v3011_v34 }
0x126a   : > { %5058 = vmatprep.mubr.msk.bf16.mxu0 %vm3071_vm3, %v3033_v40 }
0x126b   : > { %5059 = vmatmul.mubr.msk.bf16.gmra.mxu0 %vm3071_vm3, %v3034_v41 }
0x12b0   : > { %v2797_v42 = vpop.xlane.xlu0 %2796  ;;  %v2794_v55 = vpop.xlane.xlu1 %2793 }
0x12b1   : > { %vm2805_vm1 = vcmp.eq.f32.partialorder %v6173_v56, %v2797_v42  ;;  %vm2804_vm2 = vcmp.eq.f32.partialorder %v6173_v56, %v2794_v55 }
0x12b2   : > { %v4631_v46 = vsel %vm2805_vm1, 1.0, %v5781_v12  ;;  %v4630_v48 = vsel %vm2804_vm2, 1.0, %v5781_v12 }
0x12b3   : > { %v2872_v61 = vpack.c.bf16 %v4631_v46, %v4630_v48  ;;  %vm2817_vm5 = vcmp.gt.f32.partialorder %v4631_v46, 0.5  ;;  %vm2816_vm6 = vcmp.gt.f32.partialorder %v4630_v48, 0.5 }
0x12b4   : > { %v2803_v49 = vpop.xlane.xlu0 %2802  ;;  %v2800_v54 = vpop.xlane.xlu1 %2799  ;;  %v2821_v50 = vsel %vm2817_vm5, 1e+30, %v6624_v63  ;;  %v2820_v8 = vsel %vm2816_vm6, 1e+30, %v6627_v1 }
0x12b5   : > { %vm2807_vm7 = vcmp.eq.f32.partialorder %v6173_v56, %v2803_v49  ;;  %vm2806_vm8 = vcmp.eq.f32.partialorder %v6173_v56, %v2800_v54  ;;  %5038 = vmatprep.mubr.msk.bf16.mxu1 %vm1017_vm4, %v2872_v61  ;;  %v2827_v51 = vsel %vm1017_vm4, %v2821_v50, inf  ;;  %v2824_v2 = vsel %vm1017_vm4, %v2820_v8, inf  ;;  %v5249_v54 = vld [vmem:[%s6889_s18 + $0x30] ss:$8 sps:$4 sm:$0xff]  }
0x12b6   : > { %v4633_v5 = vsel %vm2807_vm7, 1.0, %v5781_v12  ;;  %v4632_v57 = vsel %vm2806_vm8, 1.0, %v5781_v12  ;;  %2828 = vmin.xlane.f32.xlu0 %v2827_v51  ;;  %2825 = vmin.xlane.f32.xlu1 %v2824_v2 }
0x12b7   : > { %v2873_v60 = vpack.c.bf16 %v4633_v5, %v4632_v57  ;;  %vm2819_vm9 = vcmp.gt.f32.partialorder %v4633_v5, 0.5  ;;  %vm2818_vm10 = vcmp.gt.f32.partialorder %v4632_v57, 0.5 }
0x12b8   : > { %v2823_v62 = vsel %vm2819_vm9, 1e+30, %v6639_v19  ;;  %v2822_v63 = vsel %vm2818_vm10, 1e+30, %v6642_v22 }
0x12b9   : > { %5039 = vmatmul.mubr.msk.bf16.gmra.mxu1 %vm1017_vm4, %v2873_v60  ;;  %v2833_v1 = vsel %vm1017_vm4, %v2823_v62, inf  ;;  %v2830_v3 = vsel %vm1017_vm4, %v2822_v63, inf }
0x12ba   : > { %2834 = vmin.xlane.f32.xlu0 %v2833_v1  ;;  %2831 = vmin.xlane.f32.xlu1 %v2830_v3 }
0x133f   : > { %v2829_v9 = vpop.xlane.xlu0 %2828  ;;  %v2826_v14 = vpop.xlane.xlu1 %2825 }
0x1340   : > { %vm2837_vm11 = vcmp.eq.f32.partialorder %v2821_v50, %v2829_v9  ;;  %vm2836_vm12 = vcmp.eq.f32.partialorder %v2820_v8, %v2826_v14  ;;  %v5251_v50 = vld [vmem:[%s6889_s18 + $0x34] ss:$8 sps:$4 sm:$0xff]  }
0x1341   : > { %v2841_v10 = vsel %vm2837_vm11, %v6173_v56, 32.0  ;;  %v2840_v4 = vsel %vm2836_vm12, %v6173_v56, 32.0  ;;  %3434 = vmatprep.subr.bf16.mxu1 %v5251_v50 }
0x1342   : > { %v2847_v19 = vsel %vm1017_vm4, %v2841_v10, inf  ;;  %v2844_v22 = vsel %vm1017_vm4, %v2840_v4, inf }
0x1343   : > { %2848 = vmin.xlane.f32.xlu0 %v2847_v19  ;;  %v2835_v43 = vpop.xlane.xlu0 %2834  ;;  %2845 = vmin.xlane.f32.xlu1 %v2844_v22  ;;  %v2832_v47 = vpop.xlane.xlu1 %2831  ;;  %v5261_v19 = vld [vmem:[#allocation19 + $0x70] ss:$8 sps:$4 sm:$0xff]   ;;  %v5263_v22 = vld [vmem:[#allocation19 + $0x74] ss:$8 sps:$4 sm:$0xff]  }
0x1344   : > { %vm2839_vm13 = vcmp.eq.f32.partialorder %v2823_v62, %v2835_v43  ;;  %vm2838_vm14 = vcmp.eq.f32.partialorder %v2822_v63, %v2832_v47  ;;  %v5266_v43 = vld [vmem:[#allocation19 + $0x64] ss:$8 sps:$4 sm:$0xff]   ;;  %v5264_v47 = vld [vmem:[#allocation19 + $0x60] ss:$8 sps:$4 sm:$0xff]  }
0x1345   : > { %v2843_v18 = vsel %vm2839_vm13, %v6173_v56, 32.0  ;;  %v2842_v17 = vsel %vm2838_vm14, %v6173_v56, 32.0 }
0x1346   : > { %v2853_v44 = vsel %vm1017_vm4, %v2843_v18, inf  ;;  %v2850_v45 = vsel %vm1017_vm4, %v2842_v17, inf  ;;  %v5269_v18 = vld [vmem:[#allocation19 + $0x54] ss:$8 sps:$4 sm:$0xff]   ;;  %v5267_v17 = vld [vmem:[#allocation19 + $0x50] ss:$8 sps:$4 sm:$0xff]  }
0x1347   : > { %2854 = vmin.xlane.f32.xlu0 %v2853_v44  ;;  %2851 = vmin.xlane.f32.xlu1 %v2850_v45  ;;  %v5272_v44 = vld [vmem:[#allocation19 + $0x44] ss:$8 sps:$4 sm:$0xff]   ;;  %v5270_v45 = vld [vmem:[#allocation19 + $0x40] ss:$8 sps:$4 sm:$0xff]  }
0x1379   : > { %v5040_v24 = vpop.f32.mrf.mxu1 }
0x137a   : > { %v3017_v29 = vadd.f32 %v5040_v24, %v6608_v11  ;;  %v5281_v24 = vld [vmem:[#allocation19 + $0x14] ss:$8 sps:$4 sm:$0xff]  }
0x137b   : > { %v2968_v27 = vpop.f32.mrf.mxu1 }
0x137c   : > { %v3015_v7 = vadd.f32 %v2968_v27, %v6602_v35  ;;  %v3021_v21 = vmax.f32 %v3017_v29, 0.0  ;;  %v5279_v27 = vld [vmem:[#allocation19 + $0x10] ss:$8 sps:$4 sm:$0xff]  }
0x137d   : > { %v5041_v28 = vpop.f32.mrf.mxu1  ;;  %v5285_v29 = vld [vmem:[#allocation19 + $0xf0] ss:$8 sps:$4 sm:$0xff]  }
0x137e   : > { %v3018_v25 = vadd.f32 %v5041_v28, %v6605_v36  ;;  %v3019_v32 = vmax.f32 %v3015_v7, 0.0  ;;  %v5284_v28 = vld [vmem:[#allocation19 + $0x4] ss:$8 sps:$4 sm:$0xff]   ;;  %v5282_v7 = vld [vmem:[#allocation19] ss:$8 sps:$4 sm:$0xff]  }
0x137f   : > { %v2971_v30 = vpop.f32.mrf.mxu1 }
0x1380   : > { %v3016_v31 = vadd.f32 %v2971_v30, %v6611_v38  ;;  %v3022_v20 = vmax.f32 %v3018_v25, 0.0  ;;  %v5287_v25 = vld [vmem:[#allocation19 + $0xf4] ss:$8 sps:$4 sm:$0xff]   ;;  %v5290_v30 = vld [vmem:[#allocation19 + $0xe4] ss:$8 sps:$4 sm:$0xff]  }
0x1382   : > { %v3020_v15 = vmax.f32 %v3016_v31, 0.0  ;;  %v3036_v34 = vpack.c.bf16 %v3022_v20, %v3021_v21  ;;  %v5288_v31 = vld [vmem:[#allocation19 + $0xe0] ss:$8 sps:$4 sm:$0xff]   ;;  %v5293_v20 = vld [vmem:[#allocation19 + $0xd4] ss:$8 sps:$4 sm:$0xff]  }
0x1383   : > { %v5294_v21 = vld [vmem:[#allocation19 + $0xc0] ss:$8 sps:$4 sm:$0xff]  }
0x1384   : > { %v3035_v33 = vpack.c.bf16 %v3020_v15, %v3019_v32  ;;  %v5291_v32 = vld [vmem:[#allocation19 + $0xd0] ss:$8 sps:$4 sm:$0xff]   ;;  %v5296_v15 = vld [vmem:[#allocation19 + $0xc4] ss:$8 sps:$4 sm:$0xff]  }
0x1386   : > { %5062 = vmatprep.mubr.msk.bf16.mxu0 %vm3071_vm3, %v3035_v33  ;;  %v5056_v33 = vpop.f32.mrf.mxu0 }
0x1387   : > { %5063 = vmatmul.mubr.msk.bf16.gmra.mxu0 %vm3071_vm3, %v3036_v34 }
0x1388   : > { %v3130_v34 = vpop.f32.mrf.mxu0 }
0x13cc   : > { %v2849_v37 = vpop.xlane.xlu0 %2848  ;;  %v2846_v39 = vpop.xlane.xlu1 %2845 }
0x13cd   : > { %vm2857_vm15 = vcmp.eq.f32.partialorder %v6173_v56, %v2849_v37  ;;  %vm2856_vm0 = vcmp.eq.f32.partialorder %v6173_v56, %v2846_v39  ;;  %v5057_v37 = vpop.f32.mrf.mxu0 }
0x13ce   : > { %v4635_v40 = vsel %vm2857_vm15, 1.0, %v5781_v12  ;;  %v4634_v41 = vsel %vm2856_vm0, 1.0, %v5781_v12 }
0x13cf   : > { %v2874_v42 = vpack.c.bf16 %v4635_v40, %v4634_v41  ;;  %v3133_v39 = vpop.f32.mrf.mxu0 }
0x13d0   : > { %v2855_v55 = vpop.xlane.xlu0 %2854  ;;  %v2852_v46 = vpop.xlane.xlu1 %2851 }
0x13d1   : > { %vm2859_vm1 = vcmp.eq.f32.partialorder %v6173_v56, %v2855_v55  ;;  %vm2858_vm2 = vcmp.eq.f32.partialorder %v6173_v56, %v2852_v46  ;;  %5042 = vmatprep.mubr.msk.bf16.mxu1 %vm1017_vm4, %v2874_v42  ;;  %v5245_v56 = vld [vmem:[%s6887_s16 + $0x14] ss:$8 sps:$4 sm:$0xff]   ;;  %v5060_v40 = vpop.f32.mrf.mxu0 }
0x13d2   : > { %v4637_v48 = vsel %vm2859_vm1, 1.0, %v5781_v12  ;;  %v4636_v61 = vsel %vm2858_vm2, 1.0, %v5781_v12  ;;  %v5243_v12 = vld [vmem:[%s6887_s16 + $0x10] ss:$8 sps:$4 sm:$0xff]   ;;  %3329 = vmatprep.subr.bf16.mxu0 %v5245_v56 }
0x13d3   : > { %v2875_v49 = vpack.c.bf16 %v4637_v48, %v4636_v61  ;;  %3330 = vmatpush1.bf16.msra.mxu0 %v5243_v12  ;;  %v3146_v41 = vpop.f32.mrf.mxu0 }
0x13d4   : > { %v3193_v12 = vmax.f32 %v3130_v34, %v3146_v41  ;;  %v5339_v34 = vld [vmem:[#allocation21 + $0xd0] ss:$8 sps:$4 sm:$0xff]  }
0x13d5   : > { %5043 = vmatmul.mubr.msk.bf16.gmra.mxu1 %vm1017_vm4, %v2875_v49  ;;  %v5061_v42 = vpop.f32.mrf.mxu0  ;;  %v5345_v41 = vld [vmem:[#allocation21 + $0xb0] ss:$8 sps:$4 sm:$0xff]  }
0x13d6   : > { %3276 = vmatprep.mubr.bf16.mxu1 %v5780_v0 }
0x13d7   : > { %v3149_v55 = vpop.f32.mrf.mxu0 }
0x13dd   : > { %4663 = vmatmul.mubr.msk.bf16.vlgmr.msra.gmra.mxu1 %vm1017_vm4, %v6503_v52  ;;  %v5248_v52 = vld [vmem:[%s6887_s16 + $0x4] ss:$8 sps:$4 sm:$0xff]  }
0x13de   : > { %3286 = vmatprep.mubr.bf16.mxu1 %v5780_v0  ;;  %3331 = vmatprep.subr.bf16.mxu0 %v5248_v52 }
0x13df   : > { %3435 = vmatpush1.bf16.msra.mxu1 %v5249_v54 }
0x13e5   : > { %4664 = vmatmul.mubr.msk.bf16.gmra.mxu1 %vm1017_vm4, %v6505_v53  ;;  %v5246_v53 = vld [vmem:[%s6887_s16] ss:$8 sps:$4 sm:$0xff]  }
0x13e6   : > { %3458 = vmatprep.mubr.bf16.mxu1 %v5780_v0  ;;  %3332 = vmatpush1.bf16.msra.mxu0 %v5246_v53  ;;  %v3194_v53 = vmax.f32 %v3133_v39, %v3149_v55  ;;  %v5342_v39 = vld [vmem:[#allocation21 + $0xc0] ss:$8 sps:$4 sm:$0xff]  }
0x13e7   : > { %3723 = vmatprep.subr.bf16.mxu0 %v5263_v22  ;;  %v5305_v22 = vld [vmem:[#allocation19 + $0x94] ss:$8 sps:$4 sm:$0xff]  }
0x1447   : > { %v5064_v46 = vpop.f32.mrf.mxu0 }
0x1449   : > { %v3162_v48 = vpop.f32.mrf.mxu0 }
0x144a   : > { %v3197_v54 = vmax.f32 %v3193_v12, %v3162_v48 }
0x144b   : > { %v5065_v61 = vpop.f32.mrf.mxu0 }
0x144d   : > { %v3165_v49 = vpop.f32.mrf.mxu0 }
0x1495   : > { %v5044_v8 = vpop.f32.mrf.mxu1 }
0x1496   : > { %v3025_v60 = vadd.f32 %v5044_v8, %v6608_v11  ;;  %v5257_v11 = vld [vmem:[%s6889_s18 + $0x14] ss:$8 sps:$4 sm:$0xff]   ;;  %v3198_v8 = vmax.f32 %v3194_v53, %v3165_v49 }
0x1497   : > { %v2984_v51 = vpop.f32.mrf.mxu1 }
0x1498   : > { %v3023_v5 = vadd.f32 %v2984_v51, %v6602_v35  ;;  %v3029_v14 = vmax.f32 %v3025_v60, 0.0  ;;  %v5254_v35 = vld [vmem:[%s6889_s18 + $0x24] ss:$8 sps:$4 sm:$0xff]   ;;  %v4658_v60 = vld [vmem:[#allocation18] ss:$0 sm:$0xff] }
0x1499   : > { %v5045_v2 = vpop.f32.mrf.mxu1  ;;  %3436 = vmatprep.subr.bf16.mxu1 %v5254_v35 }
0x149a   : > { %v3026_v57 = vadd.f32 %v5045_v2, %v6605_v36  ;;  %v3027_v3 = vmax.f32 %v3023_v5, 0.0  ;;  %v5252_v36 = vld [vmem:[%s6889_s18 + $0x20] ss:$8 sps:$4 sm:$0xff]   ;;  %v3196_v5 = vmax.f32 %v5057_v37, %v5061_v42  ;;  %v5344_v37 = vld [vmem:[#allocation21 + $0xc4] ss:$8 sps:$4 sm:$0xff]  }
0x149b   : > { %v2987_v62 = vpop.f32.mrf.mxu1  ;;  %3437 = vmatpush1.bf16.msra.mxu1 %v5252_v36 }
0x149c   : > { %v3024_v63 = vadd.f32 %v2987_v62, %v6611_v38  ;;  %v3030_v1 = vmax.f32 %v3026_v57, 0.0  ;;  %3438 = vmatprep.subr.bf16.mxu1 %v5257_v11  ;;  %v5258_v38 = vld [vmem:[%s6889_s18] ss:$8 sps:$4 sm:$0xff]   ;;  %v3195_v62 = vmax.f32 %v5056_v33, %v5060_v40  ;;  %v5341_v33 = vld [vmem:[#allocation21 + $0xd4] ss:$8 sps:$4 sm:$0xff]  }
0x149d   : > { %v5347_v40 = vld [vmem:[#allocation21 + $0xb4] ss:$8 sps:$4 sm:$0xff]   ;;  %v3278_v42 = vpop.f32.mrf.mxu1 }
0x149e   : > { %v3028_v9 = vmax.f32 %v3024_v63, 0.0  ;;  %v3038_v4 = vpack.c.bf16 %v3030_v1, %v3029_v14  ;;  %v3200_v63 = vmax.f32 %v3196_v5, %v5065_v61  ;;  %v6783_v5 = vsub.s32 0, %v6116_v6 }
0x149f   : > { %v3280_v55 = vpop.f32.mrf.mxu1 }
0x14a0   : > { %v3037_v10 = vpack.c.bf16 %v3028_v9, %v3027_v3  ;;  %v3199_v9 = vmax.f32 %v3195_v62, %v5064_v46 }
0x14a1   : > { %v3282_v46 = vpop.f32.mrf.mxu1 }
0x14a2   : > { %5066 = vmatprep.mubr.msk.bf16.mxu0 %vm3071_vm3, %v3037_v10 }
0x14a3   : > { %5067 = vmatmul.mubr.msk.bf16.gmra.mxu0 %vm3071_vm3, %v3038_v4  ;;  %v3284_v48 = vpop.f32.mrf.mxu1 }
0x14a4   : > { %3349 = vmatprep.mubr.bf16.mxu0 %v5780_v0 }
0x14a5   : > { %v3288_v49 = vpop.f32.mrf.mxu1 }
0x14a7   : > { %v3290_v12 = vpop.f32.mrf.mxu1 }
0x14a9   : > { %v3292_v53 = vpop.f32.mrf.mxu1 }
0x14ab   : > { %4669 = vmatmul.mubr.msk.bf16.vlgmr.msra.gmra.mxu0 %vm1017_vm4, %v6290_v58  ;;  %v5255_v58 = vld [vmem:[%s6889_s18 + $0x10] ss:$8 sps:$4 sm:$0xff]  }
0x14ac   : > { %3359 = vmatprep.mubr.bf16.mxu0 %v5780_v0  ;;  %3439 = vmatpush1.bf16.msra.mxu1 %v5255_v58  ;;  %v5299_v58 = vld [vmem:[#allocation19 + $0xb4] ss:$8 sps:$4 sm:$0xff]  }
0x14ad   : > { %3724 = vmatpush1.bf16.msra.mxu0 %v5261_v19  ;;  %v5300_v19 = vld [vmem:[#allocation19 + $0xa0] ss:$8 sps:$4 sm:$0xff]  }
0x14ae   : > { %3725 = vmatprep.subr.bf16.mxu0 %v5266_v43  ;;  %v5303_v43 = vld [vmem:[#allocation19 + $0x90] ss:$8 sps:$4 sm:$0xff]  }
0x14b1   : > { %3726 = vmatpush1.bf16.msra.mxu0 %v5264_v47  ;;  %v5308_v47 = vld [vmem:[#allocation19 + $0x84] ss:$8 sps:$4 sm:$0xff]  }
0x14b2   : > { %3727 = vmatprep.subr.bf16.mxu0 %v5269_v18  ;;  %v5306_v18 = vld [vmem:[#allocation19 + $0x80] ss:$8 sps:$4 sm:$0xff]  }
0x14b3   : > { %4670 = vmatmul.mubr.msk.bf16.gmra.mxu0 %vm1017_vm4, %v6292_v59  ;;  %v5260_v59 = vld [vmem:[%s6889_s18 + $0x4] ss:$8 sps:$4 sm:$0xff]   ;;  %vm4241_vm4 = vcmask 15360  }
0x14b4   : > { %3440 = vmatprep.subr.bf16.mxu1 %v5260_v59  ;;  %v5297_v59 = vld [vmem:[#allocation19 + $0xb0] ss:$8 sps:$4 sm:$0xff]  }
0x14b5   : > { %3441 = vmatpush1.bf16.msra.mxu1 %v5258_v38  ;;  %3728 = vmatpush1.bf16.msra.mxu0 %v5267_v17  ;;  %v5302_v38 = vld [vmem:[#allocation19 + $0xa4] ss:$8 sps:$4 sm:$0xff]   ;;  %v5311_v17 = vld [vmem:[#allocation21 + $0x74] ss:$8 sps:$4 sm:$0xff]  }
0x14b6   : > { %3729 = vmatprep.subr.bf16.mxu0 %v5272_v44  ;;  %v5314_v44 = vld [vmem:[#allocation21 + $0x64] ss:$8 sps:$4 sm:$0xff]   ;;  %3992 = vmatprep.subr.bf16.mxu1 %v5311_v17 }
0x14b9   : > { %3730 = vmatpush1.bf16.msra.mxu0 %v5270_v45  ;;  %v5312_v45 = vld [vmem:[#allocation21 + $0x60] ss:$8 sps:$4 sm:$0xff]  }
0x14ba   : > { %3731 = vmatprep.subr.bf16.mxu0 %v5275_v13  ;;  %v5317_v13 = vld [vmem:[#allocation21 + $0x54] ss:$8 sps:$4 sm:$0xff]  }
0x14bd   : > { %3732 = vmatpush1.bf16.msra.mxu0 %v5273_v16  ;;  %v5315_v16 = vld [vmem:[#allocation21 + $0x50] ss:$8 sps:$4 sm:$0xff]  }
0x14be   : > { %3733 = vmatprep.subr.bf16.mxu0 %v5278_v26  ;;  %v5320_v26 = vld [vmem:[#allocation21 + $0x44] ss:$8 sps:$4 sm:$0xff]  }
0x14c1   : > { %3734 = vmatpush1.bf16.msra.mxu0 %v5276_v23  ;;  %v5318_v23 = vld [vmem:[#allocation21 + $0x40] ss:$8 sps:$4 sm:$0xff]  }
0x14c2   : > { %3735 = vmatprep.subr.bf16.mxu0 %v5281_v24  ;;  %v5323_v24 = vld [vmem:[#allocation21 + $0x34] ss:$8 sps:$4 sm:$0xff]  }
0x14c5   : > { %3736 = vmatpush1.bf16.msra.mxu0 %v5279_v27  ;;  %v5321_v27 = vld [vmem:[#allocation21 + $0x30] ss:$8 sps:$4 sm:$0xff]  }
0x14c6   : > { %3737 = vmatprep.subr.bf16.mxu0 %v5284_v28  ;;  %v5326_v28 = vld [vmem:[#allocation21 + $0x24] ss:$8 sps:$4 sm:$0xff]  }
0x14c9   : > { %3738 = vmatpush1.bf16.msra.mxu0 %v5282_v7  ;;  %v5324_v7 = vld [vmem:[#allocation21 + $0x20] ss:$8 sps:$4 sm:$0xff]  }
0x14ca   : > { %3739 = vmatprep.subr.bf16.mxu0 %v5287_v25  ;;  %v5329_v25 = vld [vmem:[#allocation21 + $0x14] ss:$8 sps:$4 sm:$0xff]  }
0x14cd   : > { %3740 = vmatpush2.bf16.msra.mxu0 %v5285_v29  ;;  %v5327_v29 = vld [vmem:[#allocation21 + $0x10] ss:$8 sps:$4 sm:$0xff]  }
0x14ce   : > { %3741 = vmatprep.subr.bf16.mxu0 %v5290_v30  ;;  %v5332_v30 = vld [vmem:[#allocation21 + $0x4] ss:$8 sps:$4 sm:$0xff]  }
0x14d1   : > { %3742 = vmatpush2.bf16.msra.mxu0 %v5288_v31  ;;  %v5330_v31 = vld [vmem:[#allocation21] ss:$8 sps:$4 sm:$0xff]  }
0x14d2   : > { %3743 = vmatprep.subr.bf16.mxu0 %v5293_v20  ;;  %v5335_v20 = vld [vmem:[#allocation21 + $0xf4] ss:$8 sps:$4 sm:$0xff]  }
0x14d5   : > { %3744 = vmatpush2.bf16.msra.mxu0 %v5291_v32  ;;  %v5333_v32 = vld [vmem:[#allocation21 + $0xf0] ss:$8 sps:$4 sm:$0xff]  }
0x14d6   : > { %3745 = vmatprep.subr.bf16.mxu0 %v5296_v15  ;;  %v5338_v15 = vld [vmem:[#allocation21 + $0xe4] ss:$8 sps:$4 sm:$0xff]  }
0x14d9   : > { %3746 = vmatpush2.bf16.msra.mxu0 %v5294_v21  ;;  %v5336_v21 = vld [vmem:[#allocation21 + $0xe0] ss:$8 sps:$4 sm:$0xff]  }
0x14da   : > { %3747 = vmatprep.subr.bf16.mxu0 %v5299_v58 }
0x14dd   : > { %3748 = vmatpush2.bf16.msra.mxu0 %v5297_v59 }
0x14de   : > { %3749 = vmatprep.subr.bf16.mxu0 %v5302_v38 }
0x14e1   : > { %3750 = vmatpush2.bf16.msra.mxu0 %v5300_v19 }
0x14e2   : > { %3751 = vmatprep.subr.bf16.mxu0 %v5305_v22 }
0x14e5   : > { %3752 = vmatpush2.bf16.msra.mxu0 %v5303_v43 }
0x14e6   : > { %3753 = vmatprep.subr.bf16.mxu0 %v5308_v47 }
0x14e9   : > { %3754 = vmatpush2.bf16.msra.mxu0 %v5306_v18 }
0x1563   : > { %v5068_v56 = vpop.f32.mrf.mxu0 }
0x1564   : > { %v3203_v4 = vmax.f32 %v3199_v9, %v5068_v56 }
0x1565   : > { %v3178_v52 = vpop.f32.mrf.mxu0 }
0x1566   : > { %v3201_v51 = vmax.f32 %v3197_v54, %v3178_v52  ;;  %v3214_v36 = vadd.f32 %v4658_v60, %v3203_v4 }
0x1567   : > { %v5069_v50 = vpop.f32.mrf.mxu0 }
0x1568   : > { %v3212_v1 = vadd.f32 %v4658_v60, %v3201_v51  ;;  %v3204_v14 = vmax.f32 %v3200_v63, %v5069_v50  ;;  %v3294_v50 = vpop.f32.mrf.mxu1  ;;  %v6780_v51 = vsub.s32 1, %v6116_v6 }
0x1569   : > { %v3181_v2 = vpop.f32.mrf.mxu0 }
0x156a   : > { %v3202_v57 = vmax.f32 %v3198_v8, %v3181_v2  ;;  %v3215_v35 = vadd.f32 %v4658_v60, %v3204_v14 }
0x156b   : > { %v3351_v61 = vpop.f32.mrf.mxu0 }
0x156c   : > { %v3213_v3 = vadd.f32 %v4658_v60, %v3202_v57  ;;  %v3371_v11 = vpack.c.bf16 %v3215_v35, %v3214_v36  ;;  %v3487_v60 = vld [vmem:[%s6890_s19] sm:$0x3]  ;;  %v3352_v62 = vadd.f32 %v3351_v61, %v3278_v42  ;;  %v5351_v61 = vld [vmem:[#allocation21 + $0x90] ss:$8 sps:$4 sm:$0xff]  }
0x156d   : > { %v3353_v56 = vpop.f32.mrf.mxu0  ;;  %v3496_v14 = vrot.slane %v3487_v60, %v6780_v51  ;;  %v3492_v4 = vrot.slane %v3487_v60, %v6783_v5  ;;  %v5365_v60 = vld [vmem:[%s6895_s24 + $0x58] sm:$0xff]  }
0x156e   : > { %v3370_v10 = vpack.c.bf16 %v3213_v3, %v3212_v1  ;;  %v3354_v57 = vadd.f32 %v3353_v56, %v3280_v55  ;;  %v5350_v55 = vld [vmem:[#allocation21 + $0xa4] ss:$8 sps:$4 sm:$0xff]   ;;  %v5354_v56 = vld [vmem:[#allocation21 + $0x80] ss:$8 sps:$4 sm:$0xff]  }
0x156f   : > { %v3355_v52 = vpop.f32.mrf.mxu0 }
0x1570   : > { %4679 = vmatmul.mubr.msk.bf16.vlgmr.msra.gmra.mxu1 %vm3071_vm3, %v3370_v10  ;;  %v3356_v3 = vadd.f32 %v3355_v52, %v3282_v46  ;;  %v5348_v46 = vld [vmem:[#allocation21 + $0xa0] ss:$8 sps:$4 sm:$0xff]   ;;  %v5358_v52 = vld [vmem:[%s6895_s24 + $0x38] sm:$0xff]  }
0x1571   : > { %3468 = vmatprep.mubr.bf16.mxu1 %v5780_v0  ;;  %v5309_v0 = vld [vmem:[#allocation21 + $0x70] ss:$8 sps:$4 sm:$0xff]   ;;  %v3357_v54 = vpop.f32.mrf.mxu0 }
0x1572   : > { %3993 = vmatpush1.bf16.msra.mxu1 %v5309_v0  ;;  %v3358_v36 = vadd.f32 %v3357_v54, %v3284_v48  ;;  %v5353_v48 = vld [vmem:[#allocation21 + $0x94] ss:$8 sps:$4 sm:$0xff]  }
0x1573   : > { %3994 = vmatprep.subr.bf16.mxu1 %v5314_v44  ;;  %v3361_v8 = vpop.f32.mrf.mxu0  ;;  %v5360_v54 = vld [vmem:[%s6895_s24 + $0x30] sm:$0xff]  }
0x1574   : > { %v3362_v0 = vadd.f32 %v3361_v8, %v3288_v49  ;;  %v5356_v49 = vld [vmem:[#allocation21 + $0x84] ss:$8 sps:$4 sm:$0xff]  }
0x1575   : > { %v3363_v63 = vpop.f32.mrf.mxu0  ;;  %v5362_v8 = vld [vmem:[%s6895_s24 + $0x28] sm:$0xff]  }
0x1576   : > { %3995 = vmatpush1.bf16.msra.mxu1 %v5312_v45  ;;  %v3364_v47 = vadd.f32 %v3363_v63, %v3290_v12  ;;  %v5357_v12 = vld [vmem:[%s6895_s24 + $0x78] sm:$0xff]   ;;  %v3551_v63 = vld [vmem:[%s6892_s21] sm:$0x3] }
0x1577   : > { %3996 = vmatprep.subr.bf16.mxu1 %v5317_v13  ;;  %v3365_v6 = vpop.f32.mrf.mxu0  ;;  %4858 = vmatprep.subr.bf16.mxu0 %v5357_v12 }
0x1578   : > { %4680 = vmatmul.mubr.msk.bf16.gmra.mxu1 %vm3071_vm3, %v3371_v11  ;;  %v3366_v13 = vadd.f32 %v3365_v6, %v3292_v53  ;;  %v5359_v53 = vld [vmem:[%s6895_s24 + $0x70] sm:$0xff]  }
0x1579   : > { %v3367_v17 = vpop.f32.mrf.mxu0 }
0x157a   : > { %3997 = vmatpush1.bf16.msra.mxu1 %v5315_v16 }
0x157b   : > { %3998 = vmatprep.subr.bf16.mxu1 %v5320_v26 }
0x157e   : > { %3999 = vmatpush1.bf16.msra.mxu1 %v5318_v23 }
0x157f   : > { %4000 = vmatprep.subr.bf16.mxu1 %v5323_v24 }
0x1582   : > { %4001 = vmatpush1.bf16.msra.mxu1 %v5321_v27 }
0x1583   : > { %4002 = vmatprep.subr.bf16.mxu1 %v5326_v28 }
0x1586   : > { %4003 = vmatpush1.bf16.msra.mxu1 %v5324_v7  ;;  %v3368_v7 = vadd.f32 %v3367_v17, %v3294_v50  ;;  %v5361_v50 = vld [vmem:[%s6895_s24 + $0x68] sm:$0xff]  }
0x1587   : > { %4004 = vmatprep.subr.bf16.mxu1 %v5329_v25 }
0x158a   : > { %4005 = vmatpush1.bf16.msra.mxu1 %v5327_v29 }
0x158b   : > { %4006 = vmatprep.subr.bf16.mxu1 %v5332_v30 }
0x158e   : > { %4007 = vmatpush1.bf16.msra.mxu1 %v5330_v31 }
0x158f   : > { %4008 = vmatprep.subr.bf16.mxu1 %v5335_v20 }
0x1592   : > { %4009 = vmatpush2.bf16.msra.mxu1 %v5333_v32 }
0x1593   : > { %4010 = vmatprep.subr.bf16.mxu1 %v5338_v15 }
0x1596   : > { %4011 = vmatpush2.bf16.msra.mxu1 %v5336_v21 }
0x1597   : > { %4012 = vmatprep.subr.bf16.mxu1 %v5341_v33 }
0x159a   : > { %4013 = vmatpush2.bf16.msra.mxu1 %v5339_v34 }
0x159b   : > { %4014 = vmatprep.subr.bf16.mxu1 %v5344_v37 }
0x159e   : > { %4015 = vmatpush2.bf16.msra.mxu1 %v5342_v39 }
0x159f   : > { %4016 = vmatprep.subr.bf16.mxu1 %v5347_v40 }
0x15a2   : > { %4017 = vmatpush2.bf16.msra.mxu1 %v5345_v41 }
0x15a3   : > { %4018 = vmatprep.subr.bf16.mxu1 %v5350_v55 }
0x15a6   : > { %4019 = vmatpush2.bf16.msra.mxu1 %v5348_v46 }
0x15a7   : > { %4020 = vmatprep.subr.bf16.mxu1 %v5353_v48 }
0x15aa   : > { %4021 = vmatpush2.bf16.msra.mxu1 %v5351_v61 }
0x15ab   : > { %4022 = vmatprep.subr.bf16.mxu1 %v5356_v49 }
0x15ae   : > { %4023 = vmatpush2.bf16.msra.mxu1 %v5354_v56 }
0x1630   : > { %v3460_v2 = vpop.f32.mrf.mxu1 }
0x1631   : > { %v3479_v10 = vadd.f32 %v3460_v2, %v3352_v62  ;;  %v5363_v2 = vld [vmem:[%s6895_s24 + $0x60] sm:$0xff]   ;;  %v5366_v62 = vld [vmem:[%s6895_s24 + $0x18] sm:$0xff]  }
0x1632   : > { %v3462_v1 = vpop.f32.mrf.mxu1 }
0x1633   : > { %v3480_v9 = vadd.f32 %v3462_v1, %v3354_v57  ;;  %v3499_v22 = vadd.f32 %v3492_v4, %v3479_v10  ;;  %v5364_v57 = vld [vmem:[%s6895_s24 + $0x20] sm:$0xff]  }
0x1634   : > { %v3464_v35 = vpop.f32.mrf.mxu1 }
0x1635   : > { %v3481_v11 = vadd.f32 %v3464_v35, %v3356_v3  ;;  %v3500_v59 = vadd.f32 %v3496_v14, %v3480_v9  ;;  %v3507_v24 = vmax.f32 %v3499_v22, 0.0  ;;  %v3560_v3 = vrot.slane %v3551_v63, %v6780_v51 }
0x1636   : > { %v3466_v58 = vpop.f32.mrf.mxu1  ;;  %v3556_v9 = vrot.slane %v3551_v63, %v6783_v5 }
0x1637   : > { %v3501_v38 = vadd.f32 %v3492_v4, %v3481_v11  ;;  %v3482_v19 = vadd.f32 %v3466_v58, %v3358_v36  ;;  %v3508_v16 = vmax.f32 %v3500_v59, 0.0 }
0x1638   : > { %v3470_v43 = vpop.f32.mrf.mxu1 }
0x1639   : > { %v3502_v18 = vadd.f32 %v3496_v14, %v3482_v19  ;;  %v3509_v44 = vmax.f32 %v3501_v38, 0.0  ;;  %v3483_v27 = vadd.f32 %v3470_v43, %v3362_v0 }
0x163a   : > { %v3472_v45 = vpop.f32.mrf.mxu1 }
0x163b   : > { %v3510_v26 = vmax.f32 %v3502_v18, 0.0  ;;  %v3484_v23 = vadd.f32 %v3472_v45, %v3364_v47  ;;  %v3515_v30 = vpack.c.bf16 %v3509_v44, %v3507_v24  ;;  %v3503_v21 = vadd.f32 %v3492_v4, %v3483_v27 }
0x163c   : > { %v3474_v28 = vpop.f32.mrf.mxu1 }
0x163d   : > { %v3485_v25 = vadd.f32 %v3474_v28, %v3366_v13  ;;  %v3516_v29 = vpack.c.bf16 %v3510_v26, %v3508_v16  ;;  %v3504_v20 = vadd.f32 %v3496_v14, %v3484_v23  ;;  %v3511_v40 = vmax.f32 %v3503_v21, 0.0 }
0x163e   : > { %v3476_v31 = vpop.f32.mrf.mxu1 }
0x163f   : > { %v3505_v32 = vadd.f32 %v3492_v4, %v3485_v25  ;;  %v3486_v15 = vadd.f32 %v3476_v31, %v3368_v7  ;;  %3755 = vmatprep.mubr.bf16.mxu0 %v3516_v29  ;;  %v3512_v37 = vmax.f32 %v3504_v20, 0.0  ;;  %v5367_v25 = vld [vmem:[%s6895_s24 + $0x50] sm:$0xff]   ;;  %v5370_v31 = vld [vmem:[%s6895_s24 + $0x8] sm:$0xff]   ;;  %v5371_v20 = vld [vmem:[%s6895_s24 + $0x40] sm:$0xff]  }
0x1640   : > { %3756 = vmatmul.mubr.bf16.vlgmr.msra.gmra.mxu0 %v3515_v30  ;;  %v5368_v29 = vld [vmem:[%s6895_s24 + $0x10] sm:$0xff]   ;;  %v5369_v30 = vld [vmem:[%s6895_s24 + $0x48] sm:$0xff]  }
0x1641   : > { %v3506_v33 = vadd.f32 %v3496_v14, %v3486_v15  ;;  %v3513_v34 = vmax.f32 %v3505_v32, 0.0  ;;  %4859 = vmatpush3.bf16.msra.mxu0 %v5358_v52  ;;  %v5372_v32 = vld [vmem:[%s6895_s24] sm:$0xff]  }
0x1642   : > { %4860 = vmatprep.subr.bf16.mxu0 %v5359_v53  ;;  %v3820_v15 = vld [vmem:[%s6894_s23] sm:$0x3] }
0x1643   : > { %v3514_v39 = vmax.f32 %v3506_v33, 0.0  ;;  %v3517_v42 = vpack.c.bf16 %v3513_v34, %v3511_v40  ;;  %v3829_v33 = vrot.slane %v3820_v15, %v6780_v51  ;;  %v3825_v34 = vrot.slane %v3820_v15, %v6783_v5 }
0x1645   : > { %v3518_v41 = vpack.c.bf16 %v3514_v39, %v3512_v37  ;;  %4861 = vmatpush3.bf16.msra.mxu0 %v5360_v54 }
0x1646   : > { %4862 = vmatprep.subr.bf16.mxu0 %v5361_v50 }
0x1647   : > { %3765 = vmatprep.mubr.bf16.mxu0 %v3518_v41 }
0x1648   : > { %3766 = vmatmul.mubr.bf16.gmra.mxu0 %v3517_v42 }
0x1649   : > { %4863 = vmatpush3.bf16.msra.mxu0 %v5362_v8 }
0x164a   : > { %4864 = vmatprep.subr.bf16.mxu0 %v5363_v2 }
0x164d   : > { %4865 = vmatpush3.bf16.msra.mxu0 %v5364_v57 }
0x164e   : > { %4866 = vmatprep.subr.bf16.mxu0 %v5365_v60 }
0x1651   : > { %4867 = vmatpush3.bf16.msra.mxu0 %v5366_v62 }
0x1652   : > { %4868 = vmatprep.subr.bf16.mxu0 %v5367_v25 }
0x1655   : > { %4869 = vmatpush3.bf16.msra.mxu0 %v5368_v29 }
0x1656   : > { %4870 = vmatprep.subr.bf16.mxu0 %v5369_v30 }
0x1659   : > { %4871 = vmatpush3.bf16.msra.mxu0 %v5370_v31 }
0x165a   : > { %4872 = vmatprep.subr.bf16.mxu0 %v5371_v20 }
0x165d   : > { %4873 = vmatpush3.bf16.msra.mxu0 %v5372_v32 }
0x1700   : > { %v3757_v1 = vpop.f32.mrf.mxu0 }
0x1701   : > { %v3758_v36 = vadd.f32 %v3757_v1, %v3556_v9 }
0x1702   : > { %v3759_v14 = vpop.f32.mrf.mxu0 }
0x1703   : > { %v3760_v4 = vadd.f32 %v3759_v14, %v3560_v3  ;;  %v3776_v22 = vmax.f32 %v3758_v36, 0.0 }
0x1704   : > { %v3761_v10 = vpop.f32.mrf.mxu0 }
0x1705   : > { %v3762_v35 = vadd.f32 %v3761_v10, %v3556_v9  ;;  %v3777_v38 = vmax.f32 %v3760_v4, 0.0  ;;  %v4745_v10 = vld [vmem:[%s6896_s25] ss:$0 sm:$0xff] }
0x1706   : > { %v3763_v11 = vpop.f32.mrf.mxu0 }
0x1707   : > { %v3764_v6 = vadd.f32 %v3763_v11, %v3560_v3  ;;  %v3778_v58 = vmax.f32 %v3762_v35, 0.0 }
0x1708   : > { %v3767_v59 = vpop.f32.mrf.mxu0 }
0x1709   : > { %v3779_v19 = vmax.f32 %v3764_v6, 0.0  ;;  %v3784_v18 = vpack.c.bf16 %v3778_v58, %v3776_v22  ;;  %v3768_v45 = vadd.f32 %v3767_v59, %v3556_v9 }
0x170a   : > { %v3769_v43 = vpop.f32.mrf.mxu0 }
0x170b   : > { %v3785_v47 = vpack.c.bf16 %v3779_v19, %v3777_v38  ;;  %v3770_v17 = vadd.f32 %v3769_v43, %v3560_v3  ;;  %v3780_v27 = vmax.f32 %v3768_v45, 0.0 }
0x170c   : > { %v3771_v0 = vpop.f32.mrf.mxu0 }
0x170d   : > { %v3772_v44 = vadd.f32 %v3771_v0, %v3556_v9  ;;  %4024 = vmatprep.mubr.bf16.mxu1 %v3785_v47  ;;  %v3781_v23 = vmax.f32 %v3770_v17, 0.0 }
0x170e   : > { %v3773_v13 = vpop.f32.mrf.mxu0  ;;  %4025 = vmatmul.mubr.bf16.vlgmr.msra.gmra.mxu1 %v3784_v18 }
0x170f   : > { %v3774_v16 = vadd.f32 %v3773_v13, %v3560_v3  ;;  %v3782_v26 = vmax.f32 %v3772_v44, 0.0 }
0x1711   : > { %v3783_v24 = vmax.f32 %v3774_v16, 0.0  ;;  %v3786_v7 = vpack.c.bf16 %v3782_v26, %v3780_v27 }
0x1713   : > { %v3787_v28 = vpack.c.bf16 %v3783_v24, %v3781_v23 }
0x1715   : > { %4034 = vmatprep.mubr.bf16.mxu1 %v3787_v28 }
0x1716   : > { %4035 = vmatmul.mubr.bf16.gmra.mxu1 %v3786_v7 }
0x17ce   : > { %v4026_v21 = vpop.f32.mrf.mxu1 }
0x17cf   : > { %v4027_v42 = vadd.f32 %v4026_v21, %v3825_v34 }
0x17d0   : > { %v4028_v37 = vpop.f32.mrf.mxu1 }
0x17d1   : > { %v4029_v40 = vadd.f32 %v4028_v37, %v3829_v33  ;;  %v4045_v12 = vmax.f32 %v4027_v42, 0.0 }
0x17d2   : > { %v4030_v39 = vpop.f32.mrf.mxu1 }
0x17d3   : > { %v4031_v41 = vadd.f32 %v4030_v39, %v3825_v34  ;;  %v4046_v49 = vmax.f32 %v4029_v40, 0.0 }
0x17d4   : > { %v4032_v55 = vpop.f32.mrf.mxu1 }
0x17d5   : > { %v4033_v46 = vadd.f32 %v4032_v55, %v3829_v33  ;;  %v4047_v48 = vmax.f32 %v4031_v41, 0.0 }
0x17d6   : > { %v4036_v61 = vpop.f32.mrf.mxu1 }
0x17d7   : > { %v4048_v56 = vmax.f32 %v4033_v46, 0.0  ;;  %v4053_v54 = vpack.c.bf16 %v4047_v48, %v4045_v12  ;;  %v4037_v5 = vadd.f32 %v4036_v61, %v3825_v34 }
0x17d8   : > { %v4038_v52 = vpop.f32.mrf.mxu1 }
0x17d9   : > { %v4054_v53 = vpack.c.bf16 %v4048_v56, %v4046_v49  ;;  %v4039_v8 = vadd.f32 %v4038_v52, %v3829_v33  ;;  %v4049_v1 = vmax.f32 %v4037_v5, 0.0 }
0x17da   : > { %v4040_v50 = vpop.f32.mrf.mxu1 }
0x17db   : > { %v4041_v51 = vadd.f32 %v4040_v50, %v3825_v34  ;;  %4224 = vmatprep.mubr.bf16.mxu0 %v4054_v53  ;;  %v4050_v62 = vmax.f32 %v4039_v8, 0.0 }
0x17dc   : > { %v4042_v2 = vpop.f32.mrf.mxu1  ;;  %4225 = vmatmul.mubr.bf16.vlgmr.msra.gmra.mxu0 %v4053_v54 }
0x17dd   : > { %v4043_v57 = vadd.f32 %v4042_v2, %v3829_v33  ;;  %v4051_v60 = vmax.f32 %v4041_v51, 0.0 }
0x17df   : > { %v4052_v63 = vmax.f32 %v4043_v57, 0.0  ;;  %v4055_v9 = vpack.c.bf16 %v4051_v60, %v4049_v1 }
0x17e1   : > { %v4056_v3 = vpack.c.bf16 %v4052_v63, %v4050_v62 }
0x17e3   : > { %4232 = vmatprep.mubr.bf16.mxu0 %v4056_v3 }
0x17e4   : > { %4233 = vmatmul.mubr.bf16.gmra.mxu0 %v4055_v9 }
0x189c   : > { %v4874_v14 = vpop.f32.mrf.mxu0 }
0x189e   : > { %v4875_v4 = vpop.f32.mrf.mxu0 }
0x189f   : > { %v4876_v35 = vadd.f32 %v4875_v4, %v4874_v14 }
0x18a0   : > { %v4877_v36 = vpop.f32.mrf.mxu0 }
0x18a1   : > { %v4227_v11 = vadd.f32 %v4876_v35, %v4745_v10 }
0x18a2   : > { %v4878_v6 = vpop.f32.mrf.mxu0 }
0x18a3   : > { %v4879_v58 = vadd.f32 %v4878_v6, %v4877_v36  ;;  %v4242_v59 = vsel %vm4241_vm4, %v4227_v11, -inf }
0x18a4   : > { %4243 = vmax.xlane.f32.xlu1 %v4242_v59  ;;  %v4880_v38 = vpop.f32.mrf.mxu0 }
0x18a5   : > { %v4230_v19 = vadd.f32 %v4879_v58, %v4745_v10 }
0x18a6   : > { %v4881_v22 = vpop.f32.mrf.mxu0 }
0x18a7   : > { %v4882_v43 = vadd.f32 %v4881_v22, %v4880_v38  ;;  %v4245_v47 = vsel %vm4241_vm4, %v4230_v19, -inf }
0x18a8   : > { %4246 = vmax.xlane.f32.xlu0 %v4245_v47  ;;  %v4883_v18 = vpop.f32.mrf.mxu0 }
0x18a9   : > { %v4235_v0 = vadd.f32 %v4882_v43, %v4745_v10 }
0x18aa   : > { %v4884_v17 = vpop.f32.mrf.mxu0 }
0x18ab   : > { %v4885_v44 = vadd.f32 %v4884_v17, %v4883_v18  ;;  %v4248_v45 = vsel %vm4241_vm4, %v4235_v0, -inf }
0x18ac   : > { %4249 = vmax.xlane.f32.xlu1 %v4248_v45 }
0x18ad   : > { %v4238_v13 = vadd.f32 %v4885_v44, %v4745_v10 }
0x18af   : > { %v4251_v16 = vsel %vm4241_vm4, %v4238_v13, -inf }
0x18b0   : > { %4252 = vmax.xlane.f32.xlu0 %v4251_v16 }
0x192d   : > { %v4244_v26 = vpop.xlane.xlu1 %4243 }
0x192e   : > { %v4254_v23 = vsub.f32 %v4227_v11, %v4244_v26 }
0x1930   : > { %v4258_v24 = vmul.f32 1.442695, %v4254_v23 }
0x1931   : > { %v4247_v27 = vpop.xlane.xlu0 %4246 }
0x1932   : > { %5373 = vpow2.f32 %v4258_v24  ;;  %v4255_v28 = vsub.f32 %v4230_v19, %v4247_v27 }
0x1934   : > { %v4260_v7 = vmul.f32 1.442695, %v4255_v28 }
0x1935   : > { %v4250_v25 = vpop.xlane.xlu1 %4249 }
0x1936   : > { %5375 = vpow2.f32 %v4260_v7  ;;  %v4256_v29 = vsub.f32 %v4235_v0, %v4250_v25 }
0x1938   : > { %v4262_v30 = vmul.f32 1.442695, %v4256_v29 }
0x1939   : > { %v4253_v31 = vpop.xlane.xlu0 %4252 }
0x193a   : > { %5377 = vpow2.f32 %v4262_v30  ;;  %v4257_v20 = vsub.f32 %v4238_v13, %v4253_v31 }
0x193c   : > { %v4264_v32 = vmul.f32 1.442695, %v4257_v20 }
0x193e   : > { %5379 = vpow2.f32 %v4264_v32 }
0x193f   : > { %v5374_v15 = vpop.eup %5373 }
0x1940   : > { %v4266_v21 = vsel %vm4241_vm4, %v5374_v15, 0.0 }
0x1941   : > { %4267 = vadd.xlane.f32.xlu1 %v4266_v21 }
0x1943   : > { %v5376_v33 = vpop.eup %5375 }
0x1944   : > { %v4269_v34 = vsel %vm4241_vm4, %v5376_v33, 0.0 }
0x1945   : > { %4270 = vadd.xlane.f32.xlu0 %v4269_v34 }
0x1947   : > { %v5378_v37 = vpop.eup %5377 }
0x1948   : > { %v4272_v39 = vsel %vm4241_vm4, %v5378_v37, 0.0 }
0x1949   : > { %4273 = vadd.xlane.f32.xlu1 %v4272_v39 }
0x194b   : > { %v5380_v40 = vpop.eup %5379 }
0x194c   : > { %v4275_v41 = vsel %vm4241_vm4, %v5380_v40, 0.0 }
0x194d   : > { %4276 = vadd.xlane.f32.xlu0 %v4275_v41 }
0x19ca   : > { %v4268_v42 = vpop.xlane.xlu1 %4267 }
0x19cb   : > { %5381 = vlog2.f32 %v4268_v42 }
0x19ce   : > { %v4271_v55 = vpop.xlane.xlu0 %4270 }
0x19cf   : > { %5383 = vlog2.f32 %v4271_v55 }
0x19d2   : > { %v4274_v46 = vpop.xlane.xlu1 %4273 }
0x19d3   : > { %5385 = vlog2.f32 %v4274_v46 }
0x19d6   : > { %v4277_v48 = vpop.xlane.xlu0 %4276 }
0x19d7   : > { %5387 = vlog2.f32 %v4277_v48 }
0x19d8   : > { %v5382_v61 = vpop.eup %5381 }
0x19d9   : > { %v4279_v49 = vmul.f32 0.6931472, %v5382_v61 }
0x19db   : > { %v4286_v56 = vsub.f32 %v4254_v23, %v4279_v49 }
0x19dc   : > { %v5384_v12 = vpop.eup %5383 }
0x19dd   : > { %4290 = vst.msk [vmem:[%s966_s8] sm:$0xff] %vm4241_vm4, %v4286_v56  ;;  %v4281_v52 = vmul.f32 0.6931472, %v5384_v12 }
0x19df   : > { %v4287_v53 = vsub.f32 %v4255_v28, %v4281_v52 }
0x19e0   : > { %v5386_v54 = vpop.eup %5385 }
0x19e1   : > { %4291 = vst.msk [vmem:[%s966_s8 + $0x8] sm:$0xff] %vm4241_vm4, %v4287_v53  ;;  %v4283_v50 = vmul.f32 0.6931472, %v5386_v54 }
0x19e3   : > { %v4288_v8 = vsub.f32 %v4256_v29, %v4283_v50 }
0x19e4   : > { %v5388_v51 = vpop.eup %5387 }
0x19e5   : > { %4292 = vst.msk [vmem:[%s966_s8 + $0x10] sm:$0xff] %vm4241_vm4, %v4288_v8  ;;  %v4285_v5 = vmul.f32 0.6931472, %v5388_v51 }
0x19e7   : > { %v4289_v2 = vsub.f32 %v4257_v20, %v4285_v5 }
0x19e9   : > { %4293 = vst.msk [vmem:[%s966_s8 + $0x18] sm:$0xff] %vm4241_vm4, %v4289_v2 }
0x19ea PF: > { %s43_s27 = sadd.s32 1, %s5761_s27  }
0x19eb   : > { %p40_p7 = scmp.ge.s32.totalorder %s43_s27, 4  }
0x19ed   :  { %42 = sbr.rel (!%p40_p7) target bundleno = 22 (0x16), region = 207 }
0x19f2   :  { %4316 = vsyncpa [#allocation3], 1 }
0x19f3   :  { %4318 = vsyncpa [#allocation3 + $0x1], 1 }
0x19f4   :  { %4319 = vsyncpa [#allocation5], 1 }
0x19f5   :  { %4320 = vsyncpa [#allocation8], 1 }
0x19f6   :  { %4321 = vsyncpa [#allocation11], 1 }
0x19f7   :  { %4322 = vsyncpa [#allocation14], 1 }
0x19f8   :  { %4323 = vsyncpa [#allocation17], 1 }
0x19f9   :  { %4324 = vsyncpa [#allocation20], 1 }

</bundles_post_ra>
